<compile_context>
chip_gen: v6e
topology: v6e:2x2x1
jax: 0.10.0
libtpu: 0.0.40
codegen_flags: <defaults>
</compile_context>

<pallas_src>
import functools

import numpy as np
import jax
import jax.numpy as jnp
from jax.experimental import pallas as pl
from jax.experimental.pallas import tpu as pltpu

K = 11          # kernel_size
C_OUT = 24      # out_channels
EPS = 1e-5      # BatchNorm2d default eps


def _cdiv(a, b):
    return -(-a // b)


def _round_up(x, m):
    return _cdiv(x, m) * m


def _pick_tile(extent, unit, max_tile):
    """Smallest tile count, then smallest tile (multiple of `unit`) covering extent."""
    if extent <= max_tile:
        return _round_up(extent, unit)
    return _round_up(_cdiv(extent, _cdiv(extent, max_tile)), unit)


def _vmem_limit_bytes():
    """Generation-dependent scoped-VMEM limit (~3/4 of physical, capped)."""
    try:
        cap = int(pltpu.get_tpu_info().vmem_capacity_bytes)
    except Exception:
        cap = 64 * 1024 * 1024          # v7x-safe fallback
    return min((cap * 3) // 4, 112 * 1024 * 1024)


def _conv_kernel(x_ref, b_ref, bias_ref, out_ref, sum_ref, sq_ref, lhs_ref, *, TH, S):
    """ConvTranspose2d (stride 1) for one (batch, Ho-tile, Wo-tile) block + BN stat partials."""
    x = x_ref[...]                                       # (TH+K-1, S) bf16, lane-padded
    # Pack the K row-shifted windows into 128-lane-aligned contraction segments
    # (a few hundred KB of aligned bf16 stores, vs ~18 MB of f32 acc RMW before).
    for a in range(K):
        lhs_ref[:, a * S:(a + 1) * S] = x[a:a + TH, :]
    # Single deep-contraction MXU matmul: (TH, K*S) x (K*S, TW*C) -> f32.
    acc = jnp.dot(lhs_ref[...], b_ref[...], preferred_element_type=jnp.float32)
    out_ref[...] = (acc + bias_ref[...]).astype(out_ref.dtype)
    # Per-(width,channel)-column partial sums for BatchNorm batch statistics,
    # taken on the bias-free response (less E[x^2]-E[x]^2 cancellation); tile
    # padding rows/cols of the bias-free response are exactly zero (zero-padded
    # input), so no mask is needed.  The wrapper adds the bias back to the mean.
    sum_ref[...] = jnp.sum(acc, axis=0, keepdims=True)
    sq_ref[...] = jnp.sum(acc * acc, axis=0, keepdims=True)


def _bn_sigmoid_kernel(x_ref, scale_ref, shift_ref, o_ref):
    """Fused BatchNorm (precomputed per-column scale/shift) + sigmoid, elementwise."""
    y = x_ref[...].astype(jnp.float32) * scale_ref[...] + shift_ref[...]
    o_ref[...] = (1.0 / (1.0 + jnp.exp(-y))).astype(o_ref.dtype)


def conv_transpose_bn_sigmoid(x_nchw, w, bias, gamma, beta):
    N, Cin, H, W = x_nchw.shape
    assert Cin == 1
    Ho, Wo = H + K - 1, W + K - 1

    # Row tile TH (multiple of 8).  Width tile TW: multiple of 16 (so TW*24 is a
    # multiple of 128 lanes) and <= 112 so TWK = TW+K-1 <= 122 fits in one
    # 128-lane contraction segment.
    TH = _pick_tile(Ho, 8, 256)
    TW = _pick_tile(Wo, 16, 112)
    nH, nW = _cdiv(Ho, TH), _cdiv(Wo, TW)
    Ho_p, Wo_p = nH * TH, nW * TW
    THK, TWK = TH + K - 1, TW + K - 1
    S = _round_up(TWK, 128)              # lane-aligned per-shift segment (= 128)
    KS = K * S                           # merged contraction depth
    TWC = TW * C_OUT
    WoC_p = Wo_p * C_OUT

    vmem_limit = _vmem_limit_bytes()

    # --- parameter plumbing (small, runs once in XLA) ---
    # Banded weight block shared by every tile, stacked along the contraction
    # axis so the K row shifts become one matmul:
    #   Bs[a*S + wi, j*C + c] = wf[a, wi - j, c]  for 0 <= wi - j < K, wi < TWK
    # where wf is the spatially flipped ConvTranspose weight.
    wf = jnp.transpose(jnp.flip(w[0].astype(jnp.float32), axis=(-2, -1)), (1, 2, 0))  # (K,K,C)
    d = jnp.arange(TWK)[None, :] - jnp.arange(TW)[:, None]                            # (TW,TWK)
    band = jnp.where(((d >= 0) & (d < K))[None, :, :, None],
                     wf[:, jnp.clip(d, 0, K - 1), :], 0.0)                            # (K,TW,TWK,C)
    Bs = jnp.transpose(band, (0, 2, 1, 3)).reshape(K, TWK, TWC)
    Bs = jnp.pad(Bs, ((0, 0), (0, S - TWK), (0, 0))).reshape(KS, TWC).astype(jnp.bfloat16)
    bias_row = jnp.tile(bias.astype(jnp.float32), TW).reshape(1, TWC)

    # Zero-pad the input (conv-transpose halo + tile padding + lane padding to S)
    # in bf16 and pre-gather the small overlapping (THK, S) windows.
    xp = jnp.pad(x_nchw[:, 0].astype(jnp.bfloat16),
                 ((0, 0),
                  (K - 1, K - 1 + Ho_p - Ho),
                  (K - 1, K - 1 + Wo_p - Wo + S - TWK)))
    xh = jnp.stack([xp[:, i * TH:i * TH + THK, :] for i in range(nH)], axis=1)
    xt = jnp.stack([xh[:, :, :, j * TW:j * TW + S] for j in range(nW)], axis=2)  # (N,nH,nW,THK,S)

    conv = pl.pallas_call(
        functools.partial(_conv_kernel, TH=TH, S=S),
        out_shape=(jax.ShapeDtypeStruct((N, Ho_p, WoC_p), jnp.bfloat16),     # de-tiled slab
                   jax.ShapeDtypeStruct((N, nH, nW, 1, TWC), jnp.float32),   # col sums
                   jax.ShapeDtypeStruct((N, nH, nW, 1, TWC), jnp.float32)),  # col sq sums
        grid_spec=pltpu.PrefetchScalarGridSpec(
            num_scalar_prefetch=0,
            grid=(N, nH, nW),
            in_specs=[pl.BlockSpec((None, None, None, THK, S),
                                   lambda n, i, j: (n, i, j, 0, 0)),
                      # TODO(synk): Bs/bias are grid-invariant; pipeline_mode=pl.Buffered(1)
                      # would halve their VMEM footprint on v7x once the default
                      # pallas_call pipeliner honors it.  Fits under the limit as is.
                      pl.BlockSpec((KS, TWC), lambda n, i, j: (0, 0)),
                      pl.BlockSpec((1, TWC), lambda n, i, j: (0, 0))],
            out_specs=(pl.BlockSpec((None, TH, TWC), lambda n, i, j: (n, i, j)),
                       pl.BlockSpec((None, None, None, 1, TWC),
                                    lambda n, i, j: (n, i, j, 0, 0)),
                       pl.BlockSpec((None, None, None, 1, TWC),
                                    lambda n, i, j: (n, i, j, 0, 0))),
            scratch_shapes=[pltpu.VMEM((TH, KS), jnp.bfloat16)]),
        compiler_params=pltpu.CompilerParams(
            dimension_semantics=("parallel", "parallel", "parallel"),
            vmem_limit_bytes=vmem_limit),
    )
    v1, col_sum, col_sq = conv(xt, Bs, bias_row)

    # --- BatchNorm2d training statistics (biased variance); tiny reduction in XLA ---
    # Padded rows/cols contribute exactly zero to the bias-free partial sums.
    count = N * Ho * Wo
    cs = col_sum.sum(axis=(0, 1, 2, 3)).reshape(TW, C_OUT).sum(axis=0)
    cq = col_sq.sum(axis=(0, 1, 2, 3)).reshape(TW, C_OUT).sum(axis=0)
    mean_nb = cs / count                       # mean of the bias-free response
    var = cq / count - mean_nb * mean_nb
    mean = mean_nb + bias.astype(jnp.float32)
    inv = gamma.astype(jnp.float32) / jnp.sqrt(var + EPS)
    scale_row = jnp.tile(inv, Wo_p).reshape(1, WoC_p)
    shift_row = jnp.tile(beta.astype(jnp.float32) - mean * inv, Wo_p).reshape(1, WoC_p)

    # BN + sigmoid: bandwidth-bound, full-width row blocks, bf16 in / bf16 out.
    bn = pl.pallas_call(
        _bn_sigmoid_kernel,
        out_shape=jax.ShapeDtypeStruct((N, Ho_p, WoC_p), jnp.bfloat16),
        grid_spec=pltpu.PrefetchScalarGridSpec(
            num_scalar_prefetch=0,
            grid=(N, nH),
            in_specs=[pl.BlockSpec((None, TH, WoC_p), lambda n, i: (n, i, 0)),
                      pl.BlockSpec((1, WoC_p), lambda n, i: (0, 0)),
                      pl.BlockSpec((1, WoC_p), lambda n, i: (0, 0))],
            out_specs=pl.BlockSpec((None, TH, WoC_p), lambda n, i: (n, i, 0))),
        compiler_params=pltpu.CompilerParams(
            dimension_semantics=("parallel", "parallel"),
            vmem_limit_bytes=vmem_limit),
    )
    y = bn(v1, scale_row, shift_row)

    # Crop the de-tiled NHWC slab and return NCHW f32 (one remaining XLA pass).
    # TODO(synk): folding the NHWC->NCHW transpose into the BN kernel (channel-
    # major lane-dense output blocks) would remove this last pass; not done here.
    y = y.reshape(N, Ho_p, Wo_p, C_OUT)[:, :Ho, :Wo, :].astype(jnp.float32)
    return y.transpose(0, 3, 1, 2)


if __name__ == "__main__":
    key = jax.random.PRNGKey(0)
    k1, k2, k3 = jax.random.split(key, 3)

    # small shapes consistent with the module (original spec input is (1,1,512,512));
    # W != H exercises both the row and column tile-padding paths.
    N, H, W = 2, 16, 20
    x = jax.random.normal(k1, (N, 1, H, W), jnp.float32)

    # deterministic parameter init (PyTorch-style uniform bounds); BN affine = defaults
    bound = 1.0 / float(np.sqrt(K * K))
    w = jax.random.uniform(k2, (1, C_OUT, K, K), jnp.float32, -bound, bound)
    b = jax.random.uniform(k3, (C_OUT,), jnp.float32, -bound, bound)
    gamma = jnp.ones((C_OUT,), jnp.float32)
    beta = jnp.zeros((C_OUT,), jnp.float32)

    fn = jax.jit(conv_transpose_bn_sigmoid)
    y = jax.block_until_ready(fn(x, w, b, gamma, beta))

    # ---- float64 numpy reference: ConvTranspose2d -> BN(training) -> sigmoid ----
    Ho, Wo = H + K - 1, W + K - 1
    xn = np.asarray(x, np.float64)[:, 0]
    xpad = np.pad(xn, ((0, 0), (K - 1, K - 1), (K - 1, K - 1)))
    wfl = np.asarray(w, np.float64)[0][:, ::-1, ::-1]            # (C, K, K) flipped
    ref = np.zeros((N, Ho, Wo, C_OUT))
    for a in range(K):
        for bb in range(K):
            ref += xpad[:, a:a + Ho, bb:bb + Wo, None] * wfl[:, a, bb][None, None, None, :]
    ref += np.asarray(b, np.float64)[None, None, None, :]
    mean = ref.mean(axis=(0, 1, 2))
    var = ref.var(axis=(0, 1, 2))
    ref_out = 1.0 / (1.0 + np.exp(-((ref - mean) / np.sqrt(var + EPS))))
    ref_out = np.transpose(ref_out, (0, 3, 1, 2))

    assert y.shape == (N, C_OUT, Ho, Wo)
    np.testing.assert_allclose(np.asarray(y), ref_out, atol=2e-2, rtol=0)
    print("KERNEL_OK")
</pallas_src>

<mosaic_0001>
module attributes {stable_mosaic.version = 11 : i64} {
  func.func @_conv_kernel(%arg0: i32, %arg1: i32, %arg2: i32, %arg3: memref<1x1x1x42x128xbf16, #tpu.memory_space<vmem>>, %arg4: memref<1408x768xbf16, #tpu.memory_space<vmem>>, %arg5: memref<1x768xf32, #tpu.memory_space<vmem>>, %arg6: memref<1x32x768xbf16, #tpu.memory_space<vmem>>, %arg7: memref<1x1x1x1x768xf32, #tpu.memory_space<vmem>>, %arg8: memref<1x1x1x1x768xf32, #tpu.memory_space<vmem>>, %arg9: memref<32x1408xbf16, #tpu.memory_space<vmem>>) attributes {dimension_semantics = [#tpu.dimension_semantics<parallel>, #tpu.dimension_semantics<parallel>, #tpu.dimension_semantics<parallel>], iteration_bounds = array<i64: 2, 1, 1>, scalar_prefetch = 0 : i64, scratch_operands = 1 : i64, tpu.core_type = #tpu.core_type<tc>, window_params = [{transform_indices = @transform_0, window_bounds = array<i64: 1, 1, 1, 42, 128>}, {pipeline_mode = #tpu.pipeline_mode<synchronous>, transform_indices = @transform_1, window_bounds = array<i64: 1408, 768>}, {pipeline_mode = #tpu.pipeline_mode<synchronous>, transform_indices = @transform_2, window_bounds = array<i64: 1, 768>}, {transform_indices = @transform_3, window_bounds = array<i64: 1, 32, 768>}, {transform_indices = @transform_4, window_bounds = array<i64: 1, 1, 1, 1, 768>}, {transform_indices = @transform_5, window_bounds = array<i64: 1, 1, 1, 1, 768>}]} {
    %c0 = arith.constant 0 : index
    %c0_0 = arith.constant 0 : index
    %c0_1 = arith.constant 0 : index
    %c0_2 = arith.constant 0 : index
    %c0_3 = arith.constant 0 : index
    %0 = vector.load %arg3[%c0, %c0_0, %c0_1, %c0_2, %c0_3] : memref<1x1x1x42x128xbf16, #tpu.memory_space<vmem>>, vector<1x1x1x42x128xbf16>
    %1 = vector.shape_cast %0 : vector<1x1x1x42x128xbf16> to vector<42x128xbf16>
    %2 = vector.extract_strided_slice %1 {offsets = [0, 0], sizes = [32, 128], strides = [1, 1]} : vector<42x128xbf16> to vector<32x128xbf16>
    %c0_4 = arith.constant 0 : index
    %c0_5 = arith.constant 0 : index
    %3 = vector.load %arg9[%c0_4, %c0_5] : memref<32x1408xbf16, #tpu.memory_space<vmem>>, vector<32x128xbf16>
    tpu.vector_store %arg9[%c0_4, %c0_5], %2 {strides = array<i32>} : memref<32x1408xbf16, #tpu.memory_space<vmem>>, vector<32x128xbf16>,
    %4 = vector.extract_strided_slice %1 {offsets = [1, 0], sizes = [32, 128], strides = [1, 1]} : vector<42x128xbf16> to vector<32x128xbf16>
    %c0_6 = arith.constant 0 : index
    %c128 = arith.constant 128 : index
    %5 = vector.load %arg9[%c0_6, %c128] : memref<32x1408xbf16, #tpu.memory_space<vmem>>, vector<32x128xbf16>
    tpu.vector_store %arg9[%c0_6, %c128], %4 {strides = array<i32>} : memref<32x1408xbf16, #tpu.memory_space<vmem>>, vector<32x128xbf16>,
    %6 = vector.extract_strided_slice %1 {offsets = [2, 0], sizes = [32, 128], strides = [1, 1]} : vector<42x128xbf16> to vector<32x128xbf16>
    %c0_7 = arith.constant 0 : index
    %c256 = arith.constant 256 : index
    %7 = vector.load %arg9[%c0_7, %c256] : memref<32x1408xbf16, #tpu.memory_space<vmem>>, vector<32x128xbf16>
    tpu.vector_store %arg9[%c0_7, %c256], %6 {strides = array<i32>} : memref<32x1408xbf16, #tpu.memory_space<vmem>>, vector<32x128xbf16>,
    %8 = vector.extract_strided_slice %1 {offsets = [3, 0], sizes = [32, 128], strides = [1, 1]} : vector<42x128xbf16> to vector<32x128xbf16>
    %c0_8 = arith.constant 0 : index
    %c384 = arith.constant 384 : index
    %9 = vector.load %arg9[%c0_8, %c384] : memref<32x1408xbf16, #tpu.memory_space<vmem>>, vector<32x128xbf16>
    tpu.vector_store %arg9[%c0_8, %c384], %8 {strides = array<i32>} : memref<32x1408xbf16, #tpu.memory_space<vmem>>, vector<32x128xbf16>,
    %10 = vector.extract_strided_slice %1 {offsets = [4, 0], sizes = [32, 128], strides = [1, 1]} : vector<42x128xbf16> to vector<32x128xbf16>
    %c0_9 = arith.constant 0 : index
    %c512 = arith.constant 512 : index
    %11 = vector.load %arg9[%c0_9, %c512] : memref<32x1408xbf16, #tpu.memory_space<vmem>>, vector<32x128xbf16>
    tpu.vector_store %arg9[%c0_9, %c512], %10 {strides = array<i32>} : memref<32x1408xbf16, #tpu.memory_space<vmem>>, vector<32x128xbf16>,
    %12 = vector.extract_strided_slice %1 {offsets = [5, 0], sizes = [32, 128], strides = [1, 1]} : vector<42x128xbf16> to vector<32x128xbf16>
    %c0_10 = arith.constant 0 : index
    %c640 = arith.constant 640 : index
    %13 = vector.load %arg9[%c0_10, %c640] : memref<32x1408xbf16, #tpu.memory_space<vmem>>, vector<32x128xbf16>
    tpu.vector_store %arg9[%c0_10, %c640], %12 {strides = array<i32>} : memref<32x1408xbf16, #tpu.memory_space<vmem>>, vector<32x128xbf16>,
    %14 = vector.extract_strided_slice %1 {offsets = [6, 0], sizes = [32, 128], strides = [1, 1]} : vector<42x128xbf16> to vector<32x128xbf16>
    %c0_11 = arith.constant 0 : index
    %c768 = arith.constant 768 : index
    %15 = vector.load %arg9[%c0_11, %c768] : memref<32x1408xbf16, #tpu.memory_space<vmem>>, vector<32x128xbf16>
    tpu.vector_store %arg9[%c0_11, %c768], %14 {strides = array<i32>} : memref<32x1408xbf16, #tpu.memory_space<vmem>>, vector<32x128xbf16>,
    %16 = vector.extract_strided_slice %1 {offsets = [7, 0], sizes = [32, 128], strides = [1, 1]} : vector<42x128xbf16> to vector<32x128xbf16>
    %c0_12 = arith.constant 0 : index
    %c896 = arith.constant 896 : index
    %17 = vector.load %arg9[%c0_12, %c896] : memref<32x1408xbf16, #tpu.memory_space<vmem>>, vector<32x128xbf16>
    tpu.vector_store %arg9[%c0_12, %c896], %16 {strides = array<i32>} : memref<32x1408xbf16, #tpu.memory_space<vmem>>, vector<32x128xbf16>,
    %18 = vector.extract_strided_slice %1 {offsets = [8, 0], sizes = [32, 128], strides = [1, 1]} : vector<42x128xbf16> to vector<32x128xbf16>
    %c0_13 = arith.constant 0 : index
    %c1024 = arith.constant 1024 : index
    %19 = vector.load %arg9[%c0_13, %c1024] : memref<32x1408xbf16, #tpu.memory_space<vmem>>, vector<32x128xbf16>
    tpu.vector_store %arg9[%c0_13, %c1024], %18 {strides = array<i32>} : memref<32x1408xbf16, #tpu.memory_space<vmem>>, vector<32x128xbf16>,
    %20 = vector.extract_strided_slice %1 {offsets = [9, 0], sizes = [32, 128], strides = [1, 1]} : vector<42x128xbf16> to vector<32x128xbf16>
    %c0_14 = arith.constant 0 : index
    %c1152 = arith.constant 1152 : index
    %21 = vector.load %arg9[%c0_14, %c1152] : memref<32x1408xbf16, #tpu.memory_space<vmem>>, vector<32x128xbf16>
    tpu.vector_store %arg9[%c0_14, %c1152], %20 {strides = array<i32>} : memref<32x1408xbf16, #tpu.memory_space<vmem>>, vector<32x128xbf16>,
    %22 = vector.extract_strided_slice %1 {offsets = [10, 0], sizes = [32, 128], strides = [1, 1]} : vector<42x128xbf16> to vector<32x128xbf16>
    %c0_15 = arith.constant 0 : index
    %c1280 = arith.constant 1280 : index
    %23 = vector.load %arg9[%c0_15, %c1280] : memref<32x1408xbf16, #tpu.memory_space<vmem>>, vector<32x128xbf16>
    tpu.vector_store %arg9[%c0_15, %c1280], %22 {strides = array<i32>} : memref<32x1408xbf16, #tpu.memory_space<vmem>>, vector<32x128xbf16>,
    %c0_16 = arith.constant 0 : index
    %c0_17 = arith.constant 0 : index
    %24 = vector.load %arg9[%c0_16, %c0_17] : memref<32x1408xbf16, #tpu.memory_space<vmem>>, vector<32x1408xbf16>
    %c0_18 = arith.constant 0 : index
    %c0_19 = arith.constant 0 : index
    %25 = vector.load %arg4[%c0_18, %c0_19] : memref<1408x768xbf16, #tpu.memory_space<vmem>>, vector<1408x768xbf16>
    %cst = arith.constant dense<0.000000e+00> : vector<32x768xf32>
    %26 = tpu.matmul %24, %25, %cst {dimension_numbers = #tpu.dot_dimension_numbers<[1], [0], [0], [1], [0, 0, 1, 1], [], []>} : vector<32x1408xbf16>, vector<1408x768xbf16>, vector<32x768xf32> -> vector<32x768xf32>
    %c0_20 = arith.constant 0 : index
    %c0_21 = arith.constant 0 : index
    %27 = vector.load %arg5[%c0_20, %c0_21] : memref<1x768xf32, #tpu.memory_space<vmem>>, vector<1x768xf32>
    %28 = vector.broadcast %27 : vector<1x768xf32> to vector<32x768xf32>
    %29 = arith.addf %26, %28 : vector<32x768xf32>
    %30 = arith.truncf %29 : vector<32x768xf32> to vector<32x768xbf16>
    %c0_22 = arith.constant 0 : index
    %c0_23 = arith.constant 0 : index
    %c0_24 = arith.constant 0 : index
    %31 = vector.load %arg6[%c0_22, %c0_23, %c0_24] : memref<1x32x768xbf16, #tpu.memory_space<vmem>>, vector<1x32x768xbf16>
    %32 = vector.shape_cast %31 : vector<1x32x768xbf16> to vector<32x768xbf16>
    %33 = vector.shape_cast %30 : vector<32x768xbf16> to vector<1x32x768xbf16>
    tpu.vector_store %arg6[%c0_22, %c0_23, %c0_24], %33 {strides = array<i32>} : memref<1x32x768xbf16, #tpu.memory_space<vmem>>, vector<1x32x768xbf16>,
    %cst_25 = arith.constant dense<0.000000e+00> : vector<768xf32>
    %34 = vector.multi_reduction <add>, %26, %cst_25 [0] : vector<32x768xf32> to vector<768xf32>
    %35 = vector.shape_cast %34 : vector<768xf32> to vector<1x768xf32>
    %c0_26 = arith.constant 0 : index
    %c0_27 = arith.constant 0 : index
    %c0_28 = arith.constant 0 : index
    %c0_29 = arith.constant 0 : index
    %c0_30 = arith.constant 0 : index
    %36 = vector.load %arg7[%c0_26, %c0_27, %c0_28, %c0_29, %c0_30] : memref<1x1x1x1x768xf32, #tpu.memory_space<vmem>>, vector<1x1x1x1x768xf32>
    %37 = vector.shape_cast %36 : vector<1x1x1x1x768xf32> to vector<1x768xf32>
    %38 = vector.shape_cast %35 : vector<1x768xf32> to vector<1x1x1x1x768xf32>
    tpu.vector_store %arg7[%c0_26, %c0_27, %c0_28, %c0_29, %c0_30], %38 {strides = array<i32>} : memref<1x1x1x1x768xf32, #tpu.memory_space<vmem>>, vector<1x1x1x1x768xf32>,
    %39 = arith.mulf %26, %26 : vector<32x768xf32>
    %cst_31 = arith.constant dense<0.000000e+00> : vector<768xf32>
    %40 = vector.multi_reduction <add>, %39, %cst_31 [0] : vector<32x768xf32> to vector<768xf32>
    %41 = vector.shape_cast %40 : vector<768xf32> to vector<1x768xf32>
    %c0_32 = arith.constant 0 : index
    %c0_33 = arith.constant 0 : index
    %c0_34 = arith.constant 0 : index
    %c0_35 = arith.constant 0 : index
    %c0_36 = arith.constant 0 : index
    %42 = vector.load %arg8[%c0_32, %c0_33, %c0_34, %c0_35, %c0_36] : memref<1x1x1x1x768xf32, #tpu.memory_space<vmem>>, vector<1x1x1x1x768xf32>
    %43 = vector.shape_cast %42 : vector<1x1x1x1x768xf32> to vector<1x768xf32>
    %44 = vector.shape_cast %41 : vector<1x768xf32> to vector<1x1x1x1x768xf32>
    tpu.vector_store %arg8[%c0_32, %c0_33, %c0_34, %c0_35, %c0_36], %44 {strides = array<i32>} : memref<1x1x1x1x768xf32, #tpu.memory_space<vmem>>, vector<1x1x1x1x768xf32>,
    return
  }
  func.func @transform_0(%arg0: i32, %arg1: i32, %arg2: i32) -> (i32, i32, i32, i32, i32) {
    %c0_i32 = arith.constant 0 : i32
    %c0_i32_0 = arith.constant 0 : i32
    %c0_i32_1 = arith.constant 0 : i32
    return %arg0, %arg1, %arg2, %c0_i32, %c0_i32_0 : i32, i32, i32, i32, i32
  }
  func.func @transform_1(%arg0: i32, %arg1: i32, %arg2: i32) -> (i32, i32) {
    %c0_i32 = arith.constant 0 : i32
    %c0_i32_0 = arith.constant 0 : i32
    %c0_i32_1 = arith.constant 0 : i32
    return %c0_i32, %c0_i32_0 : i32, i32
  }
  func.func @transform_2(%arg0: i32, %arg1: i32, %arg2: i32) -> (i32, i32) {
    %c0_i32 = arith.constant 0 : i32
    %c0_i32_0 = arith.constant 0 : i32
    %c0_i32_1 = arith.constant 0 : i32
    return %c0_i32, %c0_i32_0 : i32, i32
  }
  func.func @transform_3(%arg0: i32, %arg1: i32, %arg2: i32) -> (i32, i32, i32) {
    %c0_i32 = arith.constant 0 : i32
    return %arg0, %arg1, %arg2 : i32, i32, i32
  }
  func.func @transform_4(%arg0: i32, %arg1: i32, %arg2: i32) -> (i32, i32, i32, i32, i32) {
    %c0_i32 = arith.constant 0 : i32
    %c0_i32_0 = arith.constant 0 : i32
    %c0_i32_1 = arith.constant 0 : i32
    return %arg0, %arg1, %arg2, %c0_i32, %c0_i32_0 : i32, i32, i32, i32, i32
  }
  func.func @transform_5(%arg0: i32, %arg1: i32, %arg2: i32) -> (i32, i32, i32, i32, i32) {
    %c0_i32 = arith.constant 0 : i32
    %c0_i32_0 = arith.constant 0 : i32
    %c0_i32_1 = arith.constant 0 : i32
    return %arg0, %arg1, %arg2, %c0_i32, %c0_i32_0 : i32, i32, i32, i32, i32
  }
}

module attributes {stable_mosaic.version = 11 : i64} {
  func.func @_bn_sigmoid_kernel(%arg0: i32, %arg1: i32, %arg2: memref<1x32x768xbf16, #tpu.memory_space<vmem>>, %arg3: memref<1x768xf32, #tpu.memory_space<vmem>>, %arg4: memref<1x768xf32, #tpu.memory_space<vmem>>, %arg5: memref<1x32x768xbf16, #tpu.memory_space<vmem>>) attributes {dimension_semantics = [#tpu.dimension_semantics<parallel>, #tpu.dimension_semantics<parallel>], iteration_bounds = array<i64: 2, 1>, scalar_prefetch = 0 : i64, scratch_operands = 0 : i64, tpu.core_type = #tpu.core_type<tc>, window_params = [{transform_indices = @transform_0, window_bounds = array<i64: 1, 32, 768>}, {pipeline_mode = #tpu.pipeline_mode<synchronous>, transform_indices = @transform_1, window_bounds = array<i64: 1, 768>}, {pipeline_mode = #tpu.pipeline_mode<synchronous>, transform_indices = @transform_2, window_bounds = array<i64: 1, 768>}, {transform_indices = @transform_3, window_bounds = array<i64: 1, 32, 768>}]} {
    %c0 = arith.constant 0 : index
    %c0_0 = arith.constant 0 : index
    %c0_1 = arith.constant 0 : index
    %0 = vector.load %arg2[%c0, %c0_0, %c0_1] : memref<1x32x768xbf16, #tpu.memory_space<vmem>>, vector<1x32x768xbf16>
    %1 = vector.shape_cast %0 : vector<1x32x768xbf16> to vector<32x768xbf16>
    %2 = arith.extf %1 : vector<32x768xbf16> to vector<32x768xf32>
    %c0_2 = arith.constant 0 : index
    %c0_3 = arith.constant 0 : index
    %3 = vector.load %arg3[%c0_2, %c0_3] : memref<1x768xf32, #tpu.memory_space<vmem>>, vector<1x768xf32>
    %4 = vector.broadcast %3 : vector<1x768xf32> to vector<32x768xf32>
    %5 = arith.mulf %2, %4 : vector<32x768xf32>
    %c0_4 = arith.constant 0 : index
    %c0_5 = arith.constant 0 : index
    %6 = vector.load %arg4[%c0_4, %c0_5] : memref<1x768xf32, #tpu.memory_space<vmem>>, vector<1x768xf32>
    %7 = vector.broadcast %6 : vector<1x768xf32> to vector<32x768xf32>
    %8 = arith.addf %5, %7 : vector<32x768xf32>
    %cst = arith.constant 0.000000e+00 : f32
    %9 = vector.broadcast %cst : f32 to vector<32x768xf32>
    %10 = arith.subf %9, %8 : vector<32x768xf32>
    %11 = math.exp %10 : vector<32x768xf32>
    %cst_6 = arith.constant 1.000000e+00 : f32
    %12 = vector.broadcast %cst_6 : f32 to vector<32x768xf32>
    %13 = arith.addf %12, %11 : vector<32x768xf32>
    %cst_7 = arith.constant 1.000000e+00 : f32
    %14 = vector.broadcast %cst_7 : f32 to vector<32x768xf32>
    %15 = arith.divf %14, %13 : vector<32x768xf32>
    %16 = arith.truncf %15 : vector<32x768xf32> to vector<32x768xbf16>
    %c0_8 = arith.constant 0 : index
    %c0_9 = arith.constant 0 : index
    %c0_10 = arith.constant 0 : index
    %17 = vector.load %arg5[%c0_8, %c0_9, %c0_10] : memref<1x32x768xbf16, #tpu.memory_space<vmem>>, vector<1x32x768xbf16>
    %18 = vector.shape_cast %17 : vector<1x32x768xbf16> to vector<32x768xbf16>
    %19 = vector.shape_cast %16 : vector<32x768xbf16> to vector<1x32x768xbf16>
    tpu.vector_store %arg5[%c0_8, %c0_9, %c0_10], %19 {strides = array<i32>} : memref<1x32x768xbf16, #tpu.memory_space<vmem>>, vector<1x32x768xbf16>,
    return
  }
  func.func @transform_0(%arg0: i32, %arg1: i32) -> (i32, i32, i32) {
    %c0_i32 = arith.constant 0 : i32
    %c0_i32_0 = arith.constant 0 : i32
    return %arg0, %arg1, %c0_i32 : i32, i32, i32
  }
  func.func @transform_1(%arg0: i32, %arg1: i32) -> (i32, i32) {
    %c0_i32 = arith.constant 0 : i32
    %c0_i32_0 = arith.constant 0 : i32
    %c0_i32_1 = arith.constant 0 : i32
    return %c0_i32, %c0_i32_0 : i32, i32
  }
  func.func @transform_2(%arg0: i32, %arg1: i32) -> (i32, i32) {
    %c0_i32 = arith.constant 0 : i32
    %c0_i32_0 = arith.constant 0 : i32
    %c0_i32_1 = arith.constant 0 : i32
    return %c0_i32, %c0_i32_0 : i32, i32
  }
  func.func @transform_3(%arg0: i32, %arg1: i32) -> (i32, i32, i32) {
    %c0_i32 = arith.constant 0 : i32
    %c0_i32_0 = arith.constant 0 : i32
    return %arg0, %arg1, %c0_i32 : i32, i32, i32
  }
}

</mosaic_0001>

<bundles_post_ra>
// kernel: tile.18
= control target key start
LH: loop header
LB: loop body
LE: loop exit
PB: predicated region body
PF: predicated region fallthrough
CT: control target
= control target key end

     0   :  { %s40_s0 = inlined_call_operand.vmem [shape: f32[24], index: 0, kind: input, shape index: {}]   ;;  %s41_s1 = inlined_call_operand.vmem [shape: f32[32,24], index: 1, kind: output, shape index: {}]  }
   0x1   :  { %v4_v0 = vld [vmem:[%s40_s0] ss:$0 sm:$0xff] }
   0x2   :  { %5 = vst [vmem:[%s41_s1] sm:$0xff] %v4_v0  ;;  %12 = vst [vmem:[%s41_s1 + $0x8] sm:$0xff] %v4_v0 }
   0x3   :  { %13 = vst [vmem:[%s41_s1 + $0x10] sm:$0xff] %v4_v0  ;;  %14 = vst [vmem:[%s41_s1 + $0x18] sm:$0xff] %v4_v0 }

// kernel: tile.19
= control target key start
LH: loop header
LB: loop body
LE: loop exit
PB: predicated region body
PF: predicated region fallthrough
CT: control target
= control target key end

     0   :  { %s7_s6 = smov 3  ;;  %s10_s7 = smov 3  ;;  %vm12_vm0 = vcmask 64512   ;;  %vm16_vm1 = vcmask 130048   ;;  %vm4_vm2 = vcmask 195584   ;;  %vm19_vm3 = vcmask 1048512   ;;  %s321_s0 = inlined_call_operand.vmem [shape: f32[32,24], index: 0, kind: input, shape index: {}]   ;;  %s322_s1 = inlined_call_operand.vmem [shape: f32[1,768], index: 1, kind: output, shape index: {}]  }
   0x1   :  { %v183_v0 = vld [vmem:[%s321_s0 + $0x15] ss:$-16 sm:%s7_s6]   ;;  %s38_s12 = smov 3  ;;  %s22_s15 = smov 3  ;;  %vm34_vm4 = vcmask 1048448   ;;  %vm50_vm5 = vcmask 982784  }
   0x2   :  { %v184_v1 = vld [vmem:[%s321_s0 + $0x5] ss:$16 sm:%s10_s7]   ;;  %v187_v3 = vld [vmem:[%s321_s0 + $0x1f] ss:$-16 sm:%s38_s12]   ;;  %s220_s16 = smov 120   ;;  %s221_s17 = smov 104  }
   0x3   :  { %v13_v2 = vsel %vm12_vm0, %v184_v1, %v183_v0  ;;  %40 = vrot.lane.b32.xlu1 %v187_v3, %s221_s17  ;;  %v185_v4 = vld [vmem:[%s321_s0 + $0x1a] ss:$-16 sm:%s22_s15]   ;;  %s25_s20 = smov 3  ;;  %s46_s23 = smov 3  ;;  %vm42_vm6 = vcmask 1048384   ;;  %vm57_vm7 = vcmask 917184  }
   0x4   :  { %14 = vrot.lane.b32.xlu0 %v13_v2, %s220_s16  ;;  %v186_v5 = vld [vmem:[%s321_s0 + $0x1a] ss:$-16 sm:%s25_s20]   ;;  %s53_s26 = smov 3  ;;  %s61_s27 = smov 3  ;;  %vm65_vm8 = vcmask 851584   ;;  %vm73_vm9 = vcmask 785984  }
   0x5   :  { %v28_v6 = vsel %vm16_vm1, %v186_v5, %v185_v4  ;;  %v188_v7 = vld [vmem:[%s321_s0 + $0x4] ss:$16 sm:%s46_s23]   ;;  %s222_s28 = smov 112   ;;  %s223_s29 = smov 96   ;;  %v189_v8 = vld [vmem:[%s321_s0 + $0x19] ss:$-16 sm:%s53_s26]  }
   0x6   :  { %v190_v9 = vld [vmem:[%s321_s0 + $0x1e] ss:$-16 sm:%s61_s27]   ;;  %s69_s5 = smov 3  ;;  %s76_s6 = smov 3  ;;  %vm80_vm10 = vcmask 720384   ;;  %vm88_vm11 = vcmask 654784  }
   0x7   :  { %48 = vrot.lane.b32.xlu1 %v188_v7, %s223_s29  ;;  %s224_s7 = smov 88   ;;  %s225_s8 = smov 80   ;;  %v191_v10 = vld [vmem:[%s321_s0 + $0x3] ss:$16 sm:%s69_s5]   ;;  %vm96_vm12 = vcmask 589184   ;;  %vm103_vm13 = vcmask 523584  }
   0x8   :  { %29 = vrot.lane.b32.xlu0 %v28_v6, %s222_s28  ;;  %v192_v11 = vld [vmem:[%s321_s0 + $0x18] ss:$-16 sm:%s76_s6]   ;;  %s84_s13 = smov 3  ;;  %s92_s14 = smov 3  ;;  %vm111_vm14 = vcmask 457984   ;;  %vm119_vm15 = vcmask 392384  }
   0x9   :  { %s226_s15 = smov 72   ;;  %s227_s16 = smov 64   ;;  %v193_v12 = vld [vmem:[%s321_s0 + $0x1d] ss:$-16 sm:%s84_s13]   ;;  %v194_v13 = vld [vmem:[%s321_s0 + $0x2] ss:$16 sm:%s92_s14]  }
   0xa   :  { %s2_s21 = smov 3  ;;  %s99_s22 = smov 3 }
   0xb   :  { %63 = vrot.lane.b32.xlu1 %v190_v9, %s225_s8  ;;  %s107_s23 = smov 3  ;;  %v3_v14 = vld [vmem:[%s321_s0] ss:$16 sm:%s2_s21]   ;;  %s228_s26 = smov 56  }
   0xc   :  { %55 = vrot.lane.b32.xlu0 %v189_v8, %s224_s7  ;;  %5 = vst.msk [vmem:[#allocation0] ss:$24 sm:$0x3] %vm4_vm2, %v3_v14   ;;  %s229_s27 = smov 48   ;;  %v195_v15 = vld [vmem:[%s321_s0 + $0x17] ss:$-16 sm:%s99_s22]  }
   0xd   :  { %v196_v16 = vld [vmem:[%s321_s0 + $0x1c] ss:$-16 sm:%s107_s23]   ;;  %s115_s3 = smov 3  ;;  %s122_s4 = smov 3 }
   0xe   :  { %s230_s5 = smov 40   ;;  %s231_s6 = smov 32   ;;  %v197_v17 = vld [vmem:[%s321_s0 + $0x1] ss:$16 sm:%s115_s3]   ;;  %v198_v18 = vld [vmem:[%s321_s0 + $0x16] ss:$-16 sm:%s122_s4]  }
   0xf   :  { %78 = vrot.lane.b32.xlu1 %v192_v11, %s227_s16  ;;  %s130_s11 = smov 3  ;;  %s232_s12 = smov 24  }
  0x10   :  { %71 = vrot.lane.b32.xlu0 %v191_v10, %s226_s15  ;;  %s233_s13 = smov 16   ;;  %v199_v19 = vld [vmem:[%s321_s0 + $0x1b] ss:$-16 sm:%s130_s11]   ;;  %s234_s0 = smov 8  }
  0x13   :  { %94 = vrot.lane.b32.xlu1 %v194_v13, %s229_s27 }
  0x14   :  { %86 = vrot.lane.b32.xlu0 %v193_v12, %s228_s26 }
  0x17   :  { %109 = vrot.lane.b32.xlu1 %v196_v16, %s231_s6 }
  0x18   :  { %101 = vrot.lane.b32.xlu0 %v195_v15, %s230_s5 }
  0x1b   :  { %124 = vrot.lane.b32.xlu1 %v198_v18, %s233_s13 }
  0x1c   :  { %117 = vrot.lane.b32.xlu0 %v197_v17, %s232_s12 }
  0x20   :  { %132 = vrot.lane.b32.xlu0 %v199_v19, %s234_s0 }
  0x75   :  { %v41_v21 = vpop.permute.xlu1 %40  }
  0x76   :  { %v15_v20 = vpop.permute.xlu0 %14  }
  0x77   :  { %18 = vst.msk [vmem:[#allocation0 + $0x20] ss:$-24 sm:$0x3] %vm16_vm1, %v15_v20   ;;  %vm134_vm1 = vcmask 261184  }
  0x78   :  { %20 = vst.msk [vmem:[#allocation0] ss:$24 sm:$0x3] %vm19_vm3, %v15_v20  }
  0x79   :  { %v49_v23 = vpop.permute.xlu1 %48  }
  0x7a   :  { %v30_v22 = vpop.permute.xlu0 %29   ;;  %51 = vst.msk [vmem:[#allocation0] ss:$24 sm:$0x3] %vm50_vm5, %v49_v23  }
  0x7b   :  { %33 = vst.msk [vmem:[#allocation0 + $0x28] ss:$-24 sm:$0x3] %vm12_vm0, %v30_v22   ;;  %vm126_vm0 = vcmask 326784  }
  0x7c   :  { %36 = vst.msk [vmem:[#allocation0 + $0x20] ss:$-24 sm:$0x3] %vm34_vm4, %v30_v22  }
  0x7d   :  { %44 = vst.msk [vmem:[#allocation0 + $0x28] ss:$-24 sm:$0x3] %vm42_vm6, %v41_v21   ;;  %v64_v25 = vpop.permute.xlu1 %63  }
  0x7e   :  { %v56_v24 = vpop.permute.xlu0 %55   ;;  %67 = vst.msk [vmem:[#allocation0 + $0x28] ss:$-24 sm:$0x3] %vm65_vm8, %v64_v25  }
  0x7f   :  { %59 = vst.msk [vmem:[#allocation0 + $0x20] ss:$-24 sm:$0x3] %vm57_vm7, %v56_v24  }
  0x81   :  { %v79_v27 = vpop.permute.xlu1 %78  }
  0x82   :  { %v72_v26 = vpop.permute.xlu0 %71   ;;  %82 = vst.msk [vmem:[#allocation0 + $0x20] ss:$-24 sm:$0x3] %vm80_vm10, %v79_v27  }
  0x83   :  { %74 = vst.msk [vmem:[#allocation0] ss:$24 sm:$0x3] %vm73_vm9, %v72_v26  }
  0x85   :  { %v95_v29 = vpop.permute.xlu1 %94  }
  0x86   :  { %v87_v28 = vpop.permute.xlu0 %86   ;;  %97 = vst.msk [vmem:[#allocation0] ss:$24 sm:$0x3] %vm96_vm12, %v95_v29  }
  0x87   :  { %90 = vst.msk [vmem:[#allocation0 + $0x28] ss:$-24 sm:$0x3] %vm88_vm11, %v87_v28  }
  0x89   :  { %v110_v31 = vpop.permute.xlu1 %109  }
  0x8a   :  { %v102_v30 = vpop.permute.xlu0 %101   ;;  %113 = vst.msk [vmem:[#allocation0 + $0x28] ss:$-24 sm:$0x3] %vm111_vm14, %v110_v31  }
  0x8b   :  { %105 = vst.msk [vmem:[#allocation0 + $0x20] ss:$-24 sm:$0x3] %vm103_vm13, %v102_v30  }
  0x8d   :  { %v125_v33 = vpop.permute.xlu1 %124  }
  0x8e   :  { %v118_v32 = vpop.permute.xlu0 %117   ;;  %128 = vst.msk [vmem:[#allocation0 + $0x20] ss:$-24 sm:$0x3] %vm126_vm0, %v125_v33  }
  0x8f   :  { %120 = vst.msk [vmem:[#allocation0] ss:$24 sm:$0x3] %vm119_vm15, %v118_v32  }
  0x92   :  { %v133_v34 = vpop.permute.xlu0 %132  }
  0x93   :  { %136 = vst.msk [vmem:[#allocation0 + $0x28] ss:$-24 sm:$0x3] %vm134_vm1, %v133_v34  }
  0x95   :  { %v146_v37 = vld [vmem:[#allocation0 + $0x8] sm:$0x1]  ;;  %v166_v38 = vld [vmem:[#allocation0 + $0x20] sm:$0x1] }
  0x96   :  { %v141_v35 = vld [vmem:[#allocation0] sm:$0x1]  ;;  %v159_v36 = vld [vmem:[#allocation0 + $0x18] sm:$0x1]  ;;  %200 = vst [vmem:[%s322_s1 + $0x1] sm:$0x1] %v146_v37 }
  0x97   :  { %144 = vst [vmem:[%s322_s1] sm:$0x1] %v141_v35  ;;  %202 = vst [vmem:[%s322_s1 + $0x3] sm:$0x1] %v159_v36 }
  0x98   :  { %203 = vst [vmem:[%s322_s1 + $0x4] sm:$0x1] %v166_v38 }
  0x9a   :  { %v152_v39 = vld [vmem:[#allocation0 + $0x10] sm:$0x1]  ;;  %v173_v40 = vld [vmem:[#allocation0 + $0x28] sm:$0x1] }
  0x9b   :  { %201 = vst [vmem:[%s322_s1 + $0x2] sm:$0x1] %v152_v39  ;;  %204 = vst [vmem:[%s322_s1 + $0x5] sm:$0x1] %v173_v40 }

// kernel: conv_transpose_bn_sigmoid.3
= control target key start
LH: loop header
LB: loop body
LE: loop exit
PB: predicated region body
PF: predicated region fallthrough
CT: control target
= control target key end

     0   :  { %s885_s12 = smov 0   ;;  %s887_s13 = smov 0   ;;  %s1031_s0 = inlined_call_operand.vmem [shape: bf16[2,32,768], index: 0, kind: input, shape index: {}]   ;;  %s1032_s1 = inlined_call_operand.vmem [shape: f32[1,768], index: 1, kind: input, shape index: {}]   ;;  %s1033_s2 = inlined_call_operand.vmem [shape: f32[1,768], index: 2, kind: input, shape index: {}]   ;;  %s1034_s3 = inlined_call_operand.vmem [shape: bf16[2,32,768], index: 3, kind: output, shape index: {}]  }
   0x1   :  { %s889_s14 = smov 0  }
   0x2 LB: > { %s25_s15 = sadd.s32 1, %s859_s13  ;;  %p691_p0 = scmp.ge.s32.totalorder %s863_s14, 1  ;;  %s863_s14 = sphi %s889_s14, %s13_s14   ;;  %s859_s13 = sphi %s887_s13, %s1036_s13   ;;  %s855_s12 = sphi %s885_s12, %s1035_s12  }
   0x3   : > { %p27_p1 = scmp.ge.s32.totalorder %s25_s15, 2  ;;  %p159_p2 = scmp.lt.s32.totalorder %s863_s14, 3 }
   0x5   : > { %s1038_s15 = smov (%p27_p1, %s25_s15), 0  ;;  %p160_p3 = pnand %p691_p0, %p159_p2 }
   0x6   : > { %p194_p4 = scmp.lt.s32.totalorder (!%p160_p3), %s855_s12, 1 }
   0x7   : > { %163 = sbr.rel (%p160_p3) target bundleno = 102 (0x66), region = 32 }
   0xc   : > { %v253_v0 = vlaneseq  ;;  %s1040_s12 = smov (!%p194_p4, %s855_s12), 1  ;;  %v251_v2 = vld [vmem:[%s1032_s1] sm:$0x3f] }
   0xd   : > { %v307_v3 = vld [vmem:[%s1033_s2] sm:$0x3f]  ;;  %s720_s20 = smul.u32 96, %s1040_s12 }
   0xe   : > { %v254_v1 = vshrl.u32 %v253_v0, 7 }
   0xf   : > { %s917_s23 = scalar_lea.vmem %s1031_s0, %s720_s20  ;;  %s1006_s26 = scalar_lea.vmem %s1034_s3, %s720_s20 }
  0x10   : > { %v255_v4 = vsub.s32 0, %v254_v1  ;;  %v259_v5 = vsub.s32 1, %v254_v1  ;;  %v263_v6 = vsub.s32 2, %v254_v1  ;;  %v267_v7 = vsub.s32 3, %v254_v1  ;;  %v215_v14 = vld [vmem:[%s917_s23] sm:$0xff]  ;;  %v216_v15 = vld [vmem:[%s917_s23 + $0x8] sm:$0xff] }
  0x11   : > { %v271_v8 = vsub.s32 4, %v254_v1  ;;  %v275_v9 = vsub.s32 5, %v254_v1  ;;  %v217_v20 = vld [vmem:[%s917_s23 + $0x10] sm:$0xff]  ;;  %v227_v21 = vunpack.c.l.bf16 %v215_v14  ;;  %v228_v22 = vunpack.c.h.bf16 %v215_v14  ;;  %v218_v33 = vld [vmem:[%s917_s23 + $0x18] sm:$0xff]  ;;  %v219_v46 = vld [vmem:[%s917_s23 + $0x20] sm:$0xff] }
  0x12   : > { %v919_v10 = vrot.slane %v251_v2, %v255_v4  ;;  %v921_v11 = vrot.slane %v251_v2, %v259_v5  ;;  %v923_v12 = vrot.slane %v307_v3, %v255_v4  ;;  %v925_v13 = vrot.slane %v307_v3, %v259_v5  ;;  %v220_v55 = vld [vmem:[%s917_s23 + $0x28] sm:$0xff] }
  0x13   : > { %v929_v16 = vrot.slane %v251_v2, %v263_v6  ;;  %v931_v17 = vrot.slane %v251_v2, %v267_v7  ;;  %v933_v18 = vrot.slane %v307_v3, %v263_v6  ;;  %v935_v19 = vrot.slane %v307_v3, %v267_v7 }
  0x14   : > { %v229_v23 = vunpack.c.l.bf16 %v216_v15  ;;  %v230_v24 = vunpack.c.h.bf16 %v216_v15  ;;  %v231_v25 = vunpack.c.l.bf16 %v217_v20  ;;  %v232_v26 = vunpack.c.h.bf16 %v217_v20 }
  0x15   : > { %v938_v27 = vrot.slane %v251_v2, %v271_v8  ;;  %v940_v28 = vrot.slane %v251_v2, %v275_v9  ;;  %v283_v29 = vmul.f32 %v919_v10, %v227_v21  ;;  %v284_v30 = vmul.f32 %v921_v11, %v228_v22 }
  0x16   : > { %v285_v31 = vmul.f32 %v929_v16, %v229_v23  ;;  %v286_v32 = vmul.f32 %v931_v17, %v230_v24  ;;  %v949_v36 = vrot.slane %v307_v3, %v271_v8  ;;  %v951_v37 = vrot.slane %v307_v3, %v275_v9  ;;  %v221_v9 = vld [vmem:[%s917_s23 + $0x30] sm:$0xff] }
  0x17   : > { %v287_v34 = vmul.f32 %v938_v27, %v231_v25  ;;  %v288_v35 = vmul.f32 %v940_v28, %v232_v26  ;;  %v339_v38 = vadd.f32 %v923_v12, %v283_v29  ;;  %v340_v39 = vadd.f32 %v925_v13, %v284_v30  ;;  %v222_v29 = vld [vmem:[%s917_s23 + $0x38] sm:$0xff] }
  0x18   : > { %v341_v40 = vadd.f32 %v933_v18, %v285_v31  ;;  %v342_v41 = vadd.f32 %v935_v19, %v286_v32  ;;  %v233_v44 = vunpack.c.l.bf16 %v218_v33  ;;  %v234_v45 = vunpack.c.h.bf16 %v218_v33 }
  0x19   : > { %v343_v42 = vadd.f32 %v949_v36, %v287_v34  ;;  %v344_v43 = vadd.f32 %v951_v37, %v288_v35  ;;  %v363_v47 = vsub.f32 0.0, %v339_v38  ;;  %v364_v48 = vsub.f32 0.0, %v340_v39  ;;  %v223_v38 = vld [vmem:[%s917_s23 + $0x40] sm:$0xff] }
  0x1a   : > { %v365_v49 = vsub.f32 0.0, %v341_v40  ;;  %v366_v50 = vsub.f32 0.0, %v342_v41  ;;  %v289_v53 = vmul.f32 %v919_v10, %v233_v44  ;;  %v290_v54 = vmul.f32 %v921_v11, %v234_v45 }
  0x1b   : > { %v367_v51 = vsub.f32 0.0, %v343_v42  ;;  %v368_v52 = vsub.f32 0.0, %v344_v43  ;;  %v387_v56 = vmul.f32 1.442695, %v363_v47  ;;  %v389_v57 = vmul.f32 1.442695, %v364_v48 }
  0x1c   : > { %v391_v58 = vmul.f32 1.442695, %v365_v49  ;;  %v235_v59 = vunpack.c.l.bf16 %v219_v46  ;;  %v393_v60 = vmul.f32 1.442695, %v366_v50  ;;  %v345_v63 = vadd.f32 %v923_v12, %v289_v53  ;;  %v224_v53 = vld [vmem:[%s917_s23 + $0x48] sm:$0xff] }
  0x1d   : > { %v395_v61 = vmul.f32 1.442695, %v367_v51  ;;  %v397_v62 = vmul.f32 1.442695, %v368_v52  ;;  %745 = vpow2.f32 %v387_v56  ;;  %v346_v0 = vadd.f32 %v925_v13, %v290_v54 }
  0x1e   : > { %v236_v1 = vunpack.c.h.bf16 %v219_v46  ;;  %v291_v2 = vmul.f32 %v929_v16, %v235_v59  ;;  %747 = vpow2.f32 %v389_v57  ;;  %v369_v3 = vsub.f32 0.0, %v345_v63 }
  0x1f   : > { %v237_v4 = vunpack.c.l.bf16 %v220_v55  ;;  %v238_v5 = vunpack.c.h.bf16 %v220_v55  ;;  %749 = vpow2.f32 %v391_v58  ;;  %v370_v6 = vsub.f32 0.0, %v346_v0 }
  0x20   : > { %v292_v7 = vmul.f32 %v931_v17, %v236_v1  ;;  %v347_v8 = vadd.f32 %v933_v18, %v291_v2  ;;  %751 = vpow2.f32 %v393_v60  ;;  %v399_v14 = vmul.f32 1.442695, %v369_v3 }
  0x21   : > { %v293_v15 = vmul.f32 %v938_v27, %v237_v4  ;;  %v294_v20 = vmul.f32 %v940_v28, %v238_v5  ;;  %753 = vpow2.f32 %v395_v61  ;;  %v401_v21 = vmul.f32 1.442695, %v370_v6 }
  0x22   : > { %v348_v22 = vadd.f32 %v935_v19, %v292_v7  ;;  %v371_v23 = vsub.f32 0.0, %v347_v8  ;;  %755 = vpow2.f32 %v397_v62  ;;  %v239_v26 = vunpack.c.l.bf16 %v221_v9  ;;  %v225_v8 = vld [vmem:[%s917_s23 + $0x50] sm:$0xff] }
  0x23   : > { %v349_v24 = vadd.f32 %v949_v36, %v293_v15  ;;  %v350_v25 = vadd.f32 %v951_v37, %v294_v20  ;;  %757 = vpow2.f32 %v399_v14  ;;  %v240_v32 = vunpack.c.h.bf16 %v221_v9 }
  0x24   : > { %v372_v30 = vsub.f32 0.0, %v348_v22  ;;  %v403_v31 = vmul.f32 1.442695, %v371_v23  ;;  %759 = vpow2.f32 %v401_v21  ;;  %v295_v35 = vmul.f32 %v919_v10, %v239_v26 }
  0x25   : > { %v373_v33 = vsub.f32 0.0, %v349_v24  ;;  %v374_v34 = vsub.f32 0.0, %v350_v25  ;;  %v296_v40 = vmul.f32 %v921_v11, %v240_v32  ;;  %v241_v41 = vunpack.c.l.bf16 %v222_v29 }
  0x26   : > { %761 = vpow2.f32 %v403_v31  ;;  %v405_v39 = vmul.f32 1.442695, %v372_v30  ;;  %v351_v44 = vadd.f32 %v923_v12, %v295_v35  ;;  %v242_v45 = vunpack.c.h.bf16 %v222_v29  ;;  %v226_v31 = vld [vmem:[%s917_s23 + $0x58] sm:$0xff] }
  0x27   : > { %v407_v42 = vmul.f32 1.442695, %v373_v33  ;;  %v409_v43 = vmul.f32 1.442695, %v374_v34  ;;  %v352_v46 = vadd.f32 %v925_v13, %v296_v40  ;;  %v297_v47 = vmul.f32 %v929_v16, %v241_v41 }
  0x28   : > { %763 = vpow2.f32 %v405_v39  ;;  %v243_v48 = vunpack.c.l.bf16 %v223_v38  ;;  %v375_v49 = vsub.f32 0.0, %v351_v44  ;;  %v298_v50 = vmul.f32 %v931_v17, %v242_v45 }
  0x29   : > { %765 = vpow2.f32 %v407_v42  ;;  %v244_v51 = vunpack.c.h.bf16 %v223_v38  ;;  %v376_v52 = vsub.f32 0.0, %v352_v46  ;;  %v353_v56 = vadd.f32 %v933_v18, %v297_v47 }
  0x2a   : > { %767 = vpow2.f32 %v409_v43  ;;  %v746_v54 = vpop.eup %745  ;;  %v411_v55 = vmul.f32 1.442695, %v375_v49  ;;  %v299_v57 = vmul.f32 %v938_v27, %v243_v48  ;;  %v354_v60 = vadd.f32 %v935_v19, %v298_v50 }
  0x2b   : > { %v748_v58 = vpop.eup %747  ;;  %v435_v59 = vadd.f32 1.0, %v746_v54  ;;  %v300_v63 = vmul.f32 %v940_v28, %v244_v51  ;;  %v245_v0 = vunpack.c.l.bf16 %v224_v53  ;;  %v413_v3 = vmul.f32 1.442695, %v376_v52 }
  0x2c   : > { %v750_v61 = vpop.eup %749  ;;  %v436_v62 = vadd.f32 1.0, %v748_v58  ;;  %769 = vpow2.f32 %v411_v55  ;;  %v377_v6 = vsub.f32 0.0, %v353_v56  ;;  %v355_v7 = vadd.f32 %v949_v36, %v299_v57 }
  0x2d   : > { %v752_v1 = vpop.eup %751  ;;  %771 = vrcp.f32 %v435_v59  ;;  %v437_v2 = vadd.f32 1.0, %v750_v61  ;;  %v378_v15 = vsub.f32 0.0, %v354_v60  ;;  %v246_v20 = vunpack.c.h.bf16 %v224_v53 }
  0x2e   : > { %v754_v4 = vpop.eup %753  ;;  %773 = vrcp.f32 %v436_v62  ;;  %v438_v5 = vadd.f32 1.0, %v752_v1  ;;  %v356_v23 = vadd.f32 %v951_v37, %v300_v63  ;;  %v301_v24 = vmul.f32 %v919_v10, %v245_v0 }
  0x2f   : > { %v756_v9 = vpop.eup %755  ;;  %775 = vrcp.f32 %v437_v2  ;;  %v439_v14 = vadd.f32 1.0, %v754_v4  ;;  %v302_v29 = vmul.f32 %v921_v11, %v246_v20  ;;  %v247_v30 = vunpack.c.l.bf16 %v225_v8 }
  0x30   : > { %v758_v21 = vpop.eup %757  ;;  %777 = vrcp.f32 %v438_v5  ;;  %v440_v22 = vadd.f32 1.0, %v756_v9  ;;  %v379_v34 = vsub.f32 0.0, %v355_v7  ;;  %v248_v35 = vunpack.c.h.bf16 %v225_v8 }
  0x31   : > { %v760_v25 = vpop.eup %759  ;;  %779 = vrcp.f32 %v439_v14  ;;  %v441_v26 = vadd.f32 1.0, %v758_v21  ;;  %v357_v39 = vadd.f32 %v923_v12, %v301_v24  ;;  %v303_v40 = vmul.f32 %v929_v16, %v247_v30 }
  0x32   : > { %781 = vrcp.f32 %v440_v22  ;;  %v442_v33 = vadd.f32 1.0, %v760_v25  ;;  %v358_v10 = vadd.f32 %v925_v13, %v302_v29  ;;  %v304_v42 = vmul.f32 %v931_v17, %v248_v35 }
  0x33   : > { %v762_v32 = vpop.eup %761  ;;  %783 = vrcp.f32 %v441_v26  ;;  %v249_v11 = vunpack.c.l.bf16 %v226_v31  ;;  %v380_v45 = vsub.f32 0.0, %v356_v23  ;;  %v359_v46 = vadd.f32 %v933_v18, %v303_v40 }
  0x34   : > { %v443_v38 = vadd.f32 1.0, %v762_v32  ;;  %785 = vrcp.f32 %v442_v33  ;;  %v415_v49 = vmul.f32 1.442695, %v377_v6  ;;  %v360_v12 = vadd.f32 %v935_v19, %v304_v42 }
  0x35   : > { %v764_v41 = vpop.eup %763  ;;  %v417_v50 = vmul.f32 1.442695, %v378_v15  ;;  %v381_v51 = vsub.f32 0.0, %v357_v39  ;;  %v382_v13 = vsub.f32 0.0, %v358_v10  ;;  %v250_v17 = vunpack.c.h.bf16 %v226_v31 }
  0x36   : > { %v766_v43 = vpop.eup %765  ;;  %v444_v44 = vadd.f32 1.0, %v764_v41  ;;  %787 = vrcp.f32 %v443_v38  ;;  %v305_v52 = vmul.f32 %v938_v27, %v249_v11  ;;  %v419_v54 = vmul.f32 1.442695, %v379_v34 }
  0x37   : > { %v768_v47 = vpop.eup %767  ;;  %v445_v48 = vadd.f32 1.0, %v766_v43  ;;  %789 = vpow2.f32 %v413_v3  ;;  %v421_v18 = vmul.f32 1.442695, %v380_v45  ;;  %v383_v55 = vsub.f32 0.0, %v359_v46 }
  0x38   : > { %791 = vrcp.f32 %v444_v44  ;;  %v446_v16 = vadd.f32 1.0, %v768_v47  ;;  %v384_v58 = vsub.f32 0.0, %v360_v12  ;;  %v306_v19 = vmul.f32 %v940_v28, %v250_v17 }
  0x39   : > { %793 = vrcp.f32 %v445_v48  ;;  %v770_v53 = vpop.eup %769  ;;  %v423_v27 = vmul.f32 1.442695, %v381_v51  ;;  %v361_v60 = vadd.f32 %v949_v36, %v305_v52  ;;  %v425_v63 = vmul.f32 1.442695, %v382_v13 }
  0x3a   : > { %795 = vrcp.f32 %v446_v16  ;;  %v772_v56 = vpop.eup %771  ;;  %v447_v57 = vadd.f32 1.0, %v770_v53  ;;  %v362_v0 = vadd.f32 %v951_v37, %v306_v19  ;;  %v427_v1 = vmul.f32 1.442695, %v383_v55 }
  0x3b   : > { %797 = vpow2.f32 %v415_v49  ;;  %v774_v59 = vpop.eup %773  ;;  %v385_v2 = vsub.f32 0.0, %v361_v60  ;;  %v429_v5 = vmul.f32 1.442695, %v384_v58 }
  0x3c   : > { %799 = vpow2.f32 %v417_v50  ;;  %v776_v61 = vpop.eup %775  ;;  %v708_v62 = vpack.c.bf16 %v774_v59, %v772_v56  ;;  %v386_v6 = vsub.f32 0.0, %v362_v0 }
  0x3d   : > { %801 = vrcp.f32 %v447_v57  ;;  %v778_v28 = vpop.eup %777  ;;  %v431_v36 = vmul.f32 1.442695, %v385_v2 }
  0x3e   : > { %803 = vpow2.f32 %v419_v54  ;;  %v780_v3 = vpop.eup %779  ;;  %579 = vst [vmem:[%s1006_s26] sm:$0xff] %v708_v62  ;;  %v709_v4 = vpack.c.bf16 %v778_v28, %v776_v61  ;;  %v433_v37 = vmul.f32 1.442695, %v386_v6 }
  0x3f   : > { %805 = vpow2.f32 %v421_v18  ;;  %v782_v7 = vpop.eup %781 }
  0x40   : > { %807 = vpow2.f32 %v423_v27  ;;  %v784_v8 = vpop.eup %783  ;;  %580 = vst [vmem:[%s1006_s26 + $0x8] sm:$0xff] %v709_v4  ;;  %v710_v9 = vpack.c.bf16 %v782_v7, %v780_v3 }
  0x41   : > { %809 = vpow2.f32 %v425_v63  ;;  %v786_v14 = vpop.eup %785 }
  0x42   : > { %811 = vpow2.f32 %v427_v1  ;;  %581 = vst [vmem:[%s1006_s26 + $0x10] sm:$0xff] %v710_v9  ;;  %v711_v20 = vpack.c.bf16 %v786_v14, %v784_v8 }
  0x43   : > { %v788_v15 = vpop.eup %787  ;;  %813 = vpow2.f32 %v429_v5 }
  0x44   : > { %v790_v21 = vpop.eup %789  ;;  %815 = vpow2.f32 %v431_v36  ;;  %582 = vst [vmem:[%s1006_s26 + $0x18] sm:$0xff] %v711_v20 }
  0x45   : > { %v792_v22 = vpop.eup %791  ;;  %v448_v23 = vadd.f32 1.0, %v790_v21  ;;  %817 = vpow2.f32 %v433_v37 }
  0x46   : > { %v794_v24 = vpop.eup %793  ;;  %v712_v25 = vpack.c.bf16 %v792_v22, %v788_v15 }
  0x47   : > { %v796_v26 = vpop.eup %795  ;;  %819 = vrcp.f32 %v448_v23 }
  0x48   : > { %v798_v29 = vpop.eup %797  ;;  %583 = vst [vmem:[%s1006_s26 + $0x20] sm:$0xff] %v712_v25  ;;  %v713_v30 = vpack.c.bf16 %v796_v26, %v794_v24 }
  0x49   : > { %v800_v31 = vpop.eup %799  ;;  %v449_v32 = vadd.f32 1.0, %v798_v29 }
  0x4a   : > { %v802_v33 = vpop.eup %801  ;;  %584 = vst [vmem:[%s1006_s26 + $0x28] sm:$0xff] %v713_v30  ;;  %v450_v34 = vadd.f32 1.0, %v800_v31 }
  0x4b   : > { %v804_v35 = vpop.eup %803  ;;  %821 = vrcp.f32 %v449_v32 }
  0x4c   : > { %v806_v38 = vpop.eup %805  ;;  %823 = vrcp.f32 %v450_v34  ;;  %v451_v39 = vadd.f32 1.0, %v804_v35 }
  0x4d   : > { %v808_v40 = vpop.eup %807  ;;  %v452_v41 = vadd.f32 1.0, %v806_v38 }
  0x4e   : > { %v810_v10 = vpop.eup %809  ;;  %825 = vrcp.f32 %v451_v39  ;;  %v453_v42 = vadd.f32 1.0, %v808_v40 }
  0x4f   : > { %v812_v11 = vpop.eup %811  ;;  %827 = vrcp.f32 %v452_v41  ;;  %v454_v43 = vadd.f32 1.0, %v810_v10 }
  0x50   : > { %v814_v44 = vpop.eup %813  ;;  %829 = vrcp.f32 %v453_v42  ;;  %v455_v45 = vadd.f32 1.0, %v812_v11 }
  0x51   : > { %v816_v46 = vpop.eup %815  ;;  %831 = vrcp.f32 %v454_v43  ;;  %v456_v47 = vadd.f32 1.0, %v814_v44 }
  0x52   : > { %v818_v48 = vpop.eup %817  ;;  %833 = vrcp.f32 %v455_v45  ;;  %v457_v49 = vadd.f32 1.0, %v816_v46 }
  0x53   : > { %835 = vrcp.f32 %v456_v47  ;;  %v458_v12 = vadd.f32 1.0, %v818_v48 }
  0x54   : > { %v820_v16 = vpop.eup %819  ;;  %837 = vrcp.f32 %v457_v49 }
  0x55   : > { %v714_v50 = vpack.c.bf16 %v820_v16, %v802_v33  ;;  %839 = vrcp.f32 %v458_v12 }
  0x57   : > { %585 = vst [vmem:[%s1006_s26 + $0x30] sm:$0xff] %v714_v50 }
  0x58   : > { %v822_v51 = vpop.eup %821 }
  0x59   : > { %v824_v13 = vpop.eup %823 }
  0x5a   : > { %v715_v17 = vpack.c.bf16 %v824_v13, %v822_v51 }
  0x5b   : > { %v826_v52 = vpop.eup %825 }
  0x5c   : > { %v828_v53 = vpop.eup %827  ;;  %586 = vst [vmem:[%s1006_s26 + $0x38] sm:$0xff] %v715_v17 }
  0x5d   : > { %v830_v54 = vpop.eup %829  ;;  %v716_v18 = vpack.c.bf16 %v828_v53, %v826_v52 }
  0x5e   : > { %v832_v55 = vpop.eup %831 }
  0x5f   : > { %v834_v56 = vpop.eup %833  ;;  %587 = vst [vmem:[%s1006_s26 + $0x40] sm:$0xff] %v716_v18  ;;  %v717_v57 = vpack.c.bf16 %v832_v55, %v830_v54 }
  0x60   : > { %v836_v58 = vpop.eup %835 }
  0x61   : > { %v838_v19 = vpop.eup %837  ;;  %588 = vst [vmem:[%s1006_s26 + $0x48] sm:$0xff] %v717_v57  ;;  %v718_v59 = vpack.c.bf16 %v836_v58, %v834_v56 }
  0x62   : > { %v840_v27 = vpop.eup %839 }
  0x63   : > { %589 = vst [vmem:[%s1006_s26 + $0x50] sm:$0xff] %v718_v59  ;;  %v719_v60 = vpack.c.bf16 %v840_v27, %v838_v19 }
  0x65   : > { %590 = vst [vmem:[%s1006_s26 + $0x58] sm:$0xff] %v719_v60 }
  0x66 PF: > { %s13_s14 = sadd.s32 1, %s863_s14   ;;  %s1035_s12 = smov %s859_s13 }
  0x67   : > { %p10_p5 = scmp.ge.s32.totalorder %s13_s14, 4   ;;  %s1036_s13 = smov %s1038_s15 }
  0x69   :  { %12 = sbr.rel (!%p10_p5) target bundleno = 2 (0x2), region = 62 }

// kernel: conv_transpose_bn_sigmoid.2
= control target key start
LH: loop header
LB: loop body
LE: loop exit
PB: predicated region body
PF: predicated region fallthrough
CT: control target
= control target key end

     0   :  { %s7031_s18 = smov 0   ;;  %s7033_s19 = smov 0   ;;  %s9197_s0 = inlined_call_operand.vmem [shape: bf16[2,1,1,42,128], index: 0, kind: input, shape index: {}]   ;;  %s9198_s1 = inlined_call_operand.vmem [shape: bf16[1408,768], index: 1, kind: input, shape index: {}]   ;;  %s9199_s2 = inlined_call_operand.vmem [shape: f32[1,768], index: 2, kind: input, shape index: {}]   ;;  %s9200_s3 = inlined_call_operand.vmem [shape: bf16[2,32,768], index: 3, kind: output, shape index: {0}]   ;;  %s9201_s4 = inlined_call_operand.vmem [shape: f32[2,1,1,1,768], index: 4, kind: output, shape index: {1}]   ;;  %s9202_s5 = inlined_call_operand.vmem [shape: f32[2,1,1,1,768], index: 5, kind: output, shape index: {2}]  }
   0x1   :  { %s7035_s20 = smov 0  }
   0x2 LB: > { %s35_s21 = sadd.s32 1, %s6993_s19  ;;  %p5502_p0 = scmp.ge.s32.totalorder %s6997_s20, 1  ;;  %s6997_s20 = sphi %s7035_s20, %s16_s20   ;;  %s6993_s19 = sphi %s7033_s19, %s9218_s19   ;;  %s6989_s18 = sphi %s7031_s18, %s9217_s18  }
   0x3   : > { %p37_p1 = scmp.ge.s32.totalorder %s35_s21, 2  ;;  %p235_p2 = scmp.lt.s32.totalorder %s6997_s20, 3 }
   0x5   : > { %s9220_s21 = smov (%p37_p1, %s35_s21), 0  ;;  %p236_p3 = pnand %p5502_p0, %p235_p2 }
   0x6   : > { %p304_p4 = scmp.lt.s32.totalorder (!%p236_p3), %s6989_s18, 1 }
   0x7   : > { %239 = sbr.rel (%p236_p3) target bundleno = 794 (0x31a), region = 32 }
   0xc   : > { %v6114_v0 = vld [vmem:[%s9198_s1 + $0x154] ss:$24 sps:$4 sm:$0xff]   ;;  %v6118_v2 = vld [vmem:[%s9198_s1 + $0x150] ss:$24 sps:$4 sm:$0xff]   ;;  %v6120_v4 = vld [vmem:[%s9198_s1 + $0x124] ss:$24 sps:$4 sm:$0xff]  }
   0xd   : > { %v6116_v1 = vld [vmem:[%s9198_s1 + $0x454] ss:$24 sps:$4 sm:$0xff]   ;;  %3928 = vmatprep.subr.bf16.mxu0 %v6114_v0  ;;  %v6119_v3 = vld [vmem:[%s9198_s1 + $0x450] ss:$24 sps:$4 sm:$0xff]   ;;  %v6122_v5 = vld [vmem:[%s9198_s1 + $0x424] ss:$24 sps:$4 sm:$0xff]  }
   0xe   : > { %3981 = vmatprep.subr.bf16.mxu1 %v6116_v1  ;;  %3929 = vmatpush1.bf16.msra.mxu0 %v6118_v2  ;;  %v6124_v6 = vld [vmem:[%s9198_s1 + $0x120] ss:$24 sps:$4 sm:$0xff]   ;;  %v6126_v8 = vld [vmem:[%s9198_s1 + $0xf4] ss:$24 sps:$4 sm:$0xff]   ;;  %v6130_v10 = vld [vmem:[%s9198_s1 + $0xf0] ss:$24 sps:$4 sm:$0xff]  }
   0xf   : > { %3982 = vmatpush1.bf16.msra.mxu1 %v6119_v3  ;;  %3930 = vmatprep.subr.bf16.mxu0 %v6120_v4  ;;  %v6125_v7 = vld [vmem:[%s9198_s1 + $0x420] ss:$24 sps:$4 sm:$0xff]   ;;  %v6128_v9 = vld [vmem:[%s9198_s1 + $0x3f4] ss:$24 sps:$4 sm:$0xff]   ;;  %v6131_v11 = vld [vmem:[%s9198_s1 + $0x3f0] ss:$24 sps:$4 sm:$0xff]  }
  0x10   : > { %3983 = vmatprep.subr.bf16.mxu1 %v6122_v5  ;;  %v6132_v12 = vld [vmem:[%s9198_s1 + $0xc4] ss:$24 sps:$4 sm:$0xff]   ;;  %v6136_v14 = vld [vmem:[%s9198_s1 + $0xc0] ss:$24 sps:$4 sm:$0xff]   ;;  %v6138_v16 = vld [vmem:[%s9198_s1 + $0x94] ss:$24 sps:$4 sm:$0xff]  }
  0x11   : > { %v6134_v13 = vld [vmem:[%s9198_s1 + $0x3c4] ss:$24 sps:$4 sm:$0xff]   ;;  %v6137_v15 = vld [vmem:[%s9198_s1 + $0x3c0] ss:$24 sps:$4 sm:$0xff]   ;;  %v6140_v17 = vld [vmem:[%s9198_s1 + $0x394] ss:$24 sps:$4 sm:$0xff]  }
  0x12   : > { %3931 = vmatpush1.bf16.msra.mxu0 %v6124_v6  ;;  %v6142_v18 = vld [vmem:[%s9198_s1 + $0x90] ss:$24 sps:$4 sm:$0xff]   ;;  %v6144_v20 = vld [vmem:[%s9198_s1 + $0x64] ss:$24 sps:$4 sm:$0xff]   ;;  %v6148_v22 = vld [vmem:[%s9198_s1 + $0x60] ss:$24 sps:$4 sm:$0xff]  }
  0x13   : > { %3984 = vmatpush1.bf16.msra.mxu1 %v6125_v7  ;;  %3932 = vmatprep.subr.bf16.mxu0 %v6126_v8  ;;  %v6143_v19 = vld [vmem:[%s9198_s1 + $0x390] ss:$24 sps:$4 sm:$0xff]   ;;  %v6146_v21 = vld [vmem:[%s9198_s1 + $0x364] ss:$24 sps:$4 sm:$0xff]   ;;  %v6149_v23 = vld [vmem:[%s9198_s1 + $0x360] ss:$24 sps:$4 sm:$0xff]  }
  0x14   : > { %3985 = vmatprep.subr.bf16.mxu1 %v6128_v9  ;;  %v6150_v24 = vld [vmem:[%s9198_s1 + $0x34] ss:$24 sps:$4 sm:$0xff]   ;;  %v6154_v26 = vld [vmem:[%s9198_s1 + $0x30] ss:$24 sps:$4 sm:$0xff]   ;;  %v6156_v28 = vld [vmem:[%s9198_s1 + $0x4] ss:$24 sps:$4 sm:$0xff]  }
  0x15   : > { %v6152_v25 = vld [vmem:[%s9198_s1 + $0x334] ss:$24 sps:$4 sm:$0xff]   ;;  %v6155_v27 = vld [vmem:[%s9198_s1 + $0x330] ss:$24 sps:$4 sm:$0xff]   ;;  %v6158_v29 = vld [vmem:[%s9198_s1 + $0x304] ss:$24 sps:$4 sm:$0xff]  }
  0x16   : > { %3933 = vmatpush1.bf16.msra.mxu0 %v6130_v10  ;;  %v6160_v30 = vld [vmem:[%s9198_s1] ss:$24 sps:$4 sm:$0xff]   ;;  %v6162_v32 = vld [vmem:[%s9198_s1 + $0x2d4] ss:$24 sps:$4 sm:$0xff]   ;;  %v6166_v34 = vld [vmem:[%s9198_s1 + $0x2d0] ss:$24 sps:$4 sm:$0xff]  }
  0x17   : > { %3986 = vmatpush1.bf16.msra.mxu1 %v6131_v11  ;;  %3934 = vmatprep.subr.bf16.mxu0 %v6132_v12  ;;  %v6161_v31 = vld [vmem:[%s9198_s1 + $0x300] ss:$24 sps:$4 sm:$0xff]   ;;  %v6164_v33 = vld [vmem:[%s9198_s1 + $0x5d4] ss:$24 sps:$4 sm:$0xff]   ;;  %v6167_v35 = vld [vmem:[%s9198_s1 + $0x5d0] ss:$24 sps:$4 sm:$0xff]  }
  0x18   : > { %3987 = vmatprep.subr.bf16.mxu1 %v6134_v13  ;;  %s9222_s18 = smov (!%p304_p4, %s6989_s18), 1  ;;  %v6168_v36 = vld [vmem:[%s9198_s1 + $0x2a4] ss:$24 sps:$4 sm:$0xff]   ;;  %v6172_v38 = vld [vmem:[%s9198_s1 + $0x2a0] ss:$24 sps:$4 sm:$0xff]   ;;  %vm428_vm2 = vcmask 1042432  }
  0x19   : > { %v6170_v37 = vld [vmem:[%s9198_s1 + $0x5a4] ss:$24 sps:$4 sm:$0xff]   ;;  %s6085_s12 = smul.u32 24, %s9222_s18  ;;  %v6173_v39 = vld [vmem:[%s9198_s1 + $0x5a0] ss:$24 sps:$4 sm:$0xff]   ;;  %vm429_vm3 = vcmask 1046532  }
  0x1a   : > { %3935 = vmatpush1.bf16.msra.mxu0 %v6136_v14  ;;  %v6174_v40 = vld [vmem:[%s9198_s1 + $0x274] ss:$24 sps:$4 sm:$0xff]   ;;  %vm368_vm0 = vsmask.f32 3328  ;;  %vm369_vm1 = vsmask.f32 7440  ;;  %vm7242_vm6 = vmor %vm428_vm2, %vm429_vm3 }
  0x1b   : > { %3988 = vmatpush1.bf16.msra.mxu1 %v6137_v15  ;;  %3936 = vmatprep.subr.bf16.mxu0 %v6138_v16  ;;  %v6176_v41 = vld [vmem:[%s9198_s1 + $0x574] ss:$24 sps:$4 sm:$0xff]   ;;  %v6178_v42 = vld [vmem:[%s9198_s1 + $0x270] ss:$24 sps:$4 sm:$0xff]   ;;  %s7191_s29 = scalar_lea.vmem %s9197_s0, %s6085_s12  ;;  %v6180_v44 = vld [vmem:[%s9198_s1 + $0x244] ss:$24 sps:$4 sm:$0xff]  }
  0x1c   : > { %3989 = vmatprep.subr.bf16.mxu1 %v6140_v17  ;;  %v6179_v43 = vld [vmem:[%s9198_s1 + $0x570] ss:$24 sps:$4 sm:$0xff]   ;;  %vm452_vm4 = vsmask.f32 2304  ;;  %v6182_v45 = vld [vmem:[%s9198_s1 + $0x544] ss:$24 sps:$4 sm:$0xff]   ;;  %vm7271_vm7 = vmor %vm368_vm0, %vm369_vm1 }
  0x1d   : > { %vm453_vm5 = vsmask.f32 6416  ;;  %v6184_v46 = vld [vmem:[%s9198_s1 + $0x240] ss:$24 sps:$4 sm:$0xff]   ;;  %v6186_v49 = vld [vmem:[%s9198_s1 + $0x214] ss:$24 sps:$4 sm:$0xff]  }
  0x1e   : > { %3937 = vmatpush1.bf16.msra.mxu0 %v6142_v18  ;;  %v6185_v47 = vld [vmem:[%s9198_s1 + $0x540] ss:$24 sps:$4 sm:$0xff]   ;;  %v7212_v50 = vld [vmem:[%s7191_s29 + $0x4] sm:$0xf]  ;;  %v7215_v51 = vld [vmem:[%s7191_s29 + $0x8] sm:$0xf] }
  0x1f   : > { %3990 = vmatpush1.bf16.msra.mxu1 %v6143_v19  ;;  %3938 = vmatprep.subr.bf16.mxu0 %v6144_v20  ;;  %v7206_v48 = vld [vmem:[%s7191_s29] sm:$0xf]  ;;  %365 = vst [vmem:[#allocation2 + $0x2c] sm:$0xf] %v7212_v50  ;;  %v7226_v54 = vshll.u32 %v7212_v50, 16  ;;  %v7229_v55 = vshrl.u32 %v7212_v50, 16  ;;  %vm7294_vm9 = vmor %vm452_vm4, %vm453_vm5 }
  0x20   : > { %3991 = vmatprep.subr.bf16.mxu1 %v6146_v21  ;;  %364 = vst [vmem:[#allocation2] sm:$0xf] %v7206_v48  ;;  %v7219_v52 = vshrl.u32 %v7206_v48, 16  ;;  %v7222_v53 = vshll.u32 %v7206_v48, 16  ;;  %v7232_v56 = vshll.u32 %v7215_v51, 16  ;;  %v7238_v57 = vshrl.u32 %v7215_v51, 16 }
  0x21   : > { %366 = vst [vmem:[#allocation2 + $0x58] sm:$0xf] %v7215_v51  ;;  %598 = vst [vmem:[#allocation2 + $0x20] sm:$0xf] %v7212_v50  ;;  %v6188_v59 = vld [vmem:[%s9198_s1 + $0x514] ss:$24 sps:$4 sm:$0xff]  }
  0x22   : > { %3939 = vmatpush1.bf16.msra.mxu0 %v6148_v22  ;;  %599 = vst [vmem:[#allocation2 + $0x4c] sm:$0xf] %v7215_v51  ;;  %v374_v60 = vrot.slane %v7219_v52, 4  ;;  %v377_v61 = vrot.slane %v7222_v53, 5  ;;  %v5505_v62 = vrot.slane %v7206_v48, 9  ;;  %v433_v63 = vrot.slane %v7212_v50, 5 }
  0x23   : > { %3992 = vmatpush1.bf16.msra.mxu1 %v6149_v23  ;;  %3940 = vmatprep.subr.bf16.mxu0 %v6150_v24  ;;  %v6190_v0 = vld [vmem:[%s9198_s1 + $0x210] ss:$24 sps:$4 sm:$0xff]   ;;  %v383_v1 = vrot.slane %v7226_v54, 5  ;;  %v387_v2 = vrot.slane %v7229_v55, 4  ;;  %v393_v3 = vrot.slane %v7232_v56, 5  ;;  %v436_v4 = vrot.slane %v7215_v51, 5 }
  0x24   : > { %3993 = vmatprep.subr.bf16.mxu1 %v6152_v25  ;;  %v6191_v5 = vld [vmem:[%s9198_s1 + $0x510] ss:$24 sps:$4 sm:$0xff]   ;;  %v378_v6 = vor.u32 %v377_v61, %v374_v60  ;;  %v434_v7 = vsel %vm7242_vm6, %v5505_v62, %v433_v63  ;;  %v435_v8 = vrot.slane %v433_v63, 4  ;;  %v455_v9 = vrot.slane %v7219_v52, 5  ;;  %v6192_v10 = vld [vmem:[%s9198_s1 + $0x1e4] ss:$24 sps:$4 sm:$0xff]  }
  0x25   : > { %v388_v12 = vor.u32 %v387_v2, %v383_v1  ;;  %448 = vst [vmem:[#allocation2 + $0x8] sm:$0xf] %v434_v7  ;;  %v456_v13 = vrot.slane %v7222_v53, 6  ;;  %v459_v14 = vrot.slane %v7229_v55, 5  ;;  %v460_v15 = vrot.slane %v7226_v54, 6  ;;  %s6086_s28 = smul.u32 96, %s9222_s18 }
  0x26   : > { %3941 = vmatpush1.bf16.msra.mxu0 %v6154_v26  ;;  %v6194_v16 = vld [vmem:[%s9198_s1 + $0x4e4] ss:$24 sps:$4 sm:$0xff]   ;;  %v379_v17 = vrot.slane %v378_v6, 4  ;;  %v437_v18 = vsel %vm7242_vm6, %v435_v8, %v436_v4  ;;  %v464_v19 = vrot.slane %v7238_v57, 5  ;;  %v465_v20 = vrot.slane %v7232_v56, 6 }
  0x27   : > { %3994 = vmatpush1.bf16.msra.mxu1 %v6155_v27  ;;  %3942 = vmatprep.subr.bf16.mxu0 %v6156_v28  ;;  %v389_v21 = vrot.slane %v388_v12, 4  ;;  %449 = vst [vmem:[#allocation2 + $0x34] sm:$0xf] %v437_v18  ;;  %v457_v22 = vor.u32 %v456_v13, %v455_v9  ;;  %v461_v23 = vor.u32 %v460_v15, %v459_v14  ;;  %620 = vst [vmem:[#allocation2 + $0x28] sm:$0xf] %v437_v18  ;;  %vm488_vm8 = vcmask 1041408   ;;  %s8627_s14 = scalar_lea.vmem %s9200_s3, %s6086_s28 }
  0x28   : > { %3995 = vmatprep.subr.bf16.mxu1 %v6158_v29  ;;  %v6196_v24 = vld [vmem:[%s9198_s1 + $0x1e0] ss:$24 sps:$4 sm:$0xff]   ;;  %v384_v25 = vsel %vm7271_vm7, %v379_v17, %v383_v1  ;;  %v7298_v27 = vor.u32 %v465_v20, %v464_v19  ;;  %vm489_vm10 = vcmask 1045508   ;;  %vm546_vm11 = vcmask 1040384   ;;  %v6217_v62 = vld [vmem:[%s9198_s1 + $0x754] ss:$24 sps:$4 sm:$0xff]  }
  0x29   : > { %v6197_v28 = vld [vmem:[%s9198_s1 + $0x4e0] ss:$24 sps:$4 sm:$0xff]   ;;  %v394_v29 = vsel %vm7271_vm7, %v389_v21, %v393_v3  ;;  %419 = vst [vmem:[#allocation2 + $0x4] sm:$0xf] %v384_v25  ;;  %vm547_vm12 = vcmask 1044484   ;;  %vm7320_vm13 = vmor %vm488_vm8, %vm489_vm10  ;;  %v519_v60 = vrot.slane %v7229_v55, 6 }
  0x2a   : > { %3943 = vmatpush1.bf16.msra.mxu0 %v6160_v30  ;;  %v458_v30 = vrot.slane %v457_v22, 4  ;;  %420 = vst [vmem:[#allocation2 + $0x30] sm:$0xf] %v394_v29  ;;  %611 = vst [vmem:[#allocation2 + $0x24] sm:$0xf] %v394_v29  ;;  %v524_v6 = vrot.slane %v7238_v57, 6 }
  0x2b   : > { %3996 = vmatpush1.bf16.msra.mxu1 %v6161_v31  ;;  %3944 = vmatprep.subr.bf16.mxu0 %v6162_v32  ;;  %v463_v31 = vrot.slane %v461_v23, 4  ;;  %v6198_v32 = vld [vmem:[%s9198_s1 + $0x1b4] ss:$24 sps:$4 sm:$0xff]   ;;  %vm512_vm14 = vsmask.f32 1280  ;;  %v525_v7 = vrot.slane %v7232_v56, 7  ;;  %vm7371_vm1 = vmor %vm546_vm11, %vm547_vm12 }
  0x2c   : > { %3997 = vmatprep.subr.bf16.mxu1 %v6164_v33  ;;  %v6200_v33 = vld [vmem:[%s9198_s1 + $0x4b4] ss:$24 sps:$4 sm:$0xff]   ;;  %vm513_vm15 = vsmask.f32 5392  ;;  %v5507_v12 = vrot.slane %v7206_v48, 11  ;;  %v554_v20 = vrot.slane %v7215_v51, 7 }
  0x2d   : > { %vm7359_vm0 = vmor %vm512_vm14, %vm513_vm15  ;;  %v6220_v8 = vld [vmem:[%s9198_s1 + $0xa54] ss:$24 sps:$4 sm:$0xff]   ;;  %v7376_v15 = vor.u32 %v525_v7, %v524_v6  ;;  %v6215_v21 = vld [vmem:[%s9198_s1 + $0x750] ss:$24 sps:$4 sm:$0xff]   ;;  %vm570_vm2 = vsmask.f32 256 }
  0x2e   : > { %3945 = vmatpush2.bf16.msra.mxu0 %v6166_v34  ;;  %v462_v34 = vsel %vm7294_vm9, %v458_v30, %v461_v23  ;;  %v6214_v18 = vld [vmem:[#allocation2 + $0x8] ss:$44 sps:$4 sm:$0xff]   ;;  %v6226_v25 = vld [vmem:[%s9198_s1 + $0xa24] ss:$24 sps:$4 sm:$0xff]   ;;  %v6221_v30 = vld [vmem:[%s9198_s1 + $0x720] ss:$24 sps:$4 sm:$0xff]  }
  0x2f   : > { %3998 = vmatpush2.bf16.msra.mxu1 %v6167_v35  ;;  %3946 = vmatprep.subr.bf16.mxu0 %v6168_v36  ;;  %v467_v35 = vsel %vm7294_vm9, %v463_v31, %v7298_v27  ;;  %484 = vst [vmem:[#allocation2 + $0xc] sm:$0xf] %v462_v34  ;;  %v6224_v31 = vld [vmem:[%s9198_s1 + $0xa20] ss:$24 sps:$4 sm:$0xff]   ;;  %v6227_v34 = vld [vmem:[%s9198_s1 + $0x6f0] ss:$24 sps:$4 sm:$0xff]  }
  0x30   : > { %3999 = vmatprep.subr.bf16.mxu1 %v6170_v37  ;;  %v5506_v37 = vrot.slane %v7206_v48, 10  ;;  %485 = vst [vmem:[#allocation2 + $0x38] sm:$0xf] %v467_v35  ;;  %v624_v61 = vld [vmem:[#allocation2] sm:$0xff]  ;;  %v6218_v48 = vld [vmem:[%s9198_s1 + $0xa50] ss:$24 sps:$4 sm:$0xff]  }
  0x31   : > { %v630_v1 = vld [vmem:[#allocation2 + $0x2c] sm:$0xff]  ;;  %vm571_vm3 = vsmask.f32 4368 }
  0x32   : > { %3947 = vmatpush2.bf16.msra.mxu0 %v6172_v38  ;;  %v6202_v38 = vld [vmem:[%s9198_s1 + $0x1b0] ss:$24 sps:$4 sm:$0xff]   ;;  %v7379_v17 = vcombine.low %v624_v61, %v630_v1  ;;  %v5508_v61 = vrot.slane %v7219_v52, 11  ;;  %v6245_v1 = vld [vmem:[%s9198_s1 + $0x660] ss:$24 sps:$4 sm:$0xff]   ;;  %vm7494_vm4 = vmor %vm570_vm2, %vm571_vm3 }
  0x33   : > { %4000 = vmatpush2.bf16.msra.mxu1 %v6173_v39  ;;  %3948 = vmatprep.subr.bf16.mxu0 %v6174_v40  ;;  %v493_v39 = vrot.slane %v7212_v50, 6  ;;  %v6203_v40 = vld [vmem:[%s9198_s1 + $0x4b0] ss:$24 sps:$4 sm:$0xff]   ;;  %v7474_v6 = vld [vmem:[%s7191_s29 + $0xc] sm:$0xf] }
  0x34   : > { %4001 = vmatprep.subr.bf16.mxu1 %v6176_v41  ;;  %v6204_v41 = vld [vmem:[%s9198_s1 + $0x184] ss:$24 sps:$4 sm:$0xff]   ;;  %v6230_v35 = vld [vmem:[%s9198_s1 + $0x9f0] ss:$24 sps:$4 sm:$0xff]   ;;  %367 = vst [vmem:[#allocation2 + $0x84] sm:$0xf] %v7474_v6 }
  0x35   : > { %v6210_v2 = vld [vmem:[#allocation2 + $0x4] ss:$44 sps:$4 sm:$0xff]   ;;  %600 = vst [vmem:[#allocation2 + $0x78] sm:$0xf] %v7474_v6  ;;  %v439_v7 = vrot.slane %v7474_v6, 5 }
  0x36   : > { %3949 = vmatpush2.bf16.msra.mxu0 %v6178_v42  ;;  %v496_v42 = vrot.slane %v7215_v51, 6  ;;  %3960 = vmatprep.mubr.bf16.mxu0 %v6210_v2  ;;  %v468_v2 = vrot.slane %v7298_v27, 4  ;;  %v6268_v51 = vld [vmem:[%s9198_s1 + $0xbd4] ss:$24 sps:$4 sm:$0xff]   ;;  %v6379_v11 = vld [vmem:[%s9198_s1 + $0x158] ss:$24 sps:$4 sm:$0xff]  }
  0x37   : > { %4002 = vmatpush2.bf16.msra.mxu1 %v6179_v43  ;;  %3950 = vmatprep.subr.bf16.mxu0 %v6180_v44  ;;  %v6206_v43 = vld [vmem:[%s9198_s1 + $0x484] ss:$24 sps:$4 sm:$0xff]   ;;  %v494_v44 = vsel %vm7320_vm13, %v5506_v37, %v493_v39  ;;  %v6212_v13 = vld [vmem:[#allocation2 + $0xc] ss:$44 sps:$4 sm:$0xff]  }
  0x38   : > { %4003 = vmatprep.subr.bf16.mxu1 %v6182_v45  ;;  %v495_v45 = vrot.slane %v493_v39, 4  ;;  %508 = vst [vmem:[#allocation2 + $0x10] sm:$0xf] %v494_v44  ;;  %4013 = vmatprep.mubr.bf16.mxu1 %v6212_v13  ;;  %v6235_v37 = vld [vmem:[%s9198_s1 + $0x6c4] ss:$24 sps:$4 sm:$0xff]   ;;  %v397_v39 = vrot.slane %v7238_v57, 4 }
  0x39   : > { %v6244_v44 = vld [vmem:[%s9198_s1 + $0x994] ss:$24 sps:$4 sm:$0xff]  }
  0x3a   : > { %3951 = vmatpush2.bf16.msra.mxu0 %v6184_v46  ;;  %v515_v46 = vrot.slane %v7219_v52, 6  ;;  %v497_v63 = vsel %vm7320_vm13, %v495_v45, %v496_v42  ;;  %v575_v45 = vrot.slane %v7229_v55, 7  ;;  %v6247_v55 = vld [vmem:[%s9198_s1 + $0x664] ss:$24 sps:$4 sm:$0xff]   ;;  %v7477_v52 = vld [vmem:[%s7191_s29 + $0x10] sm:$0xf] }
  0x3b   : > { %4004 = vmatpush2.bf16.msra.mxu1 %v6185_v47  ;;  %3952 = vmatprep.subr.bf16.mxu0 %v6186_v49  ;;  %v6208_v47 = vld [vmem:[%s9198_s1 + $0x180] ss:$24 sps:$4 sm:$0xff]   ;;  %509 = vst [vmem:[#allocation2 + $0x3c] sm:$0xf] %v497_v63  ;;  %v7487_v27 = vshll.u32 %v7477_v52, 16  ;;  %v442_v13 = vrot.slane %v7477_v52, 5 }
  0x3c   : > { %4005 = vmatprep.subr.bf16.mxu1 %v6188_v59  ;;  %v6209_v49 = vld [vmem:[%s9198_s1 + $0x480] ss:$24 sps:$4 sm:$0xff]   ;;  %v516_v59 = vrot.slane %v7222_v53, 7  ;;  %v520_v53 = vrot.slane %v7226_v54, 7  ;;  %v578_v63 = vrot.slane %v575_v45, 4 }
  0x3d   : > { %601 = vst [vmem:[#allocation2 + $0xa4] sm:$0xf] %v7477_v52  ;;  %v6378_v58 = vld [vmem:[%s9198_s1 + $0xed4] ss:$24 sps:$4 sm:$0xff]  }
  0x3e   : > { %3953 = vmatpush2.bf16.msra.mxu0 %v6190_v0  ;;  %v521_v9 = vor.u32 %v520_v53, %v519_v60  ;;  %v6250_v60 = vld [vmem:[%s9198_s1 + $0x964] ss:$24 sps:$4 sm:$0xff]  }
  0x3f   : > { %4006 = vmatpush2.bf16.msra.mxu1 %v6191_v5  ;;  %3954 = vmatprep.subr.bf16.mxu0 %v6192_v10  ;;  %v517_v5 = vor.u32 %v516_v59, %v515_v46  ;;  %v579_v46 = vrot.slane %v7238_v57, 7  ;;  %v6242_v59 = vld [vmem:[%s9198_s1 + $0x990] ss:$24 sps:$4 sm:$0xff]   ;;  %v6274_v57 = vld [vmem:[%s9198_s1 + $0xba4] ss:$24 sps:$4 sm:$0xff]  }
  0x40   : > { %4007 = vmatprep.subr.bf16.mxu1 %v6194_v16  ;;  %v551_v16 = vrot.slane %v7212_v50, 7  ;;  %v523_v19 = vrot.slane %v521_v9, 4 }
  0x41   : > { %v518_v14 = vrot.slane %v517_v5, 4  ;;  %v580_v53 = vor.u32 %v579_v46, %v7232_v56  ;;  %v6248_v5 = vld [vmem:[%s9198_s1 + $0x960] ss:$24 sps:$4 sm:$0xff]   ;;  %v7484_v56 = vshrl.u32 %v7474_v6, 16 }
  0x42   : > { %3955 = vmatpush2.bf16.msra.mxu0 %v6196_v24  ;;  %v552_v50 = vsel %vm7371_vm1, %v5507_v12, %v551_v16  ;;  %v553_v23 = vrot.slane %v551_v16, 4  ;;  %v6223_v24 = vld [vmem:[%s9198_s1 + $0x724] ss:$24 sps:$4 sm:$0xff]   ;;  %v6256_v12 = vld [vmem:[%s9198_s1 + $0x934] ss:$24 sps:$4 sm:$0xff]  }
  0x43   : > { %4008 = vmatpush2.bf16.msra.mxu1 %v6197_v28  ;;  %3956 = vmatprep.subr.bf16.mxu0 %v6198_v32  ;;  %v522_v22 = vsel %vm7359_vm0, %v518_v14, %v521_v9  ;;  %v527_v28 = vsel %vm7359_vm0, %v523_v19, %v7376_v15  ;;  %566 = vst [vmem:[#allocation2 + $0x18] sm:$0xf] %v552_v50  ;;  %v6229_v32 = vld [vmem:[%s9198_s1 + $0x6f4] ss:$24 sps:$4 sm:$0xff]   ;;  %v7506_v14 = vshrl.u32 %v7477_v52, 16  ;;  %v498_v50 = vrot.slane %v496_v42, 4 }
  0x44   : > { %4009 = vmatprep.subr.bf16.mxu1 %v6200_v33  ;;  %542 = vst [vmem:[#allocation2 + $0x14] sm:$0xf] %v522_v22  ;;  %543 = vst [vmem:[#allocation2 + $0x40] sm:$0xf] %v527_v28  ;;  %v555_v29 = vsel %vm7371_vm1, %v553_v23, %v554_v20  ;;  %v6232_v33 = vld [vmem:[%s9198_s1 + $0x9f4] ss:$24 sps:$4 sm:$0xff]  }
  0x45   : > { %567 = vst [vmem:[#allocation2 + $0x44] sm:$0xf] %v555_v29  ;;  %v6253_v9 = vld [vmem:[%s9198_s1 + $0x634] ss:$24 sps:$4 sm:$0xff]   ;;  %v6251_v19 = vld [vmem:[%s9198_s1 + $0x630] ss:$24 sps:$4 sm:$0xff]  }
  0x46   : > { %3957 = vmatpush2.bf16.msra.mxu0 %v6202_v38  ;;  %v6238_v38 = vld [vmem:[%s9198_s1 + $0x9c4] ss:$24 sps:$4 sm:$0xff]   ;;  %v6254_v23 = vld [vmem:[%s9198_s1 + $0x930] ss:$24 sps:$4 sm:$0xff]   ;;  %v476_v29 = vrot.slane %v7506_v14, 5  ;;  %v583_v36 = vrot.slane %v7484_v56, 7 }
  0x47   : > { %4010 = vmatpush2.bf16.msra.mxu1 %v6203_v40  ;;  %3958 = vmatprep.subr.bf16.mxu0 %v6204_v41  ;;  %v6233_v40 = vld [vmem:[%s9198_s1 + $0x6c0] ss:$24 sps:$4 sm:$0xff]  }
  0x48   : > { %4011 = vmatprep.subr.bf16.mxu1 %v6206_v43  ;;  %v6236_v41 = vld [vmem:[%s9198_s1 + $0x9c0] ss:$24 sps:$4 sm:$0xff]   ;;  %v6241_v43 = vld [vmem:[%s9198_s1 + $0x694] ss:$24 sps:$4 sm:$0xff]  }
  0x4a   : > { %3959 = vmatpush2.bf16.msra.mxu0 %v6208_v47  ;;  %v398_v47 = vor.u32 %v397_v39, %v393_v3  ;;  %v438_v3 = vrot.slane %v436_v4, 4  ;;  %v6257_v39 = vld [vmem:[%s9198_s1 + $0x600] ss:$24 sps:$4 sm:$0xff]  }
  0x4b   : > { %4012 = vmatpush2.bf16.msra.mxu1 %v6209_v49  ;;  %4034 = vmatprep.subr.bf16.mxu0 %v6217_v62  ;;  %v6239_v49 = vld [vmem:[%s9198_s1 + $0x690] ss:$24 sps:$4 sm:$0xff]   ;;  %v576_v62 = vor.u32 %v575_v45, %v7226_v54  ;;  %v7481_v54 = vshll.u32 %v7474_v6, 16  ;;  %v6260_v45 = vld [vmem:[%s9198_s1 + $0x900] ss:$24 sps:$4 sm:$0xff]  }
  0x4c   : > { %4087 = vmatprep.subr.bf16.mxu1 %v6220_v8  ;;  %v399_v4 = vrot.slane %v398_v47, 4  ;;  %v440_v22 = vsel %vm7242_vm6, %v438_v3, %v439_v7  ;;  %v6283_v8 = vld [vmem:[%s9198_s1 + $0x844] ss:$24 sps:$4 sm:$0xff]  }
  0x4d   : > { %3961 = vmatmul.mubr.bf16.vlgmr.msra.gmra.mxu0 %v7379_v17  ;;  %v577_v16 = vsel %vm7494_vm4, %v5508_v61, %v576_v62  ;;  %450 = vst [vmem:[#allocation2 + $0x60] sm:$0xf] %v440_v22  ;;  %v470_v28 = vrot.slane %v7481_v54, 6  ;;  %621 = vst [vmem:[#allocation2 + $0x54] sm:$0xf] %v440_v22  ;;  %v529_v61 = vrot.slane %v7484_v56, 6 }
  0x4e   : > { %4014 = vmatmul.mubr.bf16.vlgmr.msra.gmra.mxu1 %v6214_v18  ;;  %4035 = vmatpush1.bf16.msra.mxu0 %v6215_v21  ;;  %v581_v18 = vsel %vm7494_vm4, %v578_v63, %v580_v53  ;;  %v403_v21 = vrot.slane %v7481_v54, 5  ;;  %594 = vst [vmem:[#allocation2 + $0x1c] sm:$0xf] %v577_v16  ;;  %v530_v62 = vrot.slane %v7481_v54, 7  ;;  %v534_v63 = vrot.slane %v7506_v14, 6 }
  0x4f   : > { %4088 = vmatpush1.bf16.msra.mxu1 %v6218_v48  ;;  %4036 = vmatprep.subr.bf16.mxu0 %v6223_v24  ;;  %v407_v48 = vrot.slane %v7484_v56, 4  ;;  %595 = vst [vmem:[#allocation2 + $0x48] sm:$0xf] %v581_v18  ;;  %v441_v24 = vrot.slane %v439_v7, 4  ;;  %v6263_v53 = vld [vmem:[%s9198_s1 + $0x8d0] ss:$24 sps:$4 sm:$0xff]  }
  0x50   : > { %4089 = vmatprep.subr.bf16.mxu1 %v6226_v25  ;;  %v469_v25 = vrot.slane %v7484_v56, 5  ;;  %v404_v42 = vsel %vm7271_vm7, %v399_v4, %v403_v21  ;;  %v535_v4 = vrot.slane %v7487_v27, 7  ;;  %v531_v26 = vor.u32 %v530_v62, %v529_v61  ;;  %v6271_v18 = vld [vmem:[%s9198_s1 + $0x8a4] ss:$24 sps:$4 sm:$0xff]   ;;  %v6269_v56 = vld [vmem:[%s9198_s1 + $0x8a0] ss:$24 sps:$4 sm:$0xff]  }
  0x51   : > { %421 = vst [vmem:[#allocation2 + $0x5c] sm:$0xf] %v404_v42  ;;  %612 = vst [vmem:[#allocation2 + $0x50] sm:$0xf] %v404_v42  ;;  %v582_v7 = vrot.slane %v579_v46, 4  ;;  %v587_v16 = vrot.slane %v7506_v14, 7 }
  0x52   : > { %4037 = vmatpush1.bf16.msra.mxu0 %v6221_v30  ;;  %v6259_v30 = vld [vmem:[%s9198_s1 + $0x604] ss:$24 sps:$4 sm:$0xff]   ;;  %v6309_v61 = vld [vmem:[%s9198_s1 + $0xab4] ss:$24 sps:$4 sm:$0xff]  }
  0x53   : > { %4090 = vmatpush1.bf16.msra.mxu1 %v6224_v31  ;;  %4038 = vmatprep.subr.bf16.mxu0 %v6229_v32  ;;  %v408_v31 = vor.u32 %v407_v48, %v403_v21  ;;  %v413_v32 = vrot.slane %v7487_v27, 5  ;;  %v6272_v21 = vld [vmem:[%s9198_s1 + $0xba0] ss:$24 sps:$4 sm:$0xff]   ;;  %v6312_v62 = vld [vmem:[%s9198_s1 + $0x784] ss:$24 sps:$4 sm:$0xff]  }
  0x54   : > { %4091 = vmatprep.subr.bf16.mxu1 %v6232_v33  ;;  %v477_v33 = vrot.slane %v7487_v27, 6 }
  0x56   : > { %4039 = vmatpush1.bf16.msra.mxu0 %v6227_v34  ;;  %v6262_v34 = vld [vmem:[%s9198_s1 + $0x904] ss:$24 sps:$4 sm:$0xff]  }
  0x57   : > { %4092 = vmatpush1.bf16.msra.mxu1 %v6230_v35  ;;  %4040 = vmatprep.subr.bf16.mxu0 %v6235_v37  ;;  %v443_v35 = vsel %vm7242_vm6, %v441_v24, %v442_v13  ;;  %v471_v37 = vor.u32 %v470_v28, %v469_v25  ;;  %v6277_v24 = vld [vmem:[%s9198_s1 + $0x874] ss:$24 sps:$4 sm:$0xff]   ;;  %v586_v28 = vrot.slane %v583_v36, 4 }
  0x58   : > { %4093 = vmatprep.subr.bf16.mxu1 %v6238_v38  ;;  %v499_v38 = vrot.slane %v7474_v6, 6  ;;  %451 = vst [vmem:[#allocation2 + $0x8c] sm:$0xf] %v443_v35  ;;  %622 = vst [vmem:[#allocation2 + $0x80] sm:$0xf] %v443_v35  ;;  %v636_v48 = vld [vmem:[#allocation2 + $0x58] sm:$0xff] }
  0x59   : > { %v472_v47 = vsel %vm7294_vm9, %v468_v2, %v471_v37  ;;  %v6266_v2 = vld [vmem:[%s9198_s1 + $0xbd0] ss:$24 sps:$4 sm:$0xff]  }
  0x5a   : > { %4041 = vmatpush1.bf16.msra.mxu0 %v6233_v40  ;;  %v409_v40 = vrot.slane %v408_v31, 4  ;;  %486 = vst [vmem:[#allocation2 + $0x64] sm:$0xf] %v472_v47  ;;  %v6287_v47 = vld [vmem:[%s9198_s1 + $0x810] ss:$24 sps:$4 sm:$0xff]  }
  0x5b   : > { %4094 = vmatpush1.bf16.msra.mxu1 %v6236_v41  ;;  %4042 = vmatprep.subr.bf16.mxu0 %v6241_v43  ;;  %v478_v41 = vor.u32 %v477_v33, %v476_v29  ;;  %v502_v43 = vrot.slane %v7477_v52, 6  ;;  %v6280_v29 = vld [vmem:[%s9198_s1 + $0xb74] ss:$24 sps:$4 sm:$0xff]  }
  0x5c   : > { %4095 = vmatprep.subr.bf16.mxu1 %v6244_v44  ;;  %v528_v44 = vrot.slane %v7376_v15, 4  ;;  %v6265_v15 = vld [vmem:[%s9198_s1 + $0x8d4] ss:$24 sps:$4 sm:$0xff]   ;;  %v414_v3 = vsel %vm7271_vm7, %v409_v40, %v413_v32  ;;  %v6286_v40 = vld [vmem:[%s9198_s1 + $0xb44] ss:$24 sps:$4 sm:$0xff]  }
  0x5d   : > { %422 = vst [vmem:[#allocation2 + $0x88] sm:$0xf] %v414_v3  ;;  %613 = vst [vmem:[#allocation2 + $0x7c] sm:$0xf] %v414_v3  ;;  %v6301_v3 = vld [vmem:[%s9198_s1 + $0xae0] ss:$24 sps:$4 sm:$0xff]  }
  0x5e   : > { %4043 = vmatpush1.bf16.msra.mxu0 %v6239_v49  ;;  %v473_v49 = vrot.slane %v471_v37, 4  ;;  %v532_v46 = vsel %vm7359_vm0, %v528_v44, %v531_v26  ;;  %v6275_v37 = vld [vmem:[%s9198_s1 + $0x870] ss:$24 sps:$4 sm:$0xff]   ;;  %v6289_v44 = vld [vmem:[%s9198_s1 + $0x814] ss:$24 sps:$4 sm:$0xff]  }
  0x5f   : > { %4096 = vmatpush1.bf16.msra.mxu1 %v6242_v59  ;;  %4044 = vmatprep.subr.bf16.mxu0 %v6247_v55  ;;  %v500_v59 = vsel %vm7320_vm13, %v498_v50, %v499_v38  ;;  %v556_v55 = vrot.slane %v554_v20, 4  ;;  %544 = vst [vmem:[#allocation2 + $0x6c] sm:$0xf] %v532_v46  ;;  %v584_v50 = vor.u32 %v583_v36, %v7481_v54  ;;  %v6297_v10 = vld [vmem:[#allocation2 + $0x60] ss:$44 sps:$4 sm:$0xff]  }
  0x60   : > { %4097 = vmatprep.subr.bf16.mxu1 %v6250_v60  ;;  %v501_v60 = vrot.slane %v499_v38, 4  ;;  %510 = vst [vmem:[#allocation2 + $0x68] sm:$0xf] %v500_v59  ;;  %v479_v20 = vsel %vm7294_vm9, %v473_v49, %v478_v41  ;;  %v6278_v38 = vld [vmem:[%s9198_s1 + $0xb70] ss:$24 sps:$4 sm:$0xff]  }
  0x61   : > { %487 = vst [vmem:[#allocation2 + $0x90] sm:$0xf] %v479_v20  ;;  %v585_v31 = vsel %vm7494_vm4, %v582_v7, %v584_v50  ;;  %v6281_v41 = vld [vmem:[%s9198_s1 + $0x840] ss:$24 sps:$4 sm:$0xff]   ;;  %v6290_v49 = vld [vmem:[%s9198_s1 + $0xb10] ss:$24 sps:$4 sm:$0xff]  }
  0x62   : > { %4045 = vmatpush1.bf16.msra.mxu0 %v6245_v1  ;;  %v503_v1 = vsel %vm7320_vm13, %v501_v60, %v502_v43  ;;  %596 = vst [vmem:[#allocation2 + $0x74] sm:$0xf] %v585_v31  ;;  %v6284_v43 = vld [vmem:[%s9198_s1 + $0xb40] ss:$24 sps:$4 sm:$0xff]   ;;  %v6300_v59 = vld [vmem:[%s9198_s1 + $0x7e4] ss:$24 sps:$4 sm:$0xff]  }
  0x63   : > { %4098 = vmatpush1.bf16.msra.mxu1 %v6248_v5  ;;  %4046 = vmatprep.subr.bf16.mxu0 %v6253_v9  ;;  %511 = vst [vmem:[#allocation2 + $0x94] sm:$0xf] %v503_v1  ;;  %v557_v5 = vrot.slane %v7474_v6, 7  ;;  %v536_v9 = vor.u32 %v535_v4, %v534_v63  ;;  %v533_v6 = vrot.slane %v531_v26, 4  ;;  %v6306_v60 = vld [vmem:[%s9198_s1 + $0x7b4] ss:$24 sps:$4 sm:$0xff]  }
  0x64   : > { %4099 = vmatprep.subr.bf16.mxu1 %v6256_v12  ;;  %v560_v12 = vrot.slane %v7477_v52, 7  ;;  %v6293_v42 = vld [vmem:[#allocation2 + $0x5c] ss:$44 sps:$4 sm:$0xff]   ;;  %v6313_v1 = vld [vmem:[%s9198_s1 + $0xa80] ss:$24 sps:$4 sm:$0xff]  }
  0x65   : > { %v559_v22 = vrot.slane %v557_v5, 4  ;;  %v537_v25 = vsel %vm7359_vm0, %v533_v6, %v536_v9  ;;  %3970 = vmatprep.mubr.bf16.mxu0 %v6293_v42  ;;  %v6307_v20 = vld [vmem:[%s9198_s1 + $0xab0] ss:$24 sps:$4 sm:$0xff]   ;;  %v6315_v63 = vld [vmem:[%s9198_s1 + $0xa84] ss:$24 sps:$4 sm:$0xff]  }
  0x66   : > { %4047 = vmatpush1.bf16.msra.mxu0 %v6251_v19  ;;  %v558_v19 = vsel %vm7371_vm1, %v556_v55, %v557_v5  ;;  %545 = vst [vmem:[#allocation2 + $0x98] sm:$0xf] %v537_v25  ;;  %v6303_v55 = vld [vmem:[%s9198_s1 + $0xae4] ss:$24 sps:$4 sm:$0xff]   ;;  %v6324_v4 = vld [vmem:[%s9198_s1 + $0xd54] ss:$24 sps:$4 sm:$0xff]  }
  0x67   : > { %4100 = vmatpush1.bf16.msra.mxu1 %v6254_v23  ;;  %4048 = vmatprep.subr.bf16.mxu0 %v6259_v30  ;;  %568 = vst [vmem:[#allocation2 + $0x70] sm:$0xf] %v558_v19  ;;  %v588_v23 = vor.u32 %v587_v16, %v7487_v27  ;;  %v642_v30 = vld [vmem:[#allocation2 + $0x84] sm:$0xff]  ;;  %v561_v54 = vsel %vm7371_vm1, %v559_v22, %v560_v12  ;;  %v6327_v26 = vld [vmem:[%s9198_s1 + $0x1054] ss:$24 sps:$4 sm:$0xff]  }
  0x68   : > { %4101 = vmatprep.subr.bf16.mxu1 %v6262_v34  ;;  %v6295_v0 = vld [vmem:[#allocation2 + $0x64] ss:$44 sps:$4 sm:$0xff]   ;;  %v7616_v33 = vcombine.low %v636_v48, %v642_v30  ;;  %v6318_v34 = vld [vmem:[#allocation2 + $0x14] ss:$44 sps:$4 sm:$0xff]   ;;  %569 = vst [vmem:[#allocation2 + $0x9c] sm:$0xf] %v561_v54 }
  0x69   : > { %v589_v35 = vsel %vm7494_vm4, %v586_v28, %v588_v23  ;;  %4023 = vmatprep.mubr.bf16.mxu1 %v6295_v0  ;;  %v6319_v5 = vld [vmem:[#allocation2 + $0x18] ss:$44 sps:$4 sm:$0xff]   ;;  %v6322_v7 = vld [vmem:[%s9198_s1 + $0xd50] ss:$24 sps:$4 sm:$0xff]   ;;  %v6339_v6 = vld [vmem:[%s9198_s1 + $0xcf4] ss:$24 sps:$4 sm:$0xff]  }
  0x6a   : > { %4049 = vmatpush1.bf16.msra.mxu0 %v6257_v39  ;;  %597 = vst [vmem:[#allocation2 + $0xa0] sm:$0xf] %v589_v35  ;;  %v6321_v39 = vld [vmem:[#allocation2 + $0x1c] ss:$44 sps:$4 sm:$0xff]   ;;  %4024 = vmatmul.mubr.bf16.gmra.mxu1 %v6297_v10  ;;  %v6331_v46 = vld [vmem:[%s9198_s1 + $0x1020] ss:$24 sps:$4 sm:$0xff]  }
  0x6b   : > { %4102 = vmatpush1.bf16.msra.mxu1 %v6260_v45  ;;  %4050 = vmatprep.subr.bf16.mxu0 %v6265_v15  ;;  %v6292_v45 = vld [vmem:[%s9198_s1 + $0xb14] ss:$24 sps:$4 sm:$0xff]   ;;  %v6298_v15 = vld [vmem:[%s9198_s1 + $0x7e0] ss:$24 sps:$4 sm:$0xff]   ;;  %v6325_v9 = vld [vmem:[%s9198_s1 + $0x1050] ss:$24 sps:$4 sm:$0xff]  }
  0x6c   : > { %4103 = vmatprep.subr.bf16.mxu1 %v6268_v51  ;;  %3971 = vmatmul.mubr.bf16.gmra.mxu0 %v7616_v33  ;;  %v6304_v51 = vld [vmem:[%s9198_s1 + $0x7b0] ss:$24 sps:$4 sm:$0xff]   ;;  %v6330_v12 = vld [vmem:[%s9198_s1 + $0xd24] ss:$24 sps:$4 sm:$0xff]   ;;  %v6342_v19 = vld [vmem:[%s9198_s1 + $0xff4] ss:$24 sps:$4 sm:$0xff]  }
  0x6d   : > { %4066 = vmatprep.mubr.bf16.mxu0 %v6318_v34  ;;  %4119 = vmatprep.mubr.bf16.mxu1 %v6321_v39  ;;  %v6333_v36 = vld [vmem:[%s9198_s1 + $0x1024] ss:$24 sps:$4 sm:$0xff]   ;;  %v6334_v16 = vld [vmem:[#allocation2 + $0x6c] ss:$44 sps:$4 sm:$0xff]   ;;  %v6337_v48 = vld [vmem:[%s9198_s1 + $0xcf0] ss:$24 sps:$4 sm:$0xff]  }
  0x6e   : > { %4051 = vmatpush2.bf16.msra.mxu0 %v6263_v53  ;;  %v6310_v53 = vld [vmem:[%s9198_s1 + $0x780] ss:$24 sps:$4 sm:$0xff]   ;;  %v6340_v22 = vld [vmem:[%s9198_s1 + $0xff0] ss:$24 sps:$4 sm:$0xff]   ;;  %v6348_v50 = vld [vmem:[%s9198_s1 + $0xcc4] ss:$24 sps:$4 sm:$0xff]  }
  0x6f   : > { %4104 = vmatpush2.bf16.msra.mxu1 %v6266_v2  ;;  %4052 = vmatprep.subr.bf16.mxu0 %v6271_v18  ;;  %v6316_v2 = vld [vmem:[#allocation2 + $0x10] ss:$44 sps:$4 sm:$0xff]   ;;  %v6349_v25 = vld [vmem:[%s9198_s1 + $0xfc0] ss:$24 sps:$4 sm:$0xff]   ;;  %v6354_v28 = vld [vmem:[%s9198_s1 + $0xc94] ss:$24 sps:$4 sm:$0xff]  }
  0x70   : > { %4105 = vmatprep.subr.bf16.mxu1 %v6274_v57  ;;  %v6328_v57 = vld [vmem:[%s9198_s1 + $0xd20] ss:$24 sps:$4 sm:$0xff]   ;;  %v6351_v23 = vld [vmem:[%s9198_s1 + $0xfc4] ss:$24 sps:$4 sm:$0xff]   ;;  %v6999_v30 = vmov 0   ;;  %v602_v54 = vrot.slane %v7506_v14, 4 }
  0x71   : > { %v6343_v18 = vld [vmem:[#allocation2 + $0x74] ss:$44 sps:$4 sm:$0xff]   ;;  %v6352_v42 = vld [vmem:[%s9198_s1 + $0xc90] ss:$24 sps:$4 sm:$0xff]   ;;  %v6360_v0 = vld [vmem:[%s9198_s1 + $0xc64] ss:$24 sps:$4 sm:$0xff]  }
  0x72   : > { %4053 = vmatpush2.bf16.msra.mxu0 %v6269_v56  ;;  %v6336_v56 = vld [vmem:[#allocation2 + $0x68] ss:$44 sps:$4 sm:$0xff]   ;;  %v6363_v34 = vld [vmem:[%s9198_s1 + $0xf64] ss:$24 sps:$4 sm:$0xff]   ;;  %v603_v14 = vor.u32 %v602_v54, %v413_v32  ;;  %v6361_v10 = vld [vmem:[%s9198_s1 + $0xf60] ss:$24 sps:$4 sm:$0xff]  }
  0x73   : > { %4106 = vmatpush2.bf16.msra.mxu1 %v6272_v21  ;;  %4054 = vmatprep.subr.bf16.mxu0 %v6277_v24  ;;  %v6345_v21 = vld [vmem:[#allocation2 + $0x70] ss:$44 sps:$4 sm:$0xff]   ;;  %v6346_v24 = vld [vmem:[%s9198_s1 + $0xcc0] ss:$24 sps:$4 sm:$0xff]   ;;  %v6369_v27 = vld [vmem:[%s9198_s1 + $0xf34] ss:$24 sps:$4 sm:$0xff]  }
  0x74   : > { %4107 = vmatprep.subr.bf16.mxu1 %v6280_v29  ;;  %v6357_v29 = vld [vmem:[%s9198_s1 + $0xf94] ss:$24 sps:$4 sm:$0xff]   ;;  %v6355_v31 = vld [vmem:[%s9198_s1 + $0xf90] ss:$24 sps:$4 sm:$0xff]   ;;  %v616_v39 = vrot.slane %v442_v13, 4 }
  0x75   : > { %v6427_v35 = vld [vmem:[#allocation2 + $0x24] ss:$44 sps:$4 sm:$0xff]   ;;  %v6425_v54 = vld [vmem:[#allocation2 + $0x20] ss:$44 sps:$4 sm:$0xff]  }
  0x76   : > { %4055 = vmatpush2.bf16.msra.mxu0 %v6275_v37  ;;  %v6358_v37 = vld [vmem:[%s9198_s1 + $0xc60] ss:$24 sps:$4 sm:$0xff]   ;;  %v6364_v32 = vld [vmem:[%s9198_s1 + $0xc30] ss:$24 sps:$4 sm:$0xff]   ;;  %v6375_v52 = vld [vmem:[%s9198_s1 + $0xf04] ss:$24 sps:$4 sm:$0xff]  }
  0x77   : > { %4108 = vmatpush2.bf16.msra.mxu1 %v6278_v38  ;;  %4056 = vmatprep.subr.bf16.mxu0 %v6283_v8  ;;  %v6366_v38 = vld [vmem:[%s9198_s1 + $0xc34] ss:$24 sps:$4 sm:$0xff]   ;;  %v6367_v8 = vld [vmem:[%s9198_s1 + $0xf30] ss:$24 sps:$4 sm:$0xff]  }
  0x78   : > { %4109 = vmatprep.subr.bf16.mxu1 %v6286_v40  ;;  %v363_v40 = vld [vmem:[%s7191_s29 + $0x14] sm:$0x1] }
  0x7a   : > { %4057 = vmatpush2.bf16.msra.mxu0 %v6281_v41  ;;  %v604_v41 = vrot.slane %v603_v14, 4 }
  0x7b   : > { %4110 = vmatpush2.bf16.msra.mxu1 %v6284_v43  ;;  %4058 = vmatprep.subr.bf16.mxu0 %v6289_v44  ;;  %v6372_v43 = vld [vmem:[%s9198_s1 + $0xc04] ss:$24 sps:$4 sm:$0xff]   ;;  %v606_v44 = vshll.u32 %v363_v40, 16 }
  0x7c   : > { %4111 = vmatprep.subr.bf16.mxu1 %v6292_v45  ;;  %v617_v45 = vrot.slane %v363_v40, 5  ;;  %v6452_v40 = vld [vmem:[%s9198_s1 + $0x24c] ss:$24 sps:$4 sm:$0xff]  }
  0x7d   : > { %v608_v13 = vrot.slane %v606_v44, 5  ;;  %v6453_v44 = vld [vmem:[%s9198_s1 + $0x3c8] ss:$24 sps:$4 sm:$0xff]  }
  0x7e   : > { %4059 = vmatpush2.bf16.msra.mxu0 %v6287_v47  ;;  %v618_v47 = vsel %vm7242_vm6, %v616_v39, %v617_v45  ;;  %v6443_v39 = vld [vmem:[%s9198_s1 + $0x278] ss:$24 sps:$4 sm:$0xff]   ;;  %v6458_v45 = vld [vmem:[%s9198_s1 + $0x21c] ss:$24 sps:$4 sm:$0xff]  }
  0x7f   : > { %4112 = vmatpush2.bf16.msra.mxu1 %v6290_v49  ;;  %4060 = vmatprep.subr.bf16.mxu0 %v6300_v59  ;;  %v6370_v49 = vld [vmem:[%s9198_s1 + $0xc00] ss:$24 sps:$4 sm:$0xff]   ;;  %623 = vst [vmem:[#allocation2 + $0xac] sm:$0xf] %v618_v47 }
  0x80   : > { %4113 = vmatprep.subr.bf16.mxu1 %v6303_v55  ;;  %v6373_v59 = vld [vmem:[%s9198_s1 + $0xf00] ss:$24 sps:$4 sm:$0xff]   ;;  %v609_v55 = vsel %vm7271_vm7, %v604_v41, %v608_v13  ;;  %v6455_v41 = vld [vmem:[%s9198_s1 + $0x3cc] ss:$24 sps:$4 sm:$0xff]  }
  0x81   : > { %614 = vst [vmem:[#allocation2 + $0xa8] sm:$0xf] %v609_v55  ;;  %v6937_v13 = vld [vmem:[#allocation2 + $0xc] ss:$44 sps:$4 sm:$0xff]  }
  0x82   : > { %4061 = vmatpush2.bf16.msra.mxu0 %v6298_v15  ;;  %v6381_v15 = vld [vmem:[%s9198_s1 + $0x15c] ss:$24 sps:$4 sm:$0xff]   ;;  %v6456_v47 = vld [vmem:[%s9198_s1 + $0x218] ss:$24 sps:$4 sm:$0xff]   ;;  %v6467_v55 = vld [vmem:[%s9198_s1 + $0x36c] ss:$24 sps:$4 sm:$0xff]  }
  0x83   : > { %4114 = vmatpush2.bf16.msra.mxu1 %v6301_v3  ;;  %4062 = vmatprep.subr.bf16.mxu0 %v6306_v60  ;;  %v6376_v3 = vld [vmem:[%s9198_s1 + $0xed0] ss:$24 sps:$4 sm:$0xff]  }
  0x84   : > { %4115 = vmatprep.subr.bf16.mxu1 %v6309_v61  ;;  %v6382_v60 = vld [vmem:[#allocation2 + $0x28] ss:$44 sps:$4 sm:$0xff]   ;;  %v6385_v61 = vld [vmem:[%s9198_s1 + $0xea4] ss:$24 sps:$4 sm:$0xff]  }
  0x86   : > { %4063 = vmatpush2.bf16.msra.mxu0 %v6304_v51  ;;  %v6388_v51 = vld [vmem:[%s9198_s1 + $0x12c] ss:$24 sps:$4 sm:$0xff]  }
  0x87   : > { %4116 = vmatpush2.bf16.msra.mxu1 %v6307_v20  ;;  %4064 = vmatprep.subr.bf16.mxu0 %v6312_v62  ;;  %v6383_v20 = vld [vmem:[%s9198_s1 + $0xea0] ss:$24 sps:$4 sm:$0xff]  }
  0x88   : > { %4117 = vmatprep.subr.bf16.mxu1 %v6315_v63  ;;  %v6386_v62 = vld [vmem:[%s9198_s1 + $0x128] ss:$24 sps:$4 sm:$0xff]   ;;  %v6391_v63 = vld [vmem:[%s9198_s1 + $0xe74] ss:$24 sps:$4 sm:$0xff]  }
  0x89   : > { %v6440_v14 = vld [vmem:[#allocation2 + $0x7c] ss:$44 sps:$4 sm:$0xff]  }
  0x8a   : > { %4065 = vmatpush2.bf16.msra.mxu0 %v6310_v53  ;;  %v6394_v53 = vld [vmem:[%s9198_s1 + $0xfc] ss:$24 sps:$4 sm:$0xff]  }
  0x8b   : > { %4118 = vmatpush2.bf16.msra.mxu1 %v6313_v1  ;;  %4140 = vmatprep.subr.bf16.mxu0 %v6324_v4  ;;  %v6449_v1 = vld [vmem:[#allocation2 + $0x80] ss:$44 sps:$4 sm:$0xff]   ;;  %v6389_v4 = vld [vmem:[%s9198_s1 + $0xe70] ss:$24 sps:$4 sm:$0xff]  }
  0x8c   : > { %4193 = vmatprep.subr.bf16.mxu1 %v6327_v26  ;;  %v6397_v26 = vld [vmem:[%s9198_s1 + $0xe44] ss:$24 sps:$4 sm:$0xff]  }
  0x8d   : > { %4067 = vmatmul.mubr.bf16.vlgmr.msra.gmra.mxu0 %v6316_v2  ;;  %v6392_v2 = vld [vmem:[%s9198_s1 + $0xf8] ss:$24 sps:$4 sm:$0xff]  }
  0x8e   : > { %4120 = vmatmul.mubr.bf16.vlgmr.msra.gmra.mxu1 %v6319_v5  ;;  %4141 = vmatpush1.bf16.msra.mxu0 %v6322_v7  ;;  %v6400_v5 = vld [vmem:[%s9198_s1 + $0xcc] ss:$24 sps:$4 sm:$0xff]   ;;  %v6395_v7 = vld [vmem:[%s9198_s1 + $0xe40] ss:$24 sps:$4 sm:$0xff]  }
  0x8f   : > { %4194 = vmatpush1.bf16.msra.mxu1 %v6325_v9  ;;  %4142 = vmatprep.subr.bf16.mxu0 %v6330_v12  ;;  %v6398_v9 = vld [vmem:[%s9198_s1 + $0xc8] ss:$24 sps:$4 sm:$0xff]   ;;  %v6403_v12 = vld [vmem:[%s9198_s1 + $0xe14] ss:$24 sps:$4 sm:$0xff]  }
  0x90   : > { %4195 = vmatprep.subr.bf16.mxu1 %v6333_v36  ;;  %4076 = vmatprep.mubr.bf16.mxu0 %v6334_v16  ;;  %v6406_v36 = vld [vmem:[%s9198_s1 + $0x9c] ss:$24 sps:$4 sm:$0xff]   ;;  %v6936_v16 = vld [vmem:[#allocation2 + $0x4] ss:$44 sps:$4 sm:$0xff]  }
  0x91   : > { %4129 = vmatprep.mubr.bf16.mxu1 %v6343_v18  ;;  %v6401_v18 = vld [vmem:[%s9198_s1 + $0xe10] ss:$24 sps:$4 sm:$0xff]  }
  0x92   : > { %4143 = vmatpush1.bf16.msra.mxu0 %v6328_v57  ;;  %v6404_v57 = vld [vmem:[%s9198_s1 + $0x98] ss:$24 sps:$4 sm:$0xff]  }
  0x93   : > { %4196 = vmatpush1.bf16.msra.mxu1 %v6331_v46  ;;  %4144 = vmatprep.subr.bf16.mxu0 %v6339_v6  ;;  %v6409_v46 = vld [vmem:[%s9198_s1 + $0xde4] ss:$24 sps:$4 sm:$0xff]  }
  0x94   : > { %4197 = vmatprep.subr.bf16.mxu1 %v6342_v19  ;;  %v6412_v6 = vld [vmem:[%s9198_s1 + $0x6c] ss:$24 sps:$4 sm:$0xff]   ;;  %v6407_v19 = vld [vmem:[%s9198_s1 + $0xde0] ss:$24 sps:$4 sm:$0xff]  }
  0x95   : > { %4077 = vmatmul.mubr.bf16.gmra.mxu0 %v6336_v56  ;;  %v6410_v56 = vld [vmem:[%s9198_s1 + $0x68] ss:$24 sps:$4 sm:$0xff]  }
  0x96   : > { %4130 = vmatmul.mubr.bf16.gmra.mxu1 %v6345_v21  ;;  %4145 = vmatpush1.bf16.msra.mxu0 %v6337_v48  ;;  %v6415_v21 = vld [vmem:[%s9198_s1 + $0xdb4] ss:$24 sps:$4 sm:$0xff]  }
  0x97   : > { %4198 = vmatpush1.bf16.msra.mxu1 %v6340_v22  ;;  %4146 = vmatprep.subr.bf16.mxu0 %v6348_v50  ;;  %v6418_v48 = vld [vmem:[%s9198_s1 + $0x3c] ss:$24 sps:$4 sm:$0xff]   ;;  %v6413_v22 = vld [vmem:[%s9198_s1 + $0xdb0] ss:$24 sps:$4 sm:$0xff]  }
  0x98   : > { %4199 = vmatprep.subr.bf16.mxu1 %v6351_v23  ;;  %4225 = vmatprep.mubr.bf16.mxu1 %v6999_v30  ;;  %v6416_v50 = vld [vmem:[%s9198_s1 + $0x38] ss:$24 sps:$4 sm:$0xff]   ;;  %v6421_v23 = vld [vmem:[%s9198_s1 + $0xd84] ss:$24 sps:$4 sm:$0xff]  }
  0x99   : > { %4172 = vmatprep.mubr.bf16.mxu0 %v6427_v35  ;;  %v6439_v35 = vld [vmem:[%s9198_s1 + $0x42c] ss:$24 sps:$4 sm:$0xff]  }
  0x9a   : > { %4147 = vmatpush1.bf16.msra.mxu0 %v6346_v24  ;;  %v6424_v24 = vld [vmem:[%s9198_s1 + $0xc] ss:$24 sps:$4 sm:$0xff]  }
  0x9b   : > { %4200 = vmatpush1.bf16.msra.mxu1 %v6349_v25  ;;  %4148 = vmatprep.subr.bf16.mxu0 %v6354_v28  ;;  %v6419_v25 = vld [vmem:[%s9198_s1 + $0xd80] ss:$24 sps:$4 sm:$0xff]  }
  0x9c   : > { %4201 = vmatprep.subr.bf16.mxu1 %v6357_v29  ;;  %v6422_v28 = vld [vmem:[%s9198_s1 + $0x8] ss:$24 sps:$4 sm:$0xff]   ;;  %v6430_v29 = vld [vmem:[%s9198_s1 + $0x2dc] ss:$24 sps:$4 sm:$0xff]  }
  0x9e   : > { %4149 = vmatpush1.bf16.msra.mxu0 %v6352_v42  ;;  %v6433_v42 = vld [vmem:[%s9198_s1 + $0x45c] ss:$24 sps:$4 sm:$0xff]  }
  0x9f   : > { %4202 = vmatpush1.bf16.msra.mxu1 %v6355_v31  ;;  %4150 = vmatprep.subr.bf16.mxu0 %v6360_v0  ;;  %v6428_v31 = vld [vmem:[%s9198_s1 + $0x2d8] ss:$24 sps:$4 sm:$0xff]  }
  0xa0   : > { %4203 = vmatprep.subr.bf16.mxu1 %v6363_v34  ;;  %v6431_v0 = vld [vmem:[%s9198_s1 + $0x458] ss:$24 sps:$4 sm:$0xff]   ;;  %v6436_v34 = vld [vmem:[%s9198_s1 + $0x2ac] ss:$24 sps:$4 sm:$0xff]  }
  0xa2   : > { %4151 = vmatpush1.bf16.msra.mxu0 %v6358_v37  ;;  %v6434_v37 = vld [vmem:[%s9198_s1 + $0x2a8] ss:$24 sps:$4 sm:$0xff]  }
  0xa3   : > { %4204 = vmatpush1.bf16.msra.mxu1 %v6361_v10  ;;  %4152 = vmatprep.subr.bf16.mxu0 %v6366_v38  ;;  %v6437_v10 = vld [vmem:[%s9198_s1 + $0x428] ss:$24 sps:$4 sm:$0xff]   ;;  %v6445_v38 = vld [vmem:[%s9198_s1 + $0x27c] ss:$24 sps:$4 sm:$0xff]  }
  0xa4   : > { %4205 = vmatprep.subr.bf16.mxu1 %v6369_v27  ;;  %v6448_v27 = vld [vmem:[%s9198_s1 + $0x3fc] ss:$24 sps:$4 sm:$0xff]  }
  0xa6   : > { %4153 = vmatpush1.bf16.msra.mxu0 %v6364_v32  ;;  %v6442_v32 = vld [vmem:[#allocation2 + $0x78] ss:$44 sps:$4 sm:$0xff]  }
  0xa7   : > { %4206 = vmatpush1.bf16.msra.mxu1 %v6367_v8  ;;  %4154 = vmatprep.subr.bf16.mxu0 %v6372_v43  ;;  %v6446_v8 = vld [vmem:[%s9198_s1 + $0x3f8] ss:$24 sps:$4 sm:$0xff]   ;;  %v6450_v43 = vld [vmem:[%s9198_s1 + $0x248] ss:$24 sps:$4 sm:$0xff]  }
  0xa8   : > { %4207 = vmatprep.subr.bf16.mxu1 %v6375_v52  ;;  %v6461_v52 = vld [vmem:[%s9198_s1 + $0x39c] ss:$24 sps:$4 sm:$0xff]  }
  0xaa   : > { %4155 = vmatpush1.bf16.msra.mxu0 %v6370_v49  ;;  %v6459_v49 = vld [vmem:[%s9198_s1 + $0x398] ss:$24 sps:$4 sm:$0xff]  }
  0xab   : > { %4208 = vmatpush1.bf16.msra.mxu1 %v6373_v59  ;;  %4156 = vmatprep.subr.bf16.mxu0 %v6378_v58  ;;  %v6464_v59 = vld [vmem:[%s9198_s1 + $0x1ec] ss:$24 sps:$4 sm:$0xff]   ;;  %v6462_v58 = vld [vmem:[%s9198_s1 + $0x1e8] ss:$24 sps:$4 sm:$0xff]  }
  0xac   : > { %4246 = vmatprep.subr.bf16.mxu1 %v6381_v15  ;;  %v6465_v15 = vld [vmem:[%s9198_s1 + $0x368] ss:$24 sps:$4 sm:$0xff]  }
  0xae   : > { %4226 = vmatmul.mubr.bf16.vlgmr.msra.gmra.mxu1 %v6382_v60  ;;  %4157 = vmatpush2.bf16.msra.mxu0 %v6376_v3  ;;  %v6470_v3 = vld [vmem:[%s9198_s1 + $0x1bc] ss:$24 sps:$4 sm:$0xff]  }
  0xaf   : > { %4247 = vmatpush1.bf16.msra.mxu1 %v6379_v11  ;;  %4158 = vmatprep.subr.bf16.mxu0 %v6385_v61  ;;  %v6473_v60 = vld [vmem:[%s9198_s1 + $0x33c] ss:$24 sps:$4 sm:$0xff]   ;;  %v6468_v11 = vld [vmem:[%s9198_s1 + $0x1b8] ss:$24 sps:$4 sm:$0xff]  }
  0xb0   : > { %4248 = vmatprep.subr.bf16.mxu1 %v6388_v51  ;;  %4235 = vmatprep.mubr.bf16.mxu1 %v6999_v30  ;;  %v6471_v61 = vld [vmem:[%s9198_s1 + $0x338] ss:$24 sps:$4 sm:$0xff]   ;;  %v6476_v51 = vld [vmem:[%s9198_s1 + $0x18c] ss:$24 sps:$4 sm:$0xff]  }
  0xb2   : > { %4159 = vmatpush2.bf16.msra.mxu0 %v6383_v20  ;;  %v6479_v20 = vld [vmem:[%s9198_s1 + $0x30c] ss:$24 sps:$4 sm:$0xff]  }
  0xb3   : > { %4249 = vmatpush1.bf16.msra.mxu1 %v6386_v62  ;;  %4160 = vmatprep.subr.bf16.mxu0 %v6391_v63  ;;  %v6474_v62 = vld [vmem:[%s9198_s1 + $0x188] ss:$24 sps:$4 sm:$0xff]  }
  0xb4   : > { %4250 = vmatprep.subr.bf16.mxu1 %v6394_v53  ;;  %v6477_v63 = vld [vmem:[%s9198_s1 + $0x308] ss:$24 sps:$4 sm:$0xff]   ;;  %v6482_v53 = vld [vmem:[%s9198_s1 + $0x5dc] ss:$24 sps:$4 sm:$0xff]  }
  0xb6   : > { %4236 = vmatmul.mubr.bf16.gmra.mxu1 %v6449_v1  ;;  %4161 = vmatpush2.bf16.msra.mxu0 %v6389_v4  ;;  %v6485_v1 = vld [vmem:[%s9198_s1 + $0x75c] ss:$24 sps:$4 sm:$0xff]   ;;  %v6480_v4 = vld [vmem:[%s9198_s1 + $0x5d8] ss:$24 sps:$4 sm:$0xff]  }
  0xb7   : > { %4251 = vmatpush1.bf16.msra.mxu1 %v6392_v2  ;;  %4162 = vmatprep.subr.bf16.mxu0 %v6397_v26  ;;  %v6483_v2 = vld [vmem:[%s9198_s1 + $0x758] ss:$24 sps:$4 sm:$0xff]   ;;  %v6488_v26 = vld [vmem:[%s9198_s1 + $0x5ac] ss:$24 sps:$4 sm:$0xff]  }
  0xb8   : > { %4252 = vmatprep.subr.bf16.mxu1 %v6400_v5  ;;  %4278 = vmatprep.mubr.bf16.mxu1 %v6936_v16  ;;  %v6491_v5 = vld [vmem:[%s9198_s1 + $0x72c] ss:$24 sps:$4 sm:$0xff]   ;;  %v6938_v16 = vld [vmem:[#allocation2 + $0x5c] ss:$44 sps:$4 sm:$0xff]  }
  0xba   : > { %4163 = vmatpush2.bf16.msra.mxu0 %v6395_v7  ;;  %v6486_v7 = vld [vmem:[%s9198_s1 + $0x5a8] ss:$24 sps:$4 sm:$0xff]  }
  0xbb   : > { %4253 = vmatpush1.bf16.msra.mxu1 %v6398_v9  ;;  %4164 = vmatprep.subr.bf16.mxu0 %v6403_v12  ;;  %v6489_v9 = vld [vmem:[%s9198_s1 + $0x728] ss:$24 sps:$4 sm:$0xff]   ;;  %v6494_v12 = vld [vmem:[%s9198_s1 + $0x57c] ss:$24 sps:$4 sm:$0xff]  }
  0xbc   : > { %4254 = vmatprep.subr.bf16.mxu1 %v6406_v36  ;;  %v6497_v36 = vld [vmem:[%s9198_s1 + $0x6fc] ss:$24 sps:$4 sm:$0xff]  }
  0xbe   : > { %4165 = vmatpush2.bf16.msra.mxu0 %v6401_v18  ;;  %v6492_v18 = vld [vmem:[%s9198_s1 + $0x578] ss:$24 sps:$4 sm:$0xff]  }
  0xbf   : > { %4255 = vmatpush1.bf16.msra.mxu1 %v6404_v57  ;;  %4166 = vmatprep.subr.bf16.mxu0 %v6409_v46  ;;  %v6495_v57 = vld [vmem:[%s9198_s1 + $0x6f8] ss:$24 sps:$4 sm:$0xff]   ;;  %v6500_v46 = vld [vmem:[%s9198_s1 + $0x54c] ss:$24 sps:$4 sm:$0xff]  }
  0xc0   : > { %4256 = vmatprep.subr.bf16.mxu1 %v6412_v6  ;;  %v6503_v6 = vld [vmem:[%s9198_s1 + $0x6cc] ss:$24 sps:$4 sm:$0xff]  }
  0xc2   : > { %4167 = vmatpush2.bf16.msra.mxu0 %v6407_v19  ;;  %v6498_v19 = vld [vmem:[%s9198_s1 + $0x548] ss:$24 sps:$4 sm:$0xff]  }
  0xc3   : > { %4257 = vmatpush1.bf16.msra.mxu1 %v6410_v56  ;;  %4168 = vmatprep.subr.bf16.mxu0 %v6415_v21  ;;  %v6501_v56 = vld [vmem:[%s9198_s1 + $0x6c8] ss:$24 sps:$4 sm:$0xff]   ;;  %v6506_v21 = vld [vmem:[%s9198_s1 + $0x51c] ss:$24 sps:$4 sm:$0xff]  }
  0xc4   : > { %4258 = vmatprep.subr.bf16.mxu1 %v6418_v48  ;;  %v6509_v48 = vld [vmem:[%s9198_s1 + $0x69c] ss:$24 sps:$4 sm:$0xff]  }
  0xc6   : > { %4169 = vmatpush2.bf16.msra.mxu0 %v6413_v22  ;;  %v6939_v22 = vld [vmem:[#allocation2 + $0x14] ss:$44 sps:$4 sm:$0xff]  }
  0xc7   : > { %4259 = vmatpush1.bf16.msra.mxu1 %v6416_v50  ;;  %4170 = vmatprep.subr.bf16.mxu0 %v6421_v23  ;;  %v6504_v50 = vld [vmem:[%s9198_s1 + $0x518] ss:$24 sps:$4 sm:$0xff]  }
  0xc8   : > { %4260 = vmatprep.subr.bf16.mxu1 %v6424_v24  ;;  %v6507_v23 = vld [vmem:[%s9198_s1 + $0x698] ss:$24 sps:$4 sm:$0xff]   ;;  %v6512_v24 = vld [vmem:[%s9198_s1 + $0x4ec] ss:$24 sps:$4 sm:$0xff]  }
  0xca   : > { %4171 = vmatpush2.bf16.msra.mxu0 %v6419_v25  ;;  %v6515_v25 = vld [vmem:[%s9198_s1 + $0x66c] ss:$24 sps:$4 sm:$0xff]  }
  0xcb   : > { %4261 = vmatpush1.bf16.msra.mxu1 %v6422_v28  ;;  %4299 = vmatprep.subr.bf16.mxu0 %v6433_v42  ;;  %v6510_v28 = vld [vmem:[%s9198_s1 + $0x4e8] ss:$24 sps:$4 sm:$0xff]   ;;  %v6518_v42 = vld [vmem:[%s9198_s1 + $0x4bc] ss:$24 sps:$4 sm:$0xff]  }
  0xcc   : > { %4262 = vmatprep.subr.bf16.mxu1 %v6430_v29  ;;  %v6513_v29 = vld [vmem:[%s9198_s1 + $0x668] ss:$24 sps:$4 sm:$0xff]  }
  0xcd   : > { %4173 = vmatmul.mubr.bf16.vlgmr.msra.gmra.mxu0 %v6425_v54  ;;  %v6521_v54 = vld [vmem:[%s9198_s1 + $0x63c] ss:$24 sps:$4 sm:$0xff]  }
  0xce   : > { %4300 = vmatpush1.bf16.msra.mxu0 %v6431_v0  ;;  %4182 = vmatprep.mubr.bf16.mxu0 %v6440_v14  ;;  %v6519_v0 = vld [vmem:[%s9198_s1 + $0x638] ss:$24 sps:$4 sm:$0xff]   ;;  %v6522_v14 = vld [vmem:[%s9198_s1 + $0x488] ss:$24 sps:$4 sm:$0xff]  }
  0xcf   : > { %4263 = vmatpush2.bf16.msra.mxu1 %v6428_v31  ;;  %4301 = vmatprep.subr.bf16.mxu0 %v6439_v35  ;;  %v6516_v31 = vld [vmem:[%s9198_s1 + $0x4b8] ss:$24 sps:$4 sm:$0xff]   ;;  %v6527_v35 = vld [vmem:[%s9198_s1 + $0x60c] ss:$24 sps:$4 sm:$0xff]  }
  0xd0   : > { %4264 = vmatprep.subr.bf16.mxu1 %v6436_v34  ;;  %v6524_v34 = vld [vmem:[%s9198_s1 + $0x48c] ss:$24 sps:$4 sm:$0xff]  }
  0xd2   : > { %4302 = vmatpush1.bf16.msra.mxu0 %v6437_v10  ;;  %v6530_v10 = vld [vmem:[%s9198_s1 + $0x8dc] ss:$24 sps:$4 sm:$0xff]  }
  0xd3   : > { %4265 = vmatpush2.bf16.msra.mxu1 %v6434_v37  ;;  %4303 = vmatprep.subr.bf16.mxu0 %v6448_v27  ;;  %v6525_v37 = vld [vmem:[%s9198_s1 + $0x608] ss:$24 sps:$4 sm:$0xff]   ;;  %v6528_v27 = vld [vmem:[%s9198_s1 + $0x8d8] ss:$24 sps:$4 sm:$0xff]  }
  0xd4   : > { %4266 = vmatprep.subr.bf16.mxu1 %v6445_v38  ;;  %v6533_v38 = vld [vmem:[%s9198_s1 + $0xa5c] ss:$24 sps:$4 sm:$0xff]  }
  0xd5   : > { %4183 = vmatmul.mubr.bf16.gmra.mxu0 %v6442_v32  ;;  %v6531_v32 = vld [vmem:[%s9198_s1 + $0xa58] ss:$24 sps:$4 sm:$0xff]  }
  0xd6   : > { %4304 = vmatpush1.bf16.msra.mxu0 %v6446_v8  ;;  %4331 = vmatprep.mubr.bf16.mxu0 %v6937_v13  ;;  %v6539_v8 = vld [vmem:[%s9198_s1 + $0xa2c] ss:$24 sps:$4 sm:$0xff]   ;;  %v6540_v13 = vld [vmem:[%s9198_s1 + $0x878] ss:$24 sps:$4 sm:$0xff]  }
  0xd7   : > { %4267 = vmatpush2.bf16.msra.mxu1 %v6443_v39  ;;  %4305 = vmatprep.subr.bf16.mxu0 %v6455_v41  ;;  %v6536_v39 = vld [vmem:[%s9198_s1 + $0x8ac] ss:$24 sps:$4 sm:$0xff]   ;;  %v6534_v41 = vld [vmem:[%s9198_s1 + $0x8a8] ss:$24 sps:$4 sm:$0xff]  }
  0xd8   : > { %4268 = vmatprep.subr.bf16.mxu1 %v6452_v40  ;;  %v6940_v40 = vld [vmem:[#allocation2 + $0x8] ss:$44 sps:$4 sm:$0xff]  }
  0xda   : > { %4306 = vmatpush1.bf16.msra.mxu0 %v6453_v44  ;;  %v6542_v44 = vld [vmem:[%s9198_s1 + $0x87c] ss:$24 sps:$4 sm:$0xff]  }
  0xdb   : > { %4269 = vmatpush2.bf16.msra.mxu1 %v6450_v43  ;;  %4307 = vmatprep.subr.bf16.mxu0 %v6461_v52  ;;  %v6537_v43 = vld [vmem:[%s9198_s1 + $0xa28] ss:$24 sps:$4 sm:$0xff]   ;;  %v6941_v52 = vld [vmem:[#allocation2 + $0x64] ss:$44 sps:$4 sm:$0xff]  }
  0xdc   : > { %4270 = vmatprep.subr.bf16.mxu1 %v6458_v45  ;;  %v6545_v45 = vld [vmem:[%s9198_s1 + $0x9fc] ss:$24 sps:$4 sm:$0xff]  }
  0xde   : > { %4308 = vmatpush1.bf16.msra.mxu0 %v6459_v49  ;;  %v6548_v49 = vld [vmem:[%s9198_s1 + $0x84c] ss:$24 sps:$4 sm:$0xff]  }
  0xdf   : > { %4271 = vmatpush2.bf16.msra.mxu1 %v6456_v47  ;;  %4309 = vmatprep.subr.bf16.mxu0 %v6467_v55  ;;  %v6543_v47 = vld [vmem:[%s9198_s1 + $0x9f8] ss:$24 sps:$4 sm:$0xff]   ;;  %v6942_v55 = vld [vmem:[#allocation2 + $0x60] ss:$44 sps:$4 sm:$0xff]  }
  0xe0   : > { %4272 = vmatprep.subr.bf16.mxu1 %v6464_v59  ;;  %v6551_v59 = vld [vmem:[%s9198_s1 + $0x9cc] ss:$24 sps:$4 sm:$0xff]  }
  0xe2   : > { %4310 = vmatpush1.bf16.msra.mxu0 %v6465_v15  ;;  %v6549_v15 = vld [vmem:[%s9198_s1 + $0x9c8] ss:$24 sps:$4 sm:$0xff]  }
  0xe3   : > { %4273 = vmatpush2.bf16.msra.mxu1 %v6462_v58  ;;  %4311 = vmatprep.subr.bf16.mxu0 %v6473_v60  ;;  %v6546_v58 = vld [vmem:[%s9198_s1 + $0x848] ss:$24 sps:$4 sm:$0xff]   ;;  %v6557_v60 = vld [vmem:[%s9198_s1 + $0x99c] ss:$24 sps:$4 sm:$0xff]  }
  0xe4   : > { %4274 = vmatprep.subr.bf16.mxu1 %v6470_v3  ;;  %v6554_v3 = vld [vmem:[%s9198_s1 + $0x81c] ss:$24 sps:$4 sm:$0xff]  }
  0xe6   : > { %4312 = vmatpush1.bf16.msra.mxu0 %v6471_v61  ;;  %v6552_v61 = vld [vmem:[%s9198_s1 + $0x818] ss:$24 sps:$4 sm:$0xff]  }
  0xe7   : > { %4275 = vmatpush2.bf16.msra.mxu1 %v6468_v11  ;;  %4313 = vmatprep.subr.bf16.mxu0 %v6479_v20  ;;  %v6943_v11 = vld [vmem:[#allocation2 + $0x1c] ss:$44 sps:$4 sm:$0xff]   ;;  %v6560_v20 = vld [vmem:[%s9198_s1 + $0x7ec] ss:$24 sps:$4 sm:$0xff]  }
  0xe8   : > { %4276 = vmatprep.subr.bf16.mxu1 %v6476_v51  ;;  %v6555_v51 = vld [vmem:[%s9198_s1 + $0x998] ss:$24 sps:$4 sm:$0xff]  }
  0xea   : > { %4314 = vmatpush1.bf16.msra.mxu0 %v6477_v63  ;;  %v6558_v63 = vld [vmem:[%s9198_s1 + $0x7e8] ss:$24 sps:$4 sm:$0xff]  }
  0xeb   : > { %4277 = vmatpush2.bf16.msra.mxu1 %v6474_v62  ;;  %4315 = vmatprep.subr.bf16.mxu0 %v6482_v53  ;;  %v6563_v62 = vld [vmem:[%s9198_s1 + $0x96c] ss:$24 sps:$4 sm:$0xff]   ;;  %v6561_v53 = vld [vmem:[%s9198_s1 + $0x968] ss:$24 sps:$4 sm:$0xff]  }
  0xec   : > { %4352 = vmatprep.subr.bf16.mxu1 %v6485_v1  ;;  %v6566_v1 = vld [vmem:[%s9198_s1 + $0x7bc] ss:$24 sps:$4 sm:$0xff]  }
  0xee   : > { %4279 = vmatmul.mubr.bf16.vlgmr.msra.gmra.mxu1 %v7379_v17  ;;  %4316 = vmatpush2.bf16.msra.mxu0 %v6480_v4  ;;  %v6569_v4 = vld [vmem:[%s9198_s1 + $0x93c] ss:$24 sps:$4 sm:$0xff]  }
  0xef   : > { %4353 = vmatpush1.bf16.msra.mxu1 %v6483_v2  ;;  %4317 = vmatprep.subr.bf16.mxu0 %v6488_v26  ;;  %v6564_v2 = vld [vmem:[%s9198_s1 + $0x7b8] ss:$24 sps:$4 sm:$0xff]  }
  0xf0   : > { %4354 = vmatprep.subr.bf16.mxu1 %v6491_v5  ;;  %4288 = vmatprep.mubr.bf16.mxu1 %v6938_v16  ;;  %v6567_v26 = vld [vmem:[%s9198_s1 + $0x938] ss:$24 sps:$4 sm:$0xff]   ;;  %v6572_v5 = vld [vmem:[%s9198_s1 + $0x78c] ss:$24 sps:$4 sm:$0xff]   ;;  %v6581_v16 = vld [vmem:[%s9198_s1 + $0xd5c] ss:$24 sps:$4 sm:$0xff]  }
  0xf2   : > { %4318 = vmatpush2.bf16.msra.mxu0 %v6486_v7  ;;  %v6575_v7 = vld [vmem:[%s9198_s1 + $0x90c] ss:$24 sps:$4 sm:$0xff]  }
  0xf3   : > { %4355 = vmatpush1.bf16.msra.mxu1 %v6489_v9  ;;  %4319 = vmatprep.subr.bf16.mxu0 %v6494_v12  ;;  %v6570_v9 = vld [vmem:[%s9198_s1 + $0x788] ss:$24 sps:$4 sm:$0xff]  }
  0xf4   : > { %4356 = vmatprep.subr.bf16.mxu1 %v6497_v36  ;;  %v6573_v12 = vld [vmem:[%s9198_s1 + $0x908] ss:$24 sps:$4 sm:$0xff]   ;;  %v6578_v36 = vld [vmem:[%s9198_s1 + $0xbdc] ss:$24 sps:$4 sm:$0xff]  }
  0xf6   : > { %4289 = vmatmul.mubr.bf16.gmra.mxu1 %v7616_v33  ;;  %4320 = vmatpush2.bf16.msra.mxu0 %v6492_v18  ;;  %v6576_v18 = vld [vmem:[%s9198_s1 + $0xbd8] ss:$24 sps:$4 sm:$0xff]  }
  0xf7   : > { %4357 = vmatpush1.bf16.msra.mxu1 %v6495_v57  ;;  %4321 = vmatprep.subr.bf16.mxu0 %v6500_v46  ;;  %v6579_v57 = vld [vmem:[%s9198_s1 + $0xd58] ss:$24 sps:$4 sm:$0xff]   ;;  %v6584_v46 = vld [vmem:[%s9198_s1 + $0xbac] ss:$24 sps:$4 sm:$0xff]  }
  0xf8   : > { %4358 = vmatprep.subr.bf16.mxu1 %v6503_v6  ;;  %4384 = vmatprep.mubr.bf16.mxu1 %v6939_v22  ;;  %v6587_v6 = vld [vmem:[%s9198_s1 + $0xd2c] ss:$24 sps:$4 sm:$0xff]   ;;  %v6593_v22 = vld [vmem:[%s9198_s1 + $0xcfc] ss:$24 sps:$4 sm:$0xff]  }
  0xfa   : > { %4322 = vmatpush2.bf16.msra.mxu0 %v6498_v19  ;;  %v6944_v19 = vld [vmem:[#allocation2 + $0x10] ss:$44 sps:$4 sm:$0xff]  }
  0xfb   : > { %4359 = vmatpush1.bf16.msra.mxu1 %v6501_v56  ;;  %4323 = vmatprep.subr.bf16.mxu0 %v6506_v21  ;;  %v6582_v56 = vld [vmem:[%s9198_s1 + $0xba8] ss:$24 sps:$4 sm:$0xff]  }
  0xfc   : > { %4360 = vmatprep.subr.bf16.mxu1 %v6509_v48  ;;  %v6585_v21 = vld [vmem:[%s9198_s1 + $0xd28] ss:$24 sps:$4 sm:$0xff]   ;;  %v6590_v48 = vld [vmem:[%s9198_s1 + $0xb7c] ss:$24 sps:$4 sm:$0xff]  }
  0xfe   : > { %4324 = vmatpush2.bf16.msra.mxu0 %v6504_v50  ;;  %v6945_v50 = vld [vmem:[#allocation2 + $0x6c] ss:$44 sps:$4 sm:$0xff]  }
  0xff   : > { %4361 = vmatpush1.bf16.msra.mxu1 %v6507_v23  ;;  %4325 = vmatprep.subr.bf16.mxu0 %v6512_v24  ;;  %v6588_v23 = vld [vmem:[%s9198_s1 + $0xb78] ss:$24 sps:$4 sm:$0xff]  }
 0x100   : > { %4362 = vmatprep.subr.bf16.mxu1 %v6515_v25  ;;  %v6591_v24 = vld [vmem:[%s9198_s1 + $0xcf8] ss:$24 sps:$4 sm:$0xff]   ;;  %v6596_v25 = vld [vmem:[%s9198_s1 + $0xb4c] ss:$24 sps:$4 sm:$0xff]  }
 0x102   : > { %4326 = vmatpush2.bf16.msra.mxu0 %v6510_v28  ;;  %v6599_v28 = vld [vmem:[%s9198_s1 + $0xccc] ss:$24 sps:$4 sm:$0xff]  }
 0x103   : > { %4363 = vmatpush1.bf16.msra.mxu1 %v6513_v29  ;;  %4327 = vmatprep.subr.bf16.mxu0 %v6518_v42  ;;  %v6594_v29 = vld [vmem:[%s9198_s1 + $0xb48] ss:$24 sps:$4 sm:$0xff]  }
 0x104   : > { %4364 = vmatprep.subr.bf16.mxu1 %v6521_v54  ;;  %v6946_v42 = vld [vmem:[#allocation2 + $0x68] ss:$44 sps:$4 sm:$0xff]  }
 0x105   : > { %v6597_v54 = vld [vmem:[%s9198_s1 + $0xcc8] ss:$24 sps:$4 sm:$0xff]  }
 0x106   : > { %4328 = vmatpush2.bf16.msra.mxu0 %v6516_v31  ;;  %v6602_v31 = vld [vmem:[%s9198_s1 + $0xb1c] ss:$24 sps:$4 sm:$0xff]  }
 0x107   : > { %4365 = vmatpush1.bf16.msra.mxu1 %v6519_v0  ;;  %4329 = vmatprep.subr.bf16.mxu0 %v6524_v34  ;;  %v6605_v0 = vld [vmem:[%s9198_s1 + $0xc9c] ss:$24 sps:$4 sm:$0xff]   ;;  %v6947_v34 = vld [vmem:[#allocation2 + $0x24] ss:$44 sps:$4 sm:$0xff]  }
 0x108   : > { %4366 = vmatprep.subr.bf16.mxu1 %v6527_v35  ;;  %v6600_v35 = vld [vmem:[%s9198_s1 + $0xb18] ss:$24 sps:$4 sm:$0xff]  }
 0x10a   : > { %4330 = vmatpush2.bf16.msra.mxu0 %v6522_v14  ;;  %v6603_v14 = vld [vmem:[%s9198_s1 + $0xc98] ss:$24 sps:$4 sm:$0xff]  }
 0x10b   : > { %4367 = vmatpush1.bf16.msra.mxu1 %v6525_v37  ;;  %4405 = vmatprep.subr.bf16.mxu0 %v6533_v38  ;;  %v6608_v37 = vld [vmem:[%s9198_s1 + $0xaec] ss:$24 sps:$4 sm:$0xff]   ;;  %v6606_v38 = vld [vmem:[%s9198_s1 + $0xae8] ss:$24 sps:$4 sm:$0xff]  }
 0x10c   : > { %4368 = vmatprep.subr.bf16.mxu1 %v6530_v10  ;;  %v6611_v10 = vld [vmem:[%s9198_s1 + $0xc6c] ss:$24 sps:$4 sm:$0xff]  }
 0x10d   : > { %4332 = vmatmul.mubr.bf16.vlgmr.msra.gmra.mxu0 %v6940_v40  ;;  %v6615_v40 = vld [vmem:[%s9198_s1 + $0xc38] ss:$24 sps:$4 sm:$0xff]  }
 0x10e   : > { %4406 = vmatpush1.bf16.msra.mxu0 %v6531_v32  ;;  %4341 = vmatprep.mubr.bf16.mxu0 %v6941_v52  ;;  %v6614_v32 = vld [vmem:[%s9198_s1 + $0xabc] ss:$24 sps:$4 sm:$0xff]  }
 0x10f   : > { %4369 = vmatpush2.bf16.msra.mxu1 %v6528_v27  ;;  %4407 = vmatprep.subr.bf16.mxu0 %v6539_v8  ;;  %v6609_v27 = vld [vmem:[%s9198_s1 + $0xc68] ss:$24 sps:$4 sm:$0xff]   ;;  %v6612_v8 = vld [vmem:[%s9198_s1 + $0xab8] ss:$24 sps:$4 sm:$0xff]   ;;  %v6626_v52 = vld [vmem:[%s9198_s1 + $0xedc] ss:$24 sps:$4 sm:$0xff]  }
 0x110   : > { %4370 = vmatprep.subr.bf16.mxu1 %v6536_v39  ;;  %v6617_v39 = vld [vmem:[%s9198_s1 + $0xc3c] ss:$24 sps:$4 sm:$0xff]  }
 0x112   : > { %4408 = vmatpush1.bf16.msra.mxu0 %v6537_v43  ;;  %v6623_v43 = vld [vmem:[%s9198_s1 + $0xc0c] ss:$24 sps:$4 sm:$0xff]  }
 0x113   : > { %4371 = vmatpush2.bf16.msra.mxu1 %v6534_v41  ;;  %4409 = vmatprep.subr.bf16.mxu0 %v6545_v45  ;;  %v6620_v41 = vld [vmem:[%s9198_s1 + $0xa8c] ss:$24 sps:$4 sm:$0xff]   ;;  %v6621_v45 = vld [vmem:[%s9198_s1 + $0xc08] ss:$24 sps:$4 sm:$0xff]  }
 0x114   : > { %4372 = vmatprep.subr.bf16.mxu1 %v6542_v44  ;;  %v6618_v44 = vld [vmem:[%s9198_s1 + $0xa88] ss:$24 sps:$4 sm:$0xff]  }
 0x115   : > { %4342 = vmatmul.mubr.bf16.gmra.mxu0 %v6942_v55  ;;  %v6632_v55 = vld [vmem:[%s9198_s1 + $0xeac] ss:$24 sps:$4 sm:$0xff]  }
 0x116   : > { %4410 = vmatpush1.bf16.msra.mxu0 %v6543_v47  ;;  %4437 = vmatprep.mubr.bf16.mxu0 %v6943_v11  ;;  %v6629_v47 = vld [vmem:[%s9198_s1 + $0x105c] ss:$24 sps:$4 sm:$0xff]   ;;  %v6633_v11 = vld [vmem:[%s9198_s1 + $0x1028] ss:$24 sps:$4 sm:$0xff]  }
 0x117   : > { %4373 = vmatpush2.bf16.msra.mxu1 %v6540_v13  ;;  %4411 = vmatprep.subr.bf16.mxu0 %v6551_v59  ;;  %v8280_v13 = vpop.f32.mrf.mxu1  ;;  %v6627_v59 = vld [vmem:[%s9198_s1 + $0x1058] ss:$24 sps:$4 sm:$0xff]  }
 0x118   : > { %4374 = vmatprep.subr.bf16.mxu1 %v6548_v49  ;;  %v6624_v49 = vld [vmem:[%s9198_s1 + $0xed8] ss:$24 sps:$4 sm:$0xff]  }
 0x11a   : > { %4412 = vmatpush1.bf16.msra.mxu0 %v6549_v15  ;;  %v8297_v15 = vpop.f32.mrf.mxu1 }
 0x11b   : > { %4375 = vmatpush2.bf16.msra.mxu1 %v6546_v58  ;;  %4413 = vmatprep.subr.bf16.mxu0 %v6557_v60  ;;  %v6635_v58 = vld [vmem:[%s9198_s1 + $0x102c] ss:$24 sps:$4 sm:$0xff]  }
 0x11c   : > { %4376 = vmatprep.subr.bf16.mxu1 %v6554_v3  ;;  %v6630_v3 = vld [vmem:[%s9198_s1 + $0xea8] ss:$24 sps:$4 sm:$0xff]   ;;  %v6948_v60 = vld [vmem:[#allocation2 + $0x18] ss:$44 sps:$4 sm:$0xff]  }
 0x11e   : > { %4414 = vmatpush1.bf16.msra.mxu0 %v6555_v51  ;;  %v8308_v51 = vpop.f32.mrf.mxu1 }
 0x11f   : > { %4377 = vmatpush2.bf16.msra.mxu1 %v6552_v61  ;;  %4415 = vmatprep.subr.bf16.mxu0 %v6563_v62  ;;  %v6638_v61 = vld [vmem:[%s9198_s1 + $0xe7c] ss:$24 sps:$4 sm:$0xff]  }
 0x120   : > { %4378 = vmatprep.subr.bf16.mxu1 %v6560_v20  ;;  %v6641_v20 = vld [vmem:[%s9198_s1 + $0xffc] ss:$24 sps:$4 sm:$0xff]  }
 0x121   : > { %v6949_v62 = vld [vmem:[#allocation2 + $0x74] ss:$44 sps:$4 sm:$0xff]  }
 0x122   : > { %4416 = vmatpush1.bf16.msra.mxu0 %v6561_v53  ;;  %v6639_v53 = vld [vmem:[%s9198_s1 + $0xff8] ss:$24 sps:$4 sm:$0xff]  }
 0x123   : > { %4379 = vmatpush2.bf16.msra.mxu1 %v6558_v63  ;;  %4417 = vmatprep.subr.bf16.mxu0 %v6569_v4  ;;  %v6636_v63 = vld [vmem:[%s9198_s1 + $0xe78] ss:$24 sps:$4 sm:$0xff]   ;;  %v8322_v4 = vpop.f32.mrf.mxu0 }
 0x124   : > { %4380 = vmatprep.subr.bf16.mxu1 %v6566_v1  ;;  %v6644_v1 = vld [vmem:[%s9198_s1 + $0xe4c] ss:$24 sps:$4 sm:$0xff]  }
 0x126   : > { %4418 = vmatpush1.bf16.msra.mxu0 %v6567_v26  ;;  %v6647_v26 = vld [vmem:[%s9198_s1 + $0xfcc] ss:$24 sps:$4 sm:$0xff]  }
 0x127   : > { %4381 = vmatpush2.bf16.msra.mxu1 %v6564_v2  ;;  %4419 = vmatprep.subr.bf16.mxu0 %v6575_v7  ;;  %v8324_v2 = vpop.f32.mrf.mxu1  ;;  %v6950_v7 = vld [vmem:[#allocation2 + $0x70] ss:$44 sps:$4 sm:$0xff]  }
 0x128   : > { %4382 = vmatprep.subr.bf16.mxu1 %v6572_v5 }
 0x12a   : > { %4420 = vmatpush1.bf16.msra.mxu0 %v6573_v12  ;;  %v8329_v5 = vpop.f32.mrf.mxu1  ;;  %v6645_v12 = vld [vmem:[%s9198_s1 + $0xfc8] ss:$24 sps:$4 sm:$0xff]  }
 0x12b   : > { %4383 = vmatpush2.bf16.msra.mxu1 %v6570_v9  ;;  %4421 = vmatprep.subr.bf16.mxu0 %v6578_v36  ;;  %v6642_v9 = vld [vmem:[%s9198_s1 + $0xe48] ss:$24 sps:$4 sm:$0xff]   ;;  %v8337_v36 = vpop.f32.mrf.mxu0 }
 0x12c   : > { %4458 = vmatprep.subr.bf16.mxu1 %v6581_v16  ;;  %v6650_v16 = vld [vmem:[%s9198_s1 + $0xe1c] ss:$24 sps:$4 sm:$0xff]  }
 0x12e   : > { %4385 = vmatmul.mubr.bf16.vlgmr.msra.gmra.mxu1 %v6944_v19  ;;  %4422 = vmatpush2.bf16.msra.mxu0 %v6576_v18  ;;  %v6653_v18 = vld [vmem:[%s9198_s1 + $0xf9c] ss:$24 sps:$4 sm:$0xff]   ;;  %v8354_v19 = vpop.f32.mrf.mxu0 }
 0x12f   : > { %4459 = vmatpush1.bf16.msra.mxu1 %v6579_v57  ;;  %4423 = vmatprep.subr.bf16.mxu0 %v6584_v46  ;;  %v8346_v57 = vpop.f32.mrf.mxu1  ;;  %v6648_v46 = vld [vmem:[%s9198_s1 + $0xe18] ss:$24 sps:$4 sm:$0xff]  }
 0x130   : > { %4460 = vmatprep.subr.bf16.mxu1 %v6587_v6  ;;  %4394 = vmatprep.mubr.bf16.mxu1 %v6945_v50  ;;  %v6651_v6 = vld [vmem:[%s9198_s1 + $0xf98] ss:$24 sps:$4 sm:$0xff]   ;;  %v6657_v50 = vld [vmem:[%s9198_s1 + $0xf68] ss:$24 sps:$4 sm:$0xff]  }
 0x132   : > { %4424 = vmatpush2.bf16.msra.mxu0 %v6582_v56  ;;  %v6656_v56 = vld [vmem:[%s9198_s1 + $0xdec] ss:$24 sps:$4 sm:$0xff]  }
 0x133   : > { %4461 = vmatpush1.bf16.msra.mxu1 %v6585_v21  ;;  %4425 = vmatprep.subr.bf16.mxu0 %v6590_v48  ;;  %v6659_v21 = vld [vmem:[%s9198_s1 + $0xf6c] ss:$24 sps:$4 sm:$0xff]   ;;  %v8362_v48 = vpop.f32.mrf.mxu1 }
 0x134   : > { %4462 = vmatprep.subr.bf16.mxu1 %v6593_v22  ;;  %v6654_v22 = vld [vmem:[%s9198_s1 + $0xde8] ss:$24 sps:$4 sm:$0xff]  }
 0x136   : > { %4395 = vmatmul.mubr.bf16.gmra.mxu1 %v6946_v42  ;;  %4426 = vmatpush2.bf16.msra.mxu0 %v6588_v23  ;;  %v8370_v23 = vpop.f32.mrf.mxu0  ;;  %v6660_v42 = vld [vmem:[%s9198_s1 + $0xdb8] ss:$24 sps:$4 sm:$0xff]  }
 0x137   : > { %4463 = vmatpush1.bf16.msra.mxu1 %v6591_v24  ;;  %4427 = vmatprep.subr.bf16.mxu0 %v6596_v25  ;;  %v6662_v24 = vld [vmem:[%s9198_s1 + $0xdbc] ss:$24 sps:$4 sm:$0xff]  }
 0x138   : > { %4464 = vmatprep.subr.bf16.mxu1 %v6599_v28  ;;  %4490 = vmatprep.mubr.bf16.mxu1 %v6947_v34  ;;  %v6665_v25 = vld [vmem:[%s9198_s1 + $0xf3c] ss:$24 sps:$4 sm:$0xff]   ;;  %v8378_v28 = vpop.f32.mrf.mxu0  ;;  %v6671_v34 = vld [vmem:[%s9198_s1 + $0xf0c] ss:$24 sps:$4 sm:$0xff]  }
 0x13a   : > { %4428 = vmatpush2.bf16.msra.mxu0 %v6594_v29  ;;  %v8380_v29 = vpop.f32.mrf.mxu1 }
 0x13b   : > { %4465 = vmatpush1.bf16.msra.mxu1 %v6597_v54  ;;  %4429 = vmatprep.subr.bf16.mxu0 %v6602_v31  ;;  %v6663_v54 = vld [vmem:[%s9198_s1 + $0xf38] ss:$24 sps:$4 sm:$0xff]  }
 0x13c   : > { %4466 = vmatprep.subr.bf16.mxu1 %v6605_v0  ;;  %v6668_v0 = vld [vmem:[%s9198_s1 + $0xd8c] ss:$24 sps:$4 sm:$0xff]  }
 0x13e   : > { %4430 = vmatpush2.bf16.msra.mxu0 %v6600_v35  ;;  %v8396_v35 = vpop.f32.mrf.mxu0 }
 0x13f   : > { %4467 = vmatpush1.bf16.msra.mxu1 %v6603_v14  ;;  %4431 = vmatprep.subr.bf16.mxu0 %v6608_v37  ;;  %v6666_v14 = vld [vmem:[%s9198_s1 + $0xd88] ss:$24 sps:$4 sm:$0xff]  }
 0x140   : > { %4468 = vmatprep.subr.bf16.mxu1 %v6611_v10  ;;  %v6669_v37 = vld [vmem:[%s9198_s1 + $0xf08] ss:$24 sps:$4 sm:$0xff]  }
 0x142   : > { %4432 = vmatpush2.bf16.msra.mxu0 %v6606_v38  ;;  %v6674_v38 = vld [vmem:[%s9198_s1 + $0x164] ss:$24 sps:$4 sm:$0xff]  }
 0x143   : > { %4469 = vmatpush1.bf16.msra.mxu1 %v6609_v27  ;;  %4433 = vmatprep.subr.bf16.mxu0 %v6614_v32  ;;  %v6677_v27 = vld [vmem:[%s9198_s1 + $0x464] ss:$24 sps:$4 sm:$0xff]   ;;  %v6672_v32 = vld [vmem:[%s9198_s1 + $0x160] ss:$24 sps:$4 sm:$0xff]  }
 0x144   : > { %4470 = vmatprep.subr.bf16.mxu1 %v6617_v39  ;;  %v6675_v39 = vld [vmem:[%s9198_s1 + $0x460] ss:$24 sps:$4 sm:$0xff]  }
 0x146   : > { %4434 = vmatpush2.bf16.msra.mxu0 %v6612_v8  ;;  %v8418_v8 = vpop.f32.mrf.mxu0 }
 0x147   : > { %4471 = vmatpush1.bf16.msra.mxu1 %v6615_v40  ;;  %4435 = vmatprep.subr.bf16.mxu0 %v6620_v41  ;;  %v6680_v40 = vld [vmem:[%s9198_s1 + $0x134] ss:$24 sps:$4 sm:$0xff]  }
 0x148   : > { %4472 = vmatprep.subr.bf16.mxu1 %v6623_v43  ;;  %v6683_v41 = vld [vmem:[%s9198_s1 + $0x434] ss:$24 sps:$4 sm:$0xff]  }
 0x14a   : > { %4436 = vmatpush2.bf16.msra.mxu0 %v6618_v44  ;;  %v6678_v44 = vld [vmem:[%s9198_s1 + $0x130] ss:$24 sps:$4 sm:$0xff]  }
 0x14b   : > { %4473 = vmatpush1.bf16.msra.mxu1 %v6621_v45  ;;  %4511 = vmatprep.subr.bf16.mxu0 %v6629_v47  ;;  %v6681_v45 = vld [vmem:[%s9198_s1 + $0x430] ss:$24 sps:$4 sm:$0xff]   ;;  %v6951_v47 = vld [vmem:[#allocation2 + $0x20] ss:$44 sps:$4 sm:$0xff]  }
 0x14c   : > { %4474 = vmatprep.subr.bf16.mxu1 %v6626_v52  ;;  %v8434_v52 = vpop.f32.mrf.mxu0 }
 0x14d   : > { %4438 = vmatmul.mubr.bf16.vlgmr.msra.gmra.mxu0 %v6948_v60  ;;  %v6953_v60 = vld [vmem:[#allocation2 + $0x7c] ss:$44 sps:$4 sm:$0xff]  }
 0x14e   : > { %4512 = vmatpush1.bf16.msra.mxu0 %v6627_v59  ;;  %4447 = vmatprep.mubr.bf16.mxu0 %v6949_v62  ;;  %v8388_v31 = vpop.f32.mrf.mxu1  ;;  %v6686_v59 = vld [vmem:[%s9198_s1 + $0x104] ss:$24 sps:$4 sm:$0xff]  }
 0x14f   : > { %4475 = vmatpush2.bf16.msra.mxu1 %v6624_v49  ;;  %4513 = vmatprep.subr.bf16.mxu0 %v6635_v58  ;;  %v8436_v49 = vld [vmem:[#allocation2 + $0x28] ss:$44 sps:$4 sm:$0xff]  }
 0x150   : > { %4476 = vmatprep.subr.bf16.mxu1 %v6632_v55  ;;  %v8404_v10 = vpop.f32.mrf.mxu1  ;;  %v8442_v55 = vpop.f32.mrf.mxu0 }
 0x152   : > { %4514 = vmatpush1.bf16.msra.mxu0 %v6633_v11  ;;  %v8426_v43 = vpop.f32.mrf.mxu1  ;;  %v6684_v11 = vld [vmem:[%s9198_s1 + $0x100] ss:$24 sps:$4 sm:$0xff]  }
 0x153   : > { %4477 = vmatpush2.bf16.msra.mxu1 %v6630_v3  ;;  %4515 = vmatprep.subr.bf16.mxu0 %v6641_v20  ;;  %v6689_v3 = vld [vmem:[%s9198_s1 + $0x404] ss:$24 sps:$4 sm:$0xff]   ;;  %v8456_v20 = vpop.f32.mrf.mxu0 }
 0x154   : > { %4478 = vmatprep.subr.bf16.mxu1 %v6638_v61  ;;  %v8444_v58 = vpop.f32.mrf.mxu1  ;;  %v6687_v61 = vld [vmem:[%s9198_s1 + $0x400] ss:$24 sps:$4 sm:$0xff]  }
 0x155   : > { %4448 = vmatmul.mubr.bf16.gmra.mxu0 %v6950_v7  ;;  %v6690_v7 = vld [vmem:[%s9198_s1 + $0xd0] ss:$24 sps:$4 sm:$0xff]  }
 0x156   : > { %4516 = vmatpush1.bf16.msra.mxu0 %v6639_v53  ;;  %4543 = vmatprep.mubr.bf16.mxu0 %v6999_v30  ;;  %v8458_v62 = vpop.f32.mrf.mxu1  ;;  %v6695_v53 = vld [vmem:[%s9198_s1 + $0x3d4] ss:$24 sps:$4 sm:$0xff]  }
 0x157   : > { %4479 = vmatpush2.bf16.msra.mxu1 %v6636_v63  ;;  %4517 = vmatprep.subr.bf16.mxu0 %v6647_v26  ;;  %v6692_v63 = vld [vmem:[%s9198_s1 + $0xd4] ss:$24 sps:$4 sm:$0xff]  }
 0x158   : > { %4480 = vmatprep.subr.bf16.mxu1 %v6644_v1  ;;  %v6954_v1 = vld [vmem:[#allocation2 + $0x78] ss:$44 sps:$4 sm:$0xff]   ;;  %v8466_v26 = vld [vmem:[#allocation2 + $0x80] ss:$44 sps:$4 sm:$0xff]  }
 0x15a   : > { %4518 = vmatpush1.bf16.msra.mxu0 %v6645_v12  ;;  %v8475_v12 = vpop.f32.mrf.mxu0 }
 0x15b   : > { %4481 = vmatpush2.bf16.msra.mxu1 %v6642_v9  ;;  %4519 = vmatprep.subr.bf16.mxu0 %v6653_v18  ;;  %v6693_v9 = vld [vmem:[%s9198_s1 + $0x3d0] ss:$24 sps:$4 sm:$0xff]   ;;  %v6698_v18 = vld [vmem:[%s9198_s1 + $0xa4] ss:$24 sps:$4 sm:$0xff]  }
 0x15c   : > { %4482 = vmatprep.subr.bf16.mxu1 %v6650_v16  ;;  %v8477_v16 = vpop.f32.mrf.mxu1 }
 0x15e   : > { %4520 = vmatpush1.bf16.msra.mxu0 %v6651_v6  ;;  %v6956_v6 = vld [vmem:[#allocation2 + $0x4] ss:$44 sps:$4 sm:$0xff]  }
 0x15f   : > { %4483 = vmatpush2.bf16.msra.mxu1 %v6648_v46  ;;  %4521 = vmatprep.subr.bf16.mxu0 %v6659_v21  ;;  %v6701_v46 = vld [vmem:[%s9198_s1 + $0x3a4] ss:$24 sps:$4 sm:$0xff]   ;;  %v6696_v21 = vld [vmem:[%s9198_s1 + $0xa0] ss:$24 sps:$4 sm:$0xff]  }
 0x160   : > { %4484 = vmatprep.subr.bf16.mxu1 %v6656_v56  ;;  %v6957_v56 = vld [vmem:[#allocation2 + $0xc] ss:$44 sps:$4 sm:$0xff]  }
 0x162   : > { %4522 = vmatpush1.bf16.msra.mxu0 %v6657_v50  ;;  %v8491_v50 = vpop.f32.mrf.mxu0 }
 0x163   : > { %4485 = vmatpush2.bf16.msra.mxu1 %v6654_v22  ;;  %4523 = vmatprep.subr.bf16.mxu0 %v6665_v25  ;;  %v6699_v22 = vld [vmem:[%s9198_s1 + $0x3a0] ss:$24 sps:$4 sm:$0xff]   ;;  %v6704_v25 = vld [vmem:[%s9198_s1 + $0x74] ss:$24 sps:$4 sm:$0xff]  }
 0x164   : > { %4486 = vmatprep.subr.bf16.mxu1 %v6662_v24  ;;  %v8493_v24 = vpop.f32.mrf.mxu1 }
 0x166   : > { %4524 = vmatpush1.bf16.msra.mxu0 %v6663_v54  ;;  %v6702_v54 = vld [vmem:[%s9198_s1 + $0x70] ss:$24 sps:$4 sm:$0xff]  }
 0x167   : > { %4487 = vmatpush2.bf16.msra.mxu1 %v6660_v42  ;;  %4525 = vmatprep.subr.bf16.mxu0 %v6671_v34  ;;  %v6707_v42 = vld [vmem:[%s9198_s1 + $0x374] ss:$24 sps:$4 sm:$0xff]   ;;  %v4078_v34 = vpop.f32.mrf.mxu0 }
 0x168   : > { %4488 = vmatprep.subr.bf16.mxu1 %v6668_v0  ;;  %v6705_v0 = vld [vmem:[%s9198_s1 + $0x370] ss:$24 sps:$4 sm:$0xff]  }
 0x16a   : > { %4526 = vmatpush1.bf16.msra.mxu0 %v6669_v37  ;;  %v6710_v37 = vld [vmem:[%s9198_s1 + $0x44] ss:$24 sps:$4 sm:$0xff]  }
 0x16b   : > { %4489 = vmatpush2.bf16.msra.mxu1 %v6666_v14  ;;  %4564 = vmatprep.subr.bf16.mxu0 %v6674_v38  ;;  %v8507_v14 = vpop.f32.mrf.mxu1  ;;  %v6713_v38 = vld [vmem:[%s9198_s1 + $0x344] ss:$24 sps:$4 sm:$0xff]  }
 0x16c   : > { %4617 = vmatprep.subr.bf16.mxu1 %v6677_v27 }
 0x16d   : > { %4544 = vmatmul.mubr.bf16.vlgmr.msra.gmra.mxu0 %v8436_v49 }
 0x16e   : > { %4491 = vmatmul.mubr.bf16.vlgmr.msra.gmra.mxu1 %v6951_v47  ;;  %4565 = vmatpush1.bf16.msra.mxu0 %v6672_v32  ;;  %v8515_v27 = vpop.f32.mrf.mxu1  ;;  %v4884_v32 = vlaneseq }
 0x16f   : > { %4618 = vmatpush1.bf16.msra.mxu1 %v6675_v39  ;;  %4566 = vmatprep.subr.bf16.mxu0 %v6680_v40  ;;  %v6708_v39 = vld [vmem:[%s9198_s1 + $0x40] ss:$24 sps:$4 sm:$0xff]  }
 0x170   : > { %4619 = vmatprep.subr.bf16.mxu1 %v6683_v41  ;;  %4500 = vmatprep.mubr.bf16.mxu1 %v6953_v60  ;;  %v6711_v40 = vld [vmem:[%s9198_s1 + $0x340] ss:$24 sps:$4 sm:$0xff]   ;;  %v4080_v41 = vpop.f32.mrf.mxu0  ;;  %v4229_v47 = vpop.f32.mrf.mxu1  ;;  %v6714_v60 = vld [vmem:[%s9198_s1 + $0x10] ss:$24 sps:$4 sm:$0xff]   ;;  %vm5125_vm5 = vcmp.lt.s32.totalorder %v4884_v32, 768 }
 0x171   : > { %4553 = vmatprep.mubr.bf16.mxu0 %v6999_v30 }
 0x172   : > { %4567 = vmatpush1.bf16.msra.mxu0 %v6678_v44  ;;  %v6716_v44 = vld [vmem:[%s9198_s1 + $0x14] ss:$24 sps:$4 sm:$0xff]  }
 0x173   : > { %4620 = vmatpush1.bf16.msra.mxu1 %v6681_v45  ;;  %4568 = vmatprep.subr.bf16.mxu0 %v6686_v59  ;;  %v6719_v45 = vld [vmem:[%s9198_s1 + $0x314] ss:$24 sps:$4 sm:$0xff]   ;;  %v8530_v59 = vshrl.u32 %v4884_v32, 7 }
 0x174   : > { %4621 = vmatprep.subr.bf16.mxu1 %v6689_v3  ;;  %v4016_v3 = vadd.f32 %v8280_v13, %v8322_v4  ;;  %v6725_v13 = vld [vmem:[%s9198_s1 + $0x5e4] ss:$24 sps:$4 sm:$0xff]   ;;  %v4018_v4 = vadd.f32 %v8297_v15, %v8337_v36  ;;  %v6720_v15 = vld [vmem:[%s9198_s1 + $0x2e0] ss:$24 sps:$4 sm:$0xff]  }
 0x175   : > { %4554 = vmatmul.mubr.bf16.gmra.mxu0 %v8466_v26  ;;  %v6723_v36 = vld [vmem:[%s9198_s1 + $0x5e0] ss:$24 sps:$4 sm:$0xff]  }
 0x176   : > { %4501 = vmatmul.mubr.bf16.gmra.mxu1 %v6954_v1  ;;  %4569 = vmatpush1.bf16.msra.mxu0 %v6684_v11  ;;  %v6717_v11 = vld [vmem:[%s9198_s1 + $0x310] ss:$24 sps:$4 sm:$0xff]   ;;  %v4886_v1 = vsub.s32 0, %v8530_v59 }
 0x177   : > { %4622 = vmatpush1.bf16.msra.mxu1 %v6687_v61  ;;  %4570 = vmatprep.subr.bf16.mxu0 %v6692_v63  ;;  %v4082_v61 = vpop.f32.mrf.mxu0  ;;  %v6722_v63 = vld [vmem:[%s9198_s1 + $0x2e4] ss:$24 sps:$4 sm:$0xff]  }
 0x178   : > { %4623 = vmatprep.subr.bf16.mxu1 %v6695_v53  ;;  %4596 = vmatprep.mubr.bf16.mxu0 %v6956_v6  ;;  %v4069_v53 = vadd.f32 %v8442_v55, %v4016_v3 }
 0x179   : > { %4649 = vmatprep.mubr.bf16.mxu1 %v6957_v56  ;;  %v4084_v55 = vpop.f32.mrf.mxu0 }
 0x17a   : > { %4571 = vmatpush1.bf16.msra.mxu0 %v6690_v7  ;;  %v4231_v7 = vpop.f32.mrf.mxu1  ;;  %v4122_v6 = vadd.f32 %v8388_v31, %v4069_v53 }
 0x17b   : > { %4624 = vmatpush1.bf16.msra.mxu1 %v6693_v9  ;;  %4572 = vmatprep.subr.bf16.mxu0 %v6698_v18  ;;  %v4020_v9 = vadd.f32 %v8308_v51, %v8354_v19  ;;  %v4071_v18 = vadd.f32 %v8456_v20, %v4018_v4  ;;  %v6728_v51 = vld [vmem:[%s9198_s1 + $0x2b4] ss:$24 sps:$4 sm:$0xff]   ;;  %v4022_v20 = vadd.f32 %v8324_v2, %v8370_v23  ;;  %v6726_v2 = vld [vmem:[%s9198_s1 + $0x2b0] ss:$24 sps:$4 sm:$0xff]  }
 0x17c   : > { %4625 = vmatprep.subr.bf16.mxu1 %v6701_v46  ;;  %v8556_v46 = vld [vmem:[%s9199_s2] sm:$0x3f]  ;;  %v6731_v19 = vld [vmem:[%s9198_s1 + $0x5b4] ss:$24 sps:$4 sm:$0xff]   ;;  %v4028_v23 = vadd.f32 %v8346_v57, %v8396_v35 }
 0x17d   : > { %v4073_v56 = vadd.f32 %v8475_v12, %v4020_v9  ;;  %v6734_v12 = vld [vmem:[%s9198_s1 + $0x284] ss:$24 sps:$4 sm:$0xff]  }
 0x17e   : > { %4573 = vmatpush1.bf16.msra.mxu0 %v6696_v21  ;;  %v4890_v21 = vsub.s32 1, %v8530_v59 }
 0x17f   : > { %4626 = vmatpush1.bf16.msra.mxu1 %v6699_v22  ;;  %4574 = vmatprep.subr.bf16.mxu0 %v6704_v25  ;;  %v4026_v22 = vadd.f32 %v8329_v5, %v8378_v28  ;;  %v4030_v5 = vadd.f32 %v8362_v48, %v8418_v8  ;;  %v6737_v8 = vld [vmem:[%s9198_s1 + $0x584] ss:$24 sps:$4 sm:$0xff]  }
 0x180   : > { %4627 = vmatprep.subr.bf16.mxu1 %v6707_v42  ;;  %v8578_v42 = vrot.slane %v8556_v46, %v4886_v1  ;;  %v8598_v48 = vrot.slane %v8556_v46, %v4890_v21  ;;  %v6746_v21 = vld [vmem:[%s9198_s1 + $0x224] ss:$24 sps:$4 sm:$0xff]  }
 0x181   : > { %v4079_v28 = vadd.f32 %v4078_v34, %v4026_v22  ;;  %v4081_v34 = vadd.f32 %v4080_v41, %v4028_v23  ;;  %v6735_v41 = vld [vmem:[%s9198_s1 + $0x580] ss:$24 sps:$4 sm:$0xff]  }
 0x182   : > { %4575 = vmatpush1.bf16.msra.mxu0 %v6702_v54  ;;  %v4233_v54 = vpop.f32.mrf.mxu1 }
 0x183   : > { %4628 = vmatpush1.bf16.msra.mxu1 %v6705_v0  ;;  %4576 = vmatprep.subr.bf16.mxu0 %v6710_v37  ;;  %v4124_v0 = vadd.f32 %v8404_v10, %v4071_v18  ;;  %v4075_v37 = vadd.f32 %v8491_v50, %v4022_v20  ;;  %v6729_v10 = vld [vmem:[%s9198_s1 + $0x5b0] ss:$24 sps:$4 sm:$0xff]  }
 0x184   : > { %4629 = vmatprep.subr.bf16.mxu1 %v6713_v38  ;;  %v4237_v50 = vpop.f32.mrf.mxu1 }
 0x186   : > { %4577 = vmatpush1.bf16.msra.mxu0 %v6708_v39  ;;  %v4126_v39 = vadd.f32 %v8426_v43, %v4073_v56  ;;  %v6732_v43 = vld [vmem:[%s9198_s1 + $0x280] ss:$24 sps:$4 sm:$0xff]  }
 0x187   : > { %4630 = vmatpush1.bf16.msra.mxu1 %v6711_v40  ;;  %4578 = vmatprep.subr.bf16.mxu0 %v6716_v44  ;;  %v4083_v40 = vadd.f32 %v4082_v61, %v4030_v5 }
 0x188   : > { %4631 = vmatprep.subr.bf16.mxu1 %v6719_v45  ;;  %v4128_v45 = vadd.f32 %v8444_v58, %v4075_v37  ;;  %v4239_v58 = vpop.f32.mrf.mxu1  ;;  %v6749_v37 = vld [vmem:[%s9198_s1 + $0x524] ss:$24 sps:$4 sm:$0xff]  }
 0x189   : > { %v4136_v1 = vadd.f32 %v8493_v24, %v4083_v40  ;;  %v6752_v40 = vld [vmem:[%s9198_s1 + $0x1f4] ss:$24 sps:$4 sm:$0xff]  }
 0x18a   : > { %4579 = vmatpush1.bf16.msra.mxu0 %v6714_v60  ;;  %v4241_v56 = vpop.f32.mrf.mxu1 }
 0x18b   : > { %4632 = vmatpush1.bf16.msra.mxu1 %v6717_v11  ;;  %4580 = vmatprep.subr.bf16.mxu0 %v6722_v63  ;;  %v4132_v11 = vadd.f32 %v8458_v62, %v4079_v28  ;;  %v4134_v62 = vadd.f32 %v8477_v16, %v4081_v34  ;;  %v6738_v16 = vld [vmem:[%s9198_s1 + $0x250] ss:$24 sps:$4 sm:$0xff]  }
 0x18c   : > { %4633 = vmatprep.subr.bf16.mxu1 %v6725_v13 }
 0x18d   : > { %v4174_v25 = vpop.f32.mrf.mxu0 }
 0x18e   : > { %v4175_v38 = vadd.f32 %v4174_v25, %v4122_v6  ;;  %4581 = vmatpush2.bf16.msra.mxu0 %v6720_v15  ;;  %v6741_v6 = vld [vmem:[%s9198_s1 + $0x550] ss:$24 sps:$4 sm:$0xff]  }
 0x18f   : > { %4634 = vmatpush2.bf16.msra.mxu1 %v6723_v36  ;;  %v4176_v31 = vpop.f32.mrf.mxu0  ;;  %4582 = vmatprep.subr.bf16.mxu0 %v6728_v51 }
 0x190   : > { %4635 = vmatprep.subr.bf16.mxu1 %v6731_v19  ;;  %v4228_v57 = vadd.f32 %v8515_v27, %v4175_v38  ;;  %v4177_v35 = vadd.f32 %v4176_v31, %v4124_v0  ;;  %v4032_v27 = vadd.f32 %v8380_v29, %v8434_v52  ;;  %v6743_v52 = vld [vmem:[%s9198_s1 + $0x554] ss:$24 sps:$4 sm:$0xff]  }
 0x191   : > { %v4178_v44 = vpop.f32.mrf.mxu0 }
 0x192   : > { %v4230_v3 = vadd.f32 %v4229_v47, %v4177_v35  ;;  %v4179_v60 = vadd.f32 %v4178_v44, %v4126_v39  ;;  %4583 = vmatpush2.bf16.msra.mxu0 %v6726_v2  ;;  %v6740_v47 = vld [vmem:[%s9198_s1 + $0x254] ss:$24 sps:$4 sm:$0xff]   ;;  %v4914_v61 = vadd.f32 %v8578_v42, %v4228_v57  ;;  %v4085_v53 = vadd.f32 %v4084_v55, %v4032_v27  ;;  %v6744_v39 = vld [vmem:[%s9198_s1 + $0x220] ss:$24 sps:$4 sm:$0xff]  }
 0x193   : > { %4636 = vmatpush2.bf16.msra.mxu1 %v6729_v10  ;;  %v4180_v63 = vpop.f32.mrf.mxu0  ;;  %4584 = vmatprep.subr.bf16.mxu0 %v6734_v12  ;;  %v5128_v9 = vmul.f32 %v4228_v57, %v4228_v57 }
 0x194   : > { %v4915_v13 = vadd.f32 %v8598_v48, %v4230_v3  ;;  %v4232_v4 = vadd.f32 %v4231_v7, %v4179_v60  ;;  %v4181_v29 = vadd.f32 %v4180_v63, %v4128_v45  ;;  %4637 = vmatprep.subr.bf16.mxu1 %v6737_v8  ;;  %v5129_v15 = vmul.f32 %v4230_v3, %v4230_v3 }
 0x195   : > { %v4184_v18 = vpop.f32.mrf.mxu0  ;;  %v4138_v38 = vadd.f32 %v8507_v14, %v4085_v53  ;;  %v4243_v14 = vpop.f32.mrf.mxu1 }
 0x196   : > { %v6073_v7 = vpack.c.bf16 %v4915_v13, %v4914_v61  ;;  %v5134_v36 = vmul.f32 %v4232_v4, %v4232_v4  ;;  %v4234_v51 = vadd.f32 %v4233_v54, %v4181_v29  ;;  %4585 = vmatpush2.bf16.msra.mxu0 %v6732_v43  ;;  %v4920_v55 = vadd.f32 %v8578_v42, %v4232_v4  ;;  %v6755_v43 = vld [vmem:[%s9198_s1 + $0x4f4] ss:$24 sps:$4 sm:$0xff]   ;;  %v6758_v29 = vld [vmem:[%s9198_s1 + $0x1c4] ss:$24 sps:$4 sm:$0xff]  }
 0x197   : > { %v4185_v24 = vadd.f32 %v4184_v18, %v4132_v11  ;;  %4638 = vmatpush2.bf16.msra.mxu1 %v6735_v41  ;;  %v4186_v19 = vpop.f32.mrf.mxu0  ;;  %v5022_v20 = vadd.f32 %v4232_v4, %v4228_v57  ;;  %4586 = vmatprep.subr.bf16.mxu0 %v6740_v47  ;;  %v6750_v47 = vld [vmem:[%s9198_s1 + $0x1f0] ss:$24 sps:$4 sm:$0xff]  }
 0x198   : > { %5010 = vst [vmem:[%s8627_s14] sm:$0xff] %v6073_v7  ;;  %v4921_v22 = vadd.f32 %v8598_v48, %v4234_v51  ;;  %v5135_v25 = vmul.f32 %v4234_v51, %v4234_v51  ;;  %v4187_v54 = vadd.f32 %v4186_v19, %v4134_v62  ;;  %v5152_v0 = vadd.f32 %v5134_v36, %v5128_v9  ;;  %v6753_v4 = vld [vmem:[%s9198_s1 + $0x4f0] ss:$24 sps:$4 sm:$0xff]   ;;  %v6761_v9 = vld [vmem:[%s9198_s1 + $0x4c4] ss:$24 sps:$4 sm:$0xff]  }
 0x199   : > { %4639 = vmatprep.subr.bf16.mxu1 %v6743_v52  ;;  %v4238_v2 = vadd.f32 %v4237_v50, %v4185_v24  ;;  %v4188_v23 = vpop.f32.mrf.mxu0  ;;  %v5031_v5 = vadd.f32 %v4234_v51, %v4230_v3  ;;  %v6747_v50 = vld [vmem:[%s9198_s1 + $0x520] ss:$24 sps:$4 sm:$0xff]   ;;  %v6764_v24 = vld [vmem:[%s9198_s1 + $0x194] ss:$24 sps:$4 sm:$0xff]  }
 0x19a   : > { %v6076_v28 = vpack.c.bf16 %v4921_v22, %v4920_v55  ;;  %v4189_v31 = vadd.f32 %v4188_v23, %v4136_v1  ;;  %v4240_v10 = vadd.f32 %v4239_v58, %v4187_v54  ;;  %v5161_v12 = vadd.f32 %v5135_v25, %v5129_v15  ;;  %4587 = vmatpush2.bf16.msra.mxu0 %v6738_v16  ;;  %v6759_v55 = vld [vmem:[%s9198_s1 + $0x4c0] ss:$24 sps:$4 sm:$0xff]   ;;  %v6762_v54 = vld [vmem:[%s9198_s1 + $0x190] ss:$24 sps:$4 sm:$0xff]  }
 0x19b   : > { %v4926_v57 = vadd.f32 %v8578_v42, %v4238_v2  ;;  %v5023_v35 = vadd.f32 %v5022_v20, %v4238_v2  ;;  %v5140_v8 = vmul.f32 %v4238_v2, %v4238_v2  ;;  %4640 = vmatpush2.bf16.msra.mxu1 %v6741_v6  ;;  %v4190_v34 = vpop.f32.mrf.mxu0  ;;  %4588 = vmatprep.subr.bf16.mxu0 %v6746_v21  ;;  %v6767_v6 = vld [vmem:[%s9198_s1 + $0x494] ss:$24 sps:$4 sm:$0xff]   ;;  %v6770_v2 = vld [vmem:[%s9198_s1 + $0x764] ss:$24 sps:$4 sm:$0xff]  }
 0x19c   : > { %5013 = vst [vmem:[%s8627_s14 + $0x18] sm:$0xff] %v6076_v28  ;;  %v4927_v44 = vadd.f32 %v8598_v48, %v4240_v10  ;;  %v5032_v45 = vadd.f32 %v5031_v5, %v4240_v10  ;;  %v5141_v3 = vmul.f32 %v4240_v10, %v4240_v10  ;;  %v4191_v60 = vadd.f32 %v4190_v34, %v4138_v38  ;;  %v6765_v38 = vld [vmem:[%s9198_s1 + $0x490] ss:$24 sps:$4 sm:$0xff]   ;;  %v6773_v28 = vld [vmem:[%s9198_s1 + $0xa64] ss:$24 sps:$4 sm:$0xff]  }
 0x19d   : > { %4641 = vmatprep.subr.bf16.mxu1 %v6749_v37  ;;  %v5153_v27 = vadd.f32 %v5152_v0, %v5140_v8  ;;  %v4242_v11 = vadd.f32 %v4241_v56, %v4189_v31  ;;  %v6771_v8 = vld [vmem:[%s9198_s1 + $0xa60] ss:$24 sps:$4 sm:$0xff]   ;;  %v6776_v34 = vld [vmem:[%s9198_s1 + $0x734] ss:$24 sps:$4 sm:$0xff]  }
 0x19e   : > { %v6079_v63 = vpack.c.bf16 %v4927_v44, %v4926_v57  ;;  %v5162_v41 = vadd.f32 %v5161_v12, %v5141_v3  ;;  %v4244_v58 = vadd.f32 %v4243_v14, %v4191_v60  ;;  %4589 = vmatpush2.bf16.msra.mxu0 %v6744_v39  ;;  %v6768_v57 = vld [vmem:[%s9198_s1 + $0x760] ss:$24 sps:$4 sm:$0xff]   ;;  %v6779_v44 = vld [vmem:[%s9198_s1 + $0xa34] ss:$24 sps:$4 sm:$0xff]  }
 0x19f   : > { %v5024_v61 = vadd.f32 %v5023_v35, %v4242_v11  ;;  %v5146_v13 = vmul.f32 %v4242_v11, %v4242_v11  ;;  %4642 = vmatpush2.bf16.msra.mxu1 %v6747_v50  ;;  %4590 = vmatprep.subr.bf16.mxu0 %v6752_v40  ;;  %v4932_v52 = vadd.f32 %v8578_v42, %v4242_v11  ;;  %v6756_v42 = vld [vmem:[%s9198_s1 + $0x1c0] ss:$24 sps:$4 sm:$0xff]   ;;  %v6782_v11 = vld [vmem:[%s9198_s1 + $0x704] ss:$24 sps:$4 sm:$0xff]  }
 0x1a0   : > { %5016 = vst [vmem:[%s8627_s14 + $0x30] sm:$0xff] %v6079_v63  ;;  %v4933_v62 = vadd.f32 %v8598_v48, %v4244_v58  ;;  %v5033_v53 = vadd.f32 %v5032_v45, %v4244_v58  ;;  %v5147_v1 = vmul.f32 %v4244_v58, %v4244_v58  ;;  %4643 = vmatprep.subr.bf16.mxu1 %v6755_v43  ;;  %v6958_v43 = vld [vmem:[#allocation2 + $0x8] ss:$44 sps:$4 sm:$0xff]  }
 0x1a1   : > { %v5025_v18 = vrot.slane %v5024_v61, 4  ;;  %v5154_v7 = vadd.f32 %v5153_v27, %v5146_v13  ;;  %v6774_v27 = vld [vmem:[%s9198_s1 + $0x730] ss:$24 sps:$4 sm:$0xff]   ;;  %v6783_v13 = vld [vmem:[%s9198_s1 + $0xa00] ss:$24 sps:$4 sm:$0xff]  }
 0x1a2   : > { %v6082_v15 = vpack.c.bf16 %v4933_v62, %v4932_v52  ;;  %v5034_v36 = vrot.slane %v5033_v53, 4  ;;  %v5163_v51 = vadd.f32 %v5162_v41, %v5147_v1  ;;  %4591 = vmatpush2.bf16.msra.mxu0 %v6750_v47  ;;  %v6785_v41 = vld [vmem:[%s9198_s1 + $0xa04] ss:$24 sps:$4 sm:$0xff]   ;;  %v6786_v52 = vld [vmem:[%s9198_s1 + $0x6d0] ss:$24 sps:$4 sm:$0xff]  }
 0x1a3   : > { %v5026_v16 = vadd.f32 %v5025_v18, %v5024_v61  ;;  %v5155_v48 = vrot.slane %v5154_v7, 4  ;;  %4644 = vmatpush2.bf16.msra.mxu1 %v6753_v4  ;;  %4592 = vmatprep.subr.bf16.mxu0 %v6758_v29  ;;  %v6959_v58 = vld [vmem:[#allocation2 + $0x5c] ss:$44 sps:$4 sm:$0xff]   ;;  %v6960_v47 = vld [vmem:[#allocation2 + $0x64] ss:$44 sps:$4 sm:$0xff]  }
 0x1a4   : > { %5019 = vst [vmem:[%s8627_s14 + $0x48] sm:$0xff] %v6082_v15  ;;  %v5035_v19 = vadd.f32 %v5034_v36, %v5033_v53  ;;  %v5164_v20 = vrot.slane %v5163_v51, 4  ;;  %4645 = vmatprep.subr.bf16.mxu1 %v6761_v9  ;;  %v6780_v61 = vld [vmem:[%s9198_s1 + $0x700] ss:$24 sps:$4 sm:$0xff]   ;;  %v6788_v4 = vld [vmem:[%s9198_s1 + $0x6d4] ss:$24 sps:$4 sm:$0xff]  }
 0x1a5   : > { %v5027_v56 = vrot.slane %v5026_v16, 2  ;;  %v5156_v21 = vadd.f32 %v5155_v48, %v5154_v7  ;;  %v6791_v29 = vld [vmem:[%s9198_s1 + $0x9d4] ss:$24 sps:$4 sm:$0xff]   ;;  %v6789_v53 = vld [vmem:[%s9198_s1 + $0x9d0] ss:$24 sps:$4 sm:$0xff]  }
 0x1a6   : > { %v5036_v22 = vrot.slane %v5035_v19, 2  ;;  %v5165_v25 = vadd.f32 %v5164_v20, %v5163_v51  ;;  %4593 = vmatpush2.bf16.msra.mxu0 %v6756_v42  ;;  %v6961_v62 = vld [vmem:[#allocation2 + $0x60] ss:$44 sps:$4 sm:$0xff]   ;;  %v6794_v1 = vld [vmem:[%s9198_s1 + $0x6a4] ss:$24 sps:$4 sm:$0xff]  }
 0x1a7   : > { %v5028_v0 = vadd.f32 %v5027_v56, %v5026_v16  ;;  %v5157_v37 = vrot.slane %v5156_v21, 2  ;;  %4646 = vmatpush2.bf16.msra.mxu1 %v6759_v55  ;;  %4594 = vmatprep.subr.bf16.mxu0 %v6764_v24  ;;  %v6962_v9 = vld [vmem:[#allocation2 + $0x14] ss:$44 sps:$4 sm:$0xff]   ;;  %v6963_v18 = vld [vmem:[#allocation2 + $0x1c] ss:$44 sps:$4 sm:$0xff]  }
 0x1a8   : > { %v5037_v23 = vadd.f32 %v5036_v22, %v5035_v19  ;;  %v5166_v5 = vrot.slane %v5165_v25, 2  ;;  %4647 = vmatprep.subr.bf16.mxu1 %v6767_v6  ;;  %v6792_v7 = vld [vmem:[%s9198_s1 + $0x6a0] ss:$24 sps:$4 sm:$0xff]   ;;  %v6800_v36 = vld [vmem:[%s9198_s1 + $0x674] ss:$24 sps:$4 sm:$0xff]  }
 0x1a9   : > { %v5029_v31 = vrot.slane %v5028_v0, 1  ;;  %v5158_v10 = vadd.f32 %v5157_v37, %v5156_v21  ;;  %v6795_v15 = vld [vmem:[%s9198_s1 + $0x9a0] ss:$24 sps:$4 sm:$0xff]   ;;  %v6803_v51 = vld [vmem:[%s9198_s1 + $0x974] ss:$24 sps:$4 sm:$0xff]  }
 0x1aa   : > { %v5038_v12 = vrot.slane %v5037_v23, 1  ;;  %v5167_v39 = vadd.f32 %v5166_v5, %v5165_v25  ;;  %4595 = vmatpush2.bf16.msra.mxu0 %v6762_v54  ;;  %v6798_v42 = vld [vmem:[%s9198_s1 + $0x670] ss:$24 sps:$4 sm:$0xff]   ;;  %v6806_v48 = vld [vmem:[%s9198_s1 + $0x644] ss:$24 sps:$4 sm:$0xff]  }
 0x1ab   : > { %v5159_v35 = vrot.slane %v5158_v10, 1  ;;  %4648 = vmatpush2.bf16.msra.mxu1 %v6765_v38  ;;  %4670 = vmatprep.subr.bf16.mxu0 %v6770_v2  ;;  %v8709_v14 = vadd.f32 %v5029_v31, %v5028_v0  ;;  %v6801_v16 = vld [vmem:[%s9198_s1 + $0x970] ss:$24 sps:$4 sm:$0xff]   ;;  %v6809_v55 = vld [vmem:[%s9198_s1 + $0x944] ss:$24 sps:$4 sm:$0xff]  }
 0x1ac   : > { %v8711_v50 = vadd.f32 %v5038_v12, %v5037_v23  ;;  %v5168_v40 = vrot.slane %v5167_v39, 1  ;;  %4723 = vmatprep.subr.bf16.mxu1 %v6773_v28  ;;  %v6804_v24 = vld [vmem:[%s9198_s1 + $0x640] ss:$24 sps:$4 sm:$0xff]   ;;  %v6812_v20 = vld [vmem:[%s9198_s1 + $0x614] ss:$24 sps:$4 sm:$0xff]  }
 0x1ad   : > { %4597 = vmatmul.mubr.bf16.vlgmr.msra.gmra.mxu0 %v7379_v17  ;;  %v8717_v45 = vadd.f32 %v5159_v35, %v5158_v10  ;;  %v6777_v17 = vld [vmem:[%s9198_s1 + $0xa30] ss:$24 sps:$4 sm:$0xff]   ;;  %v6807_v19 = vld [vmem:[%s9198_s1 + $0x940] ss:$24 sps:$4 sm:$0xff]   ;;  %v6815_v6 = vld [vmem:[%s9198_s1 + $0x914] ss:$24 sps:$4 sm:$0xff]  }
 0x1ae   : > { %v5082_v3 = vcombine.low %v8709_v14, %v8711_v50  ;;  %v8721_v60 = vadd.f32 %v5168_v40, %v5167_v39  ;;  %4650 = vmatmul.mubr.bf16.vlgmr.msra.gmra.mxu1 %v6958_v43  ;;  %4671 = vmatpush1.bf16.msra.mxu0 %v6768_v57  ;;  %v6810_v56 = vld [vmem:[%s9198_s1 + $0x610] ss:$24 sps:$4 sm:$0xff]   ;;  %v6818_v22 = vld [vmem:[%s9198_s1 + $0x8e4] ss:$24 sps:$4 sm:$0xff]   ;;  %v6816_v54 = vld [vmem:[%s9198_s1 + $0x8e0] ss:$24 sps:$4 sm:$0xff]  }
 0x1af   : > { %4724 = vmatpush1.bf16.msra.mxu1 %v6771_v8  ;;  %4672 = vmatprep.subr.bf16.mxu0 %v6776_v34  ;;  %v6813_v21 = vld [vmem:[%s9198_s1 + $0x910] ss:$24 sps:$4 sm:$0xff]   ;;  %v6821_v25 = vld [vmem:[%s9198_s1 + $0xbe4] ss:$24 sps:$4 sm:$0xff]   ;;  %v6819_v0 = vld [vmem:[%s9198_s1 + $0xbe0] ss:$24 sps:$4 sm:$0xff]  }
 0x1b0   : > { %v5212_v63 = vcombine.low %v8717_v45, %v8721_v60  ;;  %4725 = vmatprep.subr.bf16.mxu1 %v6779_v44  ;;  %4606 = vmatprep.mubr.bf16.mxu0 %v6959_v58  ;;  %v6824_v37 = vld [vmem:[%s9198_s1 + $0x8b4] ss:$24 sps:$4 sm:$0xff]   ;;  %v6822_v2 = vld [vmem:[%s9198_s1 + $0x8b0] ss:$24 sps:$4 sm:$0xff]   ;;  %v6830_v5 = vld [vmem:[%s9198_s1 + $0x884] ss:$24 sps:$4 sm:$0xff]  }
 0x1b1   : > { %4659 = vmatprep.mubr.bf16.mxu1 %v6960_v47  ;;  %v6827_v38 = vld [vmem:[%s9198_s1 + $0xbb4] ss:$24 sps:$4 sm:$0xff]   ;;  %v6825_v23 = vld [vmem:[%s9198_s1 + $0xbb0] ss:$24 sps:$4 sm:$0xff]   ;;  %v6833_v28 = vld [vmem:[%s9198_s1 + $0xb84] ss:$24 sps:$4 sm:$0xff]  }
 0x1b2   : > { %4673 = vmatpush1.bf16.msra.mxu0 %v6774_v27  ;;  %v6828_v31 = vld [vmem:[%s9198_s1 + $0x880] ss:$24 sps:$4 sm:$0xff]   ;;  %v6836_v12 = vld [vmem:[%s9198_s1 + $0x854] ss:$24 sps:$4 sm:$0xff]   ;;  %v6834_v57 = vld [vmem:[%s9198_s1 + $0x850] ss:$24 sps:$4 sm:$0xff]  }
 0x1b3   : > { %4726 = vmatpush1.bf16.msra.mxu1 %v6777_v17  ;;  %4674 = vmatprep.subr.bf16.mxu0 %v6782_v11  ;;  %v6831_v10 = vld [vmem:[%s9198_s1 + $0xb80] ss:$24 sps:$4 sm:$0xff]   ;;  %v6839_v39 = vld [vmem:[%s9198_s1 + $0xb54] ss:$24 sps:$4 sm:$0xff]   ;;  %v6837_v35 = vld [vmem:[%s9198_s1 + $0xb50] ss:$24 sps:$4 sm:$0xff]  }
 0x1b4   : > { %4727 = vmatprep.subr.bf16.mxu1 %v6785_v41  ;;  %v6842_v8 = vld [vmem:[%s9198_s1 + $0x824] ss:$24 sps:$4 sm:$0xff]   ;;  %v6840_v40 = vld [vmem:[%s9198_s1 + $0x820] ss:$24 sps:$4 sm:$0xff]   ;;  %v6848_v43 = vld [vmem:[%s9198_s1 + $0x7f4] ss:$24 sps:$4 sm:$0xff]  }
 0x1b5   : > { %4607 = vmatmul.mubr.bf16.gmra.mxu0 %v7616_v33  ;;  %v6797_v33 = vld [vmem:[%s9198_s1 + $0x9a4] ss:$24 sps:$4 sm:$0xff]   ;;  %v6843_v44 = vld [vmem:[%s9198_s1 + $0xb20] ss:$24 sps:$4 sm:$0xff]   ;;  %v6851_v27 = vld [vmem:[%s9198_s1 + $0xaf4] ss:$24 sps:$4 sm:$0xff]  }
 0x1b6   : > { %4675 = vmatpush1.bf16.msra.mxu0 %v6780_v61  ;;  %4660 = vmatmul.mubr.bf16.gmra.mxu1 %v6961_v62  ;;  %v6845_v34 = vld [vmem:[%s9198_s1 + $0xb24] ss:$24 sps:$4 sm:$0xff]   ;;  %v6846_v17 = vld [vmem:[%s9198_s1 + $0x7f0] ss:$24 sps:$4 sm:$0xff]   ;;  %v6852_v47 = vld [vmem:[%s9198_s1 + $0x7c0] ss:$24 sps:$4 sm:$0xff]  }
 0x1b7   : > { %4728 = vmatpush1.bf16.msra.mxu1 %v6783_v13  ;;  %4676 = vmatprep.subr.bf16.mxu0 %v6788_v4  ;;  %v6849_v11 = vld [vmem:[%s9198_s1 + $0xaf0] ss:$24 sps:$4 sm:$0xff]   ;;  %v6854_v41 = vld [vmem:[%s9198_s1 + $0x7c4] ss:$24 sps:$4 sm:$0xff]   ;;  %v6855_v61 = vld [vmem:[%s9198_s1 + $0xac0] ss:$24 sps:$4 sm:$0xff]  }
 0x1b8   : > { %4729 = vmatprep.subr.bf16.mxu1 %v6791_v29  ;;  %4702 = vmatprep.mubr.bf16.mxu0 %v6962_v9  ;;  %v6857_v58 = vld [vmem:[%s9198_s1 + $0xac4] ss:$24 sps:$4 sm:$0xff]   ;;  %v6860_v13 = vld [vmem:[%s9198_s1 + $0x794] ss:$24 sps:$4 sm:$0xff]   ;;  %v6858_v29 = vld [vmem:[%s9198_s1 + $0x790] ss:$24 sps:$4 sm:$0xff]  }
 0x1b9   : > { %4755 = vmatprep.mubr.bf16.mxu1 %v6963_v18  ;;  %v6863_v4 = vld [vmem:[%s9198_s1 + $0xa94] ss:$24 sps:$4 sm:$0xff]   ;;  %v6866_v62 = vld [vmem:[%s9198_s1 + $0xd64] ss:$24 sps:$4 sm:$0xff]   ;;  %v6888_v9 = vld [vmem:[%s9198_s1 + $0x1060] ss:$24 sps:$4 sm:$0xff]  }
 0x1ba   : > { %4677 = vmatpush1.bf16.msra.mxu0 %v6786_v52  ;;  %v6861_v52 = vld [vmem:[%s9198_s1 + $0xa90] ss:$24 sps:$4 sm:$0xff]  }
 0x1bb   : > { %4730 = vmatpush1.bf16.msra.mxu1 %v6789_v53  ;;  %4678 = vmatprep.subr.bf16.mxu0 %v6794_v1  ;;  %v6890_v53 = vld [vmem:[%s9198_s1 + $0x1064] ss:$24 sps:$4 sm:$0xff]   ;;  %v6864_v1 = vld [vmem:[%s9198_s1 + $0xd60] ss:$24 sps:$4 sm:$0xff]  }
 0x1bc   : > { %4731 = vmatprep.subr.bf16.mxu1 %v6797_v33  ;;  %v6869_v33 = vld [vmem:[%s9198_s1 + $0xd34] ss:$24 sps:$4 sm:$0xff]   ;;  %v6964_v18 = vld [vmem:[#allocation2 + $0x10] ss:$44 sps:$4 sm:$0xff]  }
 0x1be   : > { %4679 = vmatpush1.bf16.msra.mxu0 %v6792_v7  ;;  %v6896_v7 = vld [vmem:[%s9198_s1 + $0x1034] ss:$24 sps:$4 sm:$0xff]  }
 0x1bf   : > { %4732 = vmatpush1.bf16.msra.mxu1 %v6795_v15  ;;  %4680 = vmatprep.subr.bf16.mxu0 %v6800_v36  ;;  %v6965_v15 = vld [vmem:[#allocation2 + $0x18] ss:$44 sps:$4 sm:$0xff]   ;;  %v6867_v36 = vld [vmem:[%s9198_s1 + $0xd30] ss:$24 sps:$4 sm:$0xff]  }
 0x1c0   : > { %4733 = vmatprep.subr.bf16.mxu1 %v6803_v51  ;;  %v6966_v51 = vld [vmem:[#allocation2 + $0x6c] ss:$44 sps:$4 sm:$0xff]  }
 0x1c2   : > { %4681 = vmatpush1.bf16.msra.mxu0 %v6798_v42  ;;  %v6872_v42 = vld [vmem:[%s9198_s1 + $0xd04] ss:$24 sps:$4 sm:$0xff]  }
 0x1c3   : > { %4734 = vmatpush1.bf16.msra.mxu1 %v6801_v16  ;;  %4682 = vmatprep.subr.bf16.mxu0 %v6806_v48  ;;  %v6967_v16 = vld [vmem:[#allocation2 + $0x74] ss:$44 sps:$4 sm:$0xff]   ;;  %v6894_v48 = vld [vmem:[%s9198_s1 + $0x1030] ss:$24 sps:$4 sm:$0xff]  }
 0x1c4   : > { %4735 = vmatprep.subr.bf16.mxu1 %v6809_v55  ;;  %v6902_v55 = vld [vmem:[%s9198_s1 + $0x1004] ss:$24 sps:$4 sm:$0xff]  }
 0x1c6   : > { %4683 = vmatpush1.bf16.msra.mxu0 %v6804_v24  ;;  %v6870_v24 = vld [vmem:[%s9198_s1 + $0xd00] ss:$24 sps:$4 sm:$0xff]  }
 0x1c7   : > { %4736 = vmatpush1.bf16.msra.mxu1 %v6807_v19  ;;  %4684 = vmatprep.subr.bf16.mxu0 %v6812_v20  ;;  %v8933_v19 = vpop.f32.mrf.mxu1 }
 0x1c8   : > { %4737 = vmatprep.subr.bf16.mxu1 %v6815_v6  ;;  %v6875_v6 = vld [vmem:[%s9198_s1 + $0xcd4] ss:$24 sps:$4 sm:$0xff]  }
 0x1ca   : > { %4685 = vmatpush1.bf16.msra.mxu0 %v6810_v56  ;;  %v6900_v56 = vld [vmem:[%s9198_s1 + $0x1000] ss:$24 sps:$4 sm:$0xff]  }
 0x1cb   : > { %4738 = vmatpush1.bf16.msra.mxu1 %v6813_v21  ;;  %4686 = vmatprep.subr.bf16.mxu0 %v6818_v22  ;;  %v6968_v21 = vld [vmem:[#allocation2 + $0x68] ss:$44 sps:$4 sm:$0xff]  }
 0x1cc   : > { %4739 = vmatprep.subr.bf16.mxu1 %v6821_v25  ;;  %v6908_v22 = vld [vmem:[%s9198_s1 + $0xfd4] ss:$24 sps:$4 sm:$0xff]   ;;  %v6969_v25 = vld [vmem:[#allocation2 + $0x70] ss:$44 sps:$4 sm:$0xff]  }
 0x1cd   : > { %v8935_v20 = vpop.f32.mrf.mxu0 }
 0x1ce   : > { %4687 = vmatpush2.bf16.msra.mxu0 %v6816_v54  ;;  %v6873_v54 = vld [vmem:[%s9198_s1 + $0xcd0] ss:$24 sps:$4 sm:$0xff]  }
 0x1cf   : > { %4740 = vmatpush2.bf16.msra.mxu1 %v6819_v0  ;;  %4688 = vmatprep.subr.bf16.mxu0 %v6824_v37  ;;  %v8949_v0 = vpop.f32.mrf.mxu1  ;;  %v8951_v37 = vpop.f32.mrf.mxu0 }
 0x1d0   : > { %4741 = vmatprep.subr.bf16.mxu1 %v6827_v38  ;;  %v6878_v38 = vld [vmem:[%s9198_s1 + $0xca4] ss:$24 sps:$4 sm:$0xff]  }
 0x1d2   : > { %4689 = vmatpush2.bf16.msra.mxu0 %v6822_v2  ;;  %v6906_v2 = vld [vmem:[%s9198_s1 + $0xfd0] ss:$24 sps:$4 sm:$0xff]  }
 0x1d3   : > { %4742 = vmatpush2.bf16.msra.mxu1 %v6825_v23  ;;  %4690 = vmatprep.subr.bf16.mxu0 %v6830_v5  ;;  %v6970_v23 = vld [vmem:[#allocation2 + $0x24] ss:$44 sps:$4 sm:$0xff]  }
 0x1d4   : > { %4743 = vmatprep.subr.bf16.mxu1 %v6833_v28  ;;  %v6914_v5 = vld [vmem:[%s9198_s1 + $0xfa4] ss:$24 sps:$4 sm:$0xff]   ;;  %v6876_v28 = vld [vmem:[%s9198_s1 + $0xca0] ss:$24 sps:$4 sm:$0xff]  }
 0x1d6   : > { %4691 = vmatpush2.bf16.msra.mxu0 %v6828_v31  ;;  %v8966_v31 = vpop.f32.mrf.mxu1 }
 0x1d7   : > { %4744 = vmatpush2.bf16.msra.mxu1 %v6831_v10  ;;  %4692 = vmatprep.subr.bf16.mxu0 %v6836_v12  ;;  %v8968_v10 = vpop.f32.mrf.mxu0  ;;  %v6881_v12 = vld [vmem:[%s9198_s1 + $0xc74] ss:$24 sps:$4 sm:$0xff]  }
 0x1d8   : > { %4745 = vmatprep.subr.bf16.mxu1 %v6839_v39  ;;  %v6912_v39 = vld [vmem:[%s9198_s1 + $0xfa0] ss:$24 sps:$4 sm:$0xff]  }
 0x1da   : > { %4693 = vmatpush2.bf16.msra.mxu0 %v6834_v57  ;;  %v6920_v57 = vld [vmem:[%s9198_s1 + $0xf74] ss:$24 sps:$4 sm:$0xff]  }
 0x1db   : > { %4746 = vmatpush2.bf16.msra.mxu1 %v6837_v35  ;;  %4694 = vmatprep.subr.bf16.mxu0 %v6842_v8  ;;  %v6879_v35 = vld [vmem:[%s9198_s1 + $0xc70] ss:$24 sps:$4 sm:$0xff]   ;;  %v8982_v8 = vpop.f32.mrf.mxu1 }
 0x1dc   : > { %4747 = vmatprep.subr.bf16.mxu1 %v6845_v34  ;;  %v8984_v34 = vpop.f32.mrf.mxu0 }
 0x1de   : > { %4695 = vmatpush2.bf16.msra.mxu0 %v6840_v40  ;;  %v6884_v40 = vld [vmem:[%s9198_s1 + $0xc44] ss:$24 sps:$4 sm:$0xff]  }
 0x1df   : > { %4748 = vmatpush2.bf16.msra.mxu1 %v6843_v44  ;;  %4696 = vmatprep.subr.bf16.mxu0 %v6848_v43  ;;  %v6918_v44 = vld [vmem:[%s9198_s1 + $0xf70] ss:$24 sps:$4 sm:$0xff]   ;;  %v8992_v43 = vpop.f32.mrf.mxu1 }
 0x1e0   : > { %4749 = vmatprep.subr.bf16.mxu1 %v6851_v27  ;;  %v8994_v27 = vpop.f32.mrf.mxu0 }
 0x1e2   : > { %4697 = vmatpush2.bf16.msra.mxu0 %v6846_v17  ;;  %v6926_v17 = vld [vmem:[%s9198_s1 + $0xf44] ss:$24 sps:$4 sm:$0xff]  }
 0x1e3   : > { %4750 = vmatpush2.bf16.msra.mxu1 %v6849_v11  ;;  %4698 = vmatprep.subr.bf16.mxu0 %v6854_v41  ;;  %v6882_v11 = vld [vmem:[%s9198_s1 + $0xc40] ss:$24 sps:$4 sm:$0xff]   ;;  %v6887_v41 = vld [vmem:[%s9198_s1 + $0xc14] ss:$24 sps:$4 sm:$0xff]  }
 0x1e4   : > { %4751 = vmatprep.subr.bf16.mxu1 %v6857_v58  ;;  %v6924_v58 = vld [vmem:[%s9198_s1 + $0xf40] ss:$24 sps:$4 sm:$0xff]  }
 0x1e6   : > { %4699 = vmatpush2.bf16.msra.mxu0 %v6852_v47  ;;  %v9008_v47 = vpop.f32.mrf.mxu1 }
 0x1e7   : > { %4752 = vmatpush2.bf16.msra.mxu1 %v6855_v61  ;;  %4700 = vmatprep.subr.bf16.mxu0 %v6860_v13  ;;  %v9010_v61 = vpop.f32.mrf.mxu0  ;;  %v6932_v13 = vld [vmem:[%s9198_s1 + $0xf14] ss:$24 sps:$4 sm:$0xff]  }
 0x1e8   : > { %4753 = vmatprep.subr.bf16.mxu1 %v6863_v4  ;;  %v6885_v4 = vld [vmem:[%s9198_s1 + $0xc10] ss:$24 sps:$4 sm:$0xff]  }
 0x1ea   : > { %4701 = vmatpush2.bf16.msra.mxu0 %v6858_v29  ;;  %v6893_v29 = vld [vmem:[%s9198_s1 + $0xee4] ss:$24 sps:$4 sm:$0xff]  }
 0x1eb   : > { %4754 = vmatpush2.bf16.msra.mxu1 %v6861_v52  ;;  %4776 = vmatprep.subr.bf16.mxu0 %v6866_v62  ;;  %v6930_v52 = vld [vmem:[%s9198_s1 + $0xf10] ss:$24 sps:$4 sm:$0xff]   ;;  %v9024_v62 = vpop.f32.mrf.mxu1 }
 0x1ec   : > { %4829 = vmatprep.subr.bf16.mxu1 %v6890_v53  ;;  %v9026_v53 = vpop.f32.mrf.mxu0 }
 0x1ed   : > { %4703 = vmatmul.mubr.bf16.vlgmr.msra.gmra.mxu0 %v6964_v18 }
 0x1ee   : > { %4777 = vmatpush1.bf16.msra.mxu0 %v6864_v1  ;;  %4756 = vmatmul.mubr.bf16.vlgmr.msra.gmra.mxu1 %v6965_v15  ;;  %v6891_v1 = vld [vmem:[%s9198_s1 + $0xee0] ss:$24 sps:$4 sm:$0xff]   ;;  %v9036_v18 = vpop.f32.mrf.mxu0 }
 0x1ef   : > { %4778 = vmatprep.subr.bf16.mxu0 %v6869_v33  ;;  %4712 = vmatprep.mubr.bf16.mxu0 %v6966_v51  ;;  %v6899_v33 = vld [vmem:[%s9198_s1 + $0xeb4] ss:$24 sps:$4 sm:$0xff]  }
 0x1f0   : > { %4765 = vmatprep.mubr.bf16.mxu1 %v6967_v16  ;;  %4830 = vmatpush1.bf16.msra.mxu1 %v6888_v9  ;;  %v9034_v9 = vpop.f32.mrf.mxu1 }
 0x1f1   : > { %4831 = vmatprep.subr.bf16.mxu1 %v6896_v7  ;;  %v6897_v7 = vld [vmem:[%s9198_s1 + $0xeb0] ss:$24 sps:$4 sm:$0xff]  }
 0x1f2   : > { %4779 = vmatpush1.bf16.msra.mxu0 %v6867_v36  ;;  %v6905_v36 = vld [vmem:[%s9198_s1 + $0xe84] ss:$24 sps:$4 sm:$0xff]   ;;  %v4386_v51 = vpop.f32.mrf.mxu1 }
 0x1f3   : > { %4780 = vmatprep.subr.bf16.mxu0 %v6872_v42  ;;  %v6903_v42 = vld [vmem:[%s9198_s1 + $0xe80] ss:$24 sps:$4 sm:$0xff]  }
 0x1f4   : > { %4832 = vmatpush1.bf16.msra.mxu1 %v6894_v48  ;;  %v6911_v48 = vld [vmem:[%s9198_s1 + $0xe54] ss:$24 sps:$4 sm:$0xff]  }
 0x1f5   : > { %4713 = vmatmul.mubr.bf16.gmra.mxu0 %v6968_v21  ;;  %4833 = vmatprep.subr.bf16.mxu1 %v6902_v55  ;;  %v4388_v55 = vpop.f32.mrf.mxu1 }
 0x1f6   : > { %4781 = vmatpush1.bf16.msra.mxu0 %v6870_v24  ;;  %4766 = vmatmul.mubr.bf16.gmra.mxu1 %v6969_v25 }
 0x1f7   : > { %4782 = vmatprep.subr.bf16.mxu0 %v6875_v6  ;;  %4861 = vmatprep.mubr.bf16.mxu1 %v6999_v30  ;;  %v4390_v6 = vpop.f32.mrf.mxu1 }
 0x1f8   : > { %4834 = vmatpush1.bf16.msra.mxu1 %v6900_v56  ;;  %4808 = vmatprep.mubr.bf16.mxu0 %v6970_v23  ;;  %v6915_v56 = vld [vmem:[%s9198_s1 + $0xe20] ss:$24 sps:$4 sm:$0xff]  }
 0x1f9   : > { %4835 = vmatprep.subr.bf16.mxu1 %v6908_v22  ;;  %v6923_v22 = vld [vmem:[%s9198_s1 + $0xdf4] ss:$24 sps:$4 sm:$0xff]   ;;  %v4392_v25 = vpop.f32.mrf.mxu1  ;;  %v6927_v23 = vld [vmem:[%s9198_s1 + $0xdc0] ss:$24 sps:$4 sm:$0xff]  }
 0x1fa   : > { %4783 = vmatpush1.bf16.msra.mxu0 %v6873_v54  ;;  %v6921_v54 = vld [vmem:[%s9198_s1 + $0xdf0] ss:$24 sps:$4 sm:$0xff]  }
 0x1fb   : > { %4784 = vmatprep.subr.bf16.mxu0 %v6878_v38  ;;  %v4396_v38 = vpop.f32.mrf.mxu1 }
 0x1fc   : > { %4836 = vmatpush1.bf16.msra.mxu1 %v6906_v2  ;;  %v6929_v2 = vld [vmem:[%s9198_s1 + $0xdc4] ss:$24 sps:$4 sm:$0xff]  }
 0x1fd   : > { %4837 = vmatprep.subr.bf16.mxu1 %v6914_v5  ;;  %v4398_v5 = vpop.f32.mrf.mxu1 }
 0x1fe   : > { %4785 = vmatpush1.bf16.msra.mxu0 %v6876_v28 }
 0x1ff   : > { %4786 = vmatprep.subr.bf16.mxu0 %v6881_v12  ;;  %v6935_v12 = vld [vmem:[%s9198_s1 + $0xd94] ss:$24 sps:$4 sm:$0xff]  }
 0x200   : > { %4838 = vmatpush1.bf16.msra.mxu1 %v6912_v39  ;;  %v6933_v39 = vld [vmem:[%s9198_s1 + $0xd90] ss:$24 sps:$4 sm:$0xff]  }
 0x201   : > { %4839 = vmatprep.subr.bf16.mxu1 %v6920_v57  ;;  %v4400_v57 = vpop.f32.mrf.mxu1 }
 0x202   : > { %4787 = vmatpush1.bf16.msra.mxu0 %v6879_v35 }
 0x203   : > { %4788 = vmatprep.subr.bf16.mxu0 %v6884_v40  ;;  %v4334_v40 = vadd.f32 %v8935_v20, %v8933_v19  ;;  %v6971_v19 = vld [vmem:[#allocation2 + $0x20] ss:$44 sps:$4 sm:$0xff]   ;;  %v4340_v20 = vadd.f32 %v8984_v34, %v8982_v8 }
 0x204   : > { %4840 = vmatpush1.bf16.msra.mxu1 %v6918_v44  ;;  %v4336_v44 = vadd.f32 %v8951_v37, %v8949_v0 }
 0x205   : > { %4841 = vmatprep.subr.bf16.mxu1 %v6926_v17  ;;  %v4387_v17 = vadd.f32 %v4386_v51, %v4334_v40  ;;  %v4344_v51 = vadd.f32 %v8994_v27, %v8992_v43  ;;  %v4393_v8 = vadd.f32 %v4392_v25, %v4340_v20 }
 0x206   : > { %4789 = vmatpush1.bf16.msra.mxu0 %v6882_v11  ;;  %v4402_v11 = vpop.f32.mrf.mxu1 }
 0x207   : > { %4790 = vmatprep.subr.bf16.mxu0 %v6887_v41 }
 0x208   : > { %4842 = vmatpush1.bf16.msra.mxu1 %v6924_v58  ;;  %v4894_v58 = vsub.s32 2, %v8530_v59 }
 0x209   : > { %4843 = vmatprep.subr.bf16.mxu1 %v6932_v13  ;;  %v4898_v13 = vsub.s32 3, %v8530_v59 }
 0x20a   : > { %4791 = vmatpush1.bf16.msra.mxu0 %v6885_v4  ;;  %v4338_v4 = vadd.f32 %v8968_v10, %v8966_v31  ;;  %v4346_v31 = vadd.f32 %v9010_v61, %v9008_v47  ;;  %v9097_v10 = vrot.slane %v8556_v46, %v4894_v58  ;;  %v4397_v61 = vadd.f32 %v4396_v38, %v4344_v51 }
 0x20b   : > { %4792 = vmatprep.subr.bf16.mxu0 %v6893_v29  ;;  %v4389_v29 = vadd.f32 %v4388_v55, %v4336_v44 }
 0x20c   : > { %4844 = vmatpush1.bf16.msra.mxu1 %v6930_v52  ;;  %v4391_v0 = vadd.f32 %v4390_v6, %v4338_v4 }
 0x20d   : > { %v4439_v15 = vpop.f32.mrf.mxu0 }
 0x20e   : > { %4793 = vmatpush2.bf16.msra.mxu0 %v6891_v1  ;;  %v4440_v52 = vadd.f32 %v4439_v15, %v4387_v17 }
 0x20f   : > { %4794 = vmatprep.subr.bf16.mxu0 %v6899_v33  ;;  %4862 = vmatmul.mubr.bf16.vlgmr.msra.gmra.mxu1 %v8436_v49  ;;  %v4441_v16 = vpop.f32.mrf.mxu0  ;;  %v6909_v49 = vld [vmem:[%s9198_s1 + $0xe50] ss:$24 sps:$4 sm:$0xff]  }
 0x210   : > { %4871 = vmatprep.mubr.bf16.mxu1 %v6999_v30  ;;  %v6917_v30 = vld [vmem:[%s9198_s1 + $0xe24] ss:$24 sps:$4 sm:$0xff]   ;;  %v4442_v37 = vadd.f32 %v4441_v16, %v4389_v29 }
 0x211   : > { %v4443_v24 = vpop.f32.mrf.mxu0 }
 0x212   : > { %4795 = vmatpush2.bf16.msra.mxu0 %v6897_v7  ;;  %v4444_v34 = vadd.f32 %v4443_v24, %v4391_v0 }
 0x213   : > { %4796 = vmatprep.subr.bf16.mxu0 %v6905_v36  ;;  %v4445_v21 = vpop.f32.mrf.mxu0  ;;  %v6972_v36 = vld [vmem:[#allocation2 + $0x7c] ss:$44 sps:$4 sm:$0xff]  }
 0x214   : > { %v4446_v27 = vadd.f32 %v4445_v21, %v4393_v8 }
 0x216   : > { %4797 = vmatpush2.bf16.msra.mxu0 %v6903_v42 }
 0x217   : > { %4798 = vmatprep.subr.bf16.mxu0 %v6911_v48  ;;  %4872 = vmatmul.mubr.bf16.gmra.mxu1 %v8466_v26  ;;  %v4449_v26 = vpop.f32.mrf.mxu0  ;;  %v9100_v48 = vrot.slane %v8556_v46, %v4898_v13 }
 0x219   : > { %v4451_v28 = vpop.f32.mrf.mxu0 }
 0x21a   : > { %4799 = vmatpush2.bf16.msra.mxu0 %v6909_v49  ;;  %v4348_v49 = vadd.f32 %v9026_v53, %v9024_v62  ;;  %v4450_v62 = vadd.f32 %v4449_v26, %v4397_v61 }
 0x21b   : > { %4800 = vmatprep.subr.bf16.mxu0 %v6917_v30  ;;  %v4453_v35 = vpop.f32.mrf.mxu0 }
 0x21d   : > { %v9084_v41 = vpop.f32.mrf.mxu0 }
 0x21e   : > { %4801 = vmatpush2.bf16.msra.mxu0 %v6915_v56  ;;  %v4399_v56 = vadd.f32 %v4398_v5, %v4346_v31 }
 0x21f   : > { %4802 = vmatprep.subr.bf16.mxu0 %v6923_v22  ;;  %v4350_v22 = vadd.f32 %v9036_v18, %v9034_v9 }
 0x220   : > { %v4452_v53 = vadd.f32 %v4451_v28, %v4399_v56 }
 0x221   : > { %v4403_v18 = vadd.f32 %v4402_v11, %v4350_v22 }
 0x222   : > { %4803 = vmatpush2.bf16.msra.mxu0 %v6921_v54 }
 0x223   : > { %4804 = vmatprep.subr.bf16.mxu0 %v6929_v2 }
 0x226   : > { %4805 = vmatpush2.bf16.msra.mxu0 %v6927_v23 }
 0x227   : > { %4806 = vmatprep.subr.bf16.mxu0 %v6935_v12  ;;  %v4401_v12 = vadd.f32 %v4400_v57, %v4348_v49 }
 0x229   : > { %v4454_v17 = vadd.f32 %v4453_v35, %v4401_v12  ;;  %v4456_v35 = vadd.f32 %v9084_v41, %v4403_v18 }
 0x22a   : > { %4807 = vmatpush2.bf16.msra.mxu0 %v6933_v39  ;;  %v6973_v39 = vld [vmem:[#allocation2 + $0x78] ss:$44 sps:$4 sm:$0xff]  }
 0x22d   : > { %v4545_v33 = vpop.f32.mrf.mxu0  ;;  %4809 = vmatmul.mubr.bf16.vlgmr.msra.gmra.mxu0 %v6971_v19 }
 0x22e   : > { %v4492_v1 = vpop.f32.mrf.mxu1  ;;  %4818 = vmatprep.mubr.bf16.mxu0 %v6972_v36 }
 0x22f   : > { %v4493_v7 = vadd.f32 %v4492_v1, %v4440_v52  ;;  %v4547_v42 = vpop.f32.mrf.mxu0 }
 0x230   : > { %v4494_v15 = vpop.f32.mrf.mxu1 }
 0x231   : > { %v4546_v16 = vadd.f32 %v4545_v33, %v4493_v7  ;;  %v4495_v55 = vadd.f32 %v4494_v15, %v4442_v37  ;;  %v4549_v43 = vpop.f32.mrf.mxu0 }
 0x232   : > { %v4496_v30 = vpop.f32.mrf.mxu1 }
 0x233   : > { %v4548_v6 = vadd.f32 %v4547_v42, %v4495_v55  ;;  %v4497_v47 = vadd.f32 %v4496_v30, %v4444_v34  ;;  %v4551_v46 = vpop.f32.mrf.mxu0  ;;  %v4916_v25 = vadd.f32 %v9097_v10, %v4546_v16  ;;  %v5130_v5 = vmul.f32 %v4546_v16, %v4546_v16 }
 0x234   : > { %v4498_v54 = vpop.f32.mrf.mxu1 }
 0x235   : > { %v4917_v24 = vadd.f32 %v9100_v48, %v4548_v6  ;;  %v4550_v2 = vadd.f32 %v4549_v43, %v4497_v47  ;;  %v4499_v23 = vadd.f32 %v4498_v54, %v4446_v27  ;;  %4819 = vmatmul.mubr.bf16.gmra.mxu0 %v6973_v39  ;;  %v4555_v38 = vpop.f32.mrf.mxu0  ;;  %v5131_v52 = vmul.f32 %v4548_v6, %v4548_v6 }
 0x236   : > { %v4502_v21 = vpop.f32.mrf.mxu1  ;;  %v7000_v39 = vmov 1966171168  }
 0x237   : > { %v6074_v40 = vpack.c.bf16 %v4917_v24, %v4916_v25  ;;  %v5040_v44 = vadd.f32 %v4550_v2, %v4546_v16  ;;  %v5136_v9 = vmul.f32 %v4550_v2, %v4550_v2  ;;  %v4552_v58 = vadd.f32 %v4551_v46, %v4499_v23  ;;  %v4557_v29 = vpop.f32.mrf.mxu0 }
 0x238   : > { %v4503_v13 = vadd.f32 %v4502_v21, %v4450_v62  ;;  %v4504_v4 = vpop.f32.mrf.mxu1  ;;  %v4922_v26 = vadd.f32 %v9097_v10, %v4550_v2 }
 0x239   : > { %5011 = vst [vmem:[%s8627_s14 + $0x8] sm:$0xff] %v6074_v40  ;;  %v5170_v57 = vadd.f32 %v5136_v9, %v5130_v5  ;;  %v4505_v28 = vadd.f32 %v4504_v4, %v4452_v53  ;;  %v4923_v1 = vadd.f32 %v9100_v48, %v4552_v58  ;;  %v5049_v33 = vadd.f32 %v4552_v58, %v4548_v6  ;;  %v4559_v37 = vpop.f32.mrf.mxu0 }
 0x23a   : > { %v5137_v19 = vmul.f32 %v4552_v58, %v4552_v58  ;;  %v4556_v20 = vadd.f32 %v4555_v38, %v4503_v13  ;;  %v4506_v0 = vpop.f32.mrf.mxu1  ;;  %v5086_v38 = vunpack.c.l.s4 %v7000_v39 }
 0x23b   : > { %v4507_v11 = vadd.f32 %v4506_v0, %v4454_v17  ;;  %v4558_v7 = vadd.f32 %v4557_v29, %v4505_v28  ;;  %v6077_v36 = vpack.c.bf16 %v4923_v1, %v4922_v26  ;;  %v4561_v49 = vpop.f32.mrf.mxu0 }
 0x23c   : > { %v5179_v51 = vadd.f32 %v5137_v19, %v5131_v52  ;;  %v4928_v31 = vadd.f32 %v9097_v10, %v4556_v20  ;;  %v5041_v15 = vadd.f32 %v5040_v44, %v4556_v20  ;;  %v4508_v42 = vpop.f32.mrf.mxu1  ;;  %v5142_v8 = vmul.f32 %v4556_v20, %v4556_v20 }
 0x23d   : > { %v4929_v34 = vadd.f32 %v9100_v48, %v4558_v7  ;;  %v5050_v16 = vadd.f32 %v5049_v33, %v4558_v7  ;;  %v5143_v55 = vmul.f32 %v4558_v7, %v4558_v7  ;;  %5014 = vst [vmem:[%s8627_s14 + $0x20] sm:$0xff] %v6077_v36  ;;  %v4509_v30 = vadd.f32 %v4508_v42, %v4456_v35 }
 0x23e   : > { %v4560_v43 = vadd.f32 %v4559_v37, %v4507_v11  ;;  %v5171_v27 = vadd.f32 %v5170_v57, %v5142_v8  ;;  %v5087_v13 = vunpack.c.0.s8 %v5086_v38 }
 0x23f   : > { %v6080_v41 = vpack.c.bf16 %v4929_v34, %v4928_v31  ;;  %v5180_v6 = vadd.f32 %v5179_v51, %v5143_v55  ;;  %v4562_v56 = vadd.f32 %v4561_v49, %v4509_v30 }
 0x240   : > { %v5042_v47 = vadd.f32 %v5041_v15, %v4560_v43  ;;  %v5148_v61 = vmul.f32 %v4560_v43, %v4560_v43  ;;  %v4934_v22 = vadd.f32 %v9097_v10, %v4560_v43  ;;  %v9120_v1 = vsub.s32 %v5087_v13, %v8530_v59 }
 0x241   : > { %5017 = vst [vmem:[%s8627_s14 + $0x38] sm:$0xff] %v6080_v41  ;;  %v4935_v25 = vadd.f32 %v9100_v48, %v4562_v56  ;;  %v5051_v24 = vadd.f32 %v5050_v16, %v4562_v56  ;;  %v5149_v2 = vmul.f32 %v4562_v56, %v4562_v56  ;;  %v4902_v13 = vsub.s32 4, %v8530_v59 }
 0x242   : > { %v5043_v54 = vrot.slane %v5042_v47, 4  ;;  %v5172_v46 = vadd.f32 %v5171_v27, %v5148_v61  ;;  %v9126_v11 = vrot.slane %v5082_v3, %v9120_v1  ;;  %v9137_v31 = vrot.slane %v5212_v63, %v9120_v1 }
 0x243   : > { %v6083_v62 = vpack.c.bf16 %v4935_v25, %v4934_v22  ;;  %v5052_v53 = vrot.slane %v5051_v24, 4  ;;  %v5181_v21 = vadd.f32 %v5180_v6, %v5149_v2 }
 0x244   : > { %v5044_v23 = vadd.f32 %v5043_v54, %v5042_v47  ;;  %v5173_v12 = vrot.slane %v5172_v46, 4 }
 0x245   : > { %5020 = vst [vmem:[%s8627_s14 + $0x50] sm:$0xff] %v6083_v62  ;;  %v5053_v44 = vadd.f32 %v5052_v53, %v5051_v24  ;;  %v5182_v9 = vrot.slane %v5181_v21, 4 }
 0x246   : > { %v5045_v5 = vrot.slane %v5044_v23, 2  ;;  %v5174_v40 = vadd.f32 %v5173_v12, %v5172_v46 }
 0x247   : > { %v5054_v17 = vrot.slane %v5053_v44, 2  ;;  %v5183_v58 = vadd.f32 %v5182_v9, %v5181_v21 }
 0x248   : > { %v5046_v18 = vadd.f32 %v5045_v5, %v5044_v23  ;;  %v5175_v10 = vrot.slane %v5174_v40, 2 }
 0x249   : > { %v5055_v29 = vadd.f32 %v5054_v17, %v5053_v44  ;;  %v5184_v52 = vrot.slane %v5183_v58, 2 }
 0x24a   : > { %v5047_v48 = vrot.slane %v5046_v18, 1  ;;  %v5176_v4 = vadd.f32 %v5175_v10, %v5174_v40 }
 0x24b   : > { %v5056_v26 = vrot.slane %v5055_v29, 1  ;;  %v5185_v28 = vadd.f32 %v5184_v52, %v5183_v58 }
 0x24c   : > { %v5177_v57 = vrot.slane %v5176_v4, 1  ;;  %v5048_v33 = vadd.f32 %v5047_v48, %v5046_v18  ;;  %v4906_v48 = vsub.s32 5, %v8530_v59 }
 0x24d   : > { %v5057_v19 = vadd.f32 %v5056_v26, %v5055_v29  ;;  %v5186_v20 = vrot.slane %v5185_v28, 1 }
 0x24e   : > { %v5178_v37 = vadd.f32 %v5177_v57, %v5176_v4 }
 0x24f   : > { %v5083_v0 = vcombine.low %v5048_v33, %v5057_v19  ;;  %v5187_v35 = vadd.f32 %v5186_v20, %v5185_v28 }
 0x251   : > { %v9129_v7 = vrot.slane %v5083_v0, %v9120_v1  ;;  %v5213_v36 = vcombine.low %v5178_v37, %v5187_v35  ;;  %v6974_v0 = vld [vmem:[%s9199_s2] sm:$0x3f] }
 0x252   : > { %v9151_v37 = vrot.slane %v6974_v0, %v4902_v13 }
 0x253   : > { %v5106_v51 = vcombine.low %v9126_v11, %v9129_v7  ;;  %v9140_v15 = vrot.slane %v5213_v36, %v9120_v1  ;;  %v9153_v36 = vrot.slane %v6974_v0, %v4906_v48 }
 0x255   : > { %v5236_v14 = vcombine.low %v9137_v31, %v9140_v15 }
 0x26d   : > { %v4598_v8 = vpop.f32.mrf.mxu0 }
 0x26e   : > { %v4651_v50 = vpop.f32.mrf.mxu1 }
 0x26f   : > { %v4600_v55 = vpop.f32.mrf.mxu0  ;;  %v4652_v38 = vadd.f32 %v4651_v50, %v4598_v8 }
 0x270   : > { %v4653_v3 = vpop.f32.mrf.mxu1 }
 0x271   : > { %v4602_v30 = vpop.f32.mrf.mxu0  ;;  %v4654_v44 = vadd.f32 %v4653_v3, %v4600_v55 }
 0x272   : > { %v4655_v42 = vpop.f32.mrf.mxu1 }
 0x273   : > { %v4604_v27 = vpop.f32.mrf.mxu0  ;;  %v4656_v18 = vadd.f32 %v4655_v42, %v4602_v30 }
 0x274   : > { %v4657_v34 = vpop.f32.mrf.mxu1 }
 0x275   : > { %v4608_v45 = vpop.f32.mrf.mxu0  ;;  %v4658_v4 = vadd.f32 %v4657_v34, %v4604_v27 }
 0x276   : > { %v4661_v16 = vpop.f32.mrf.mxu1 }
 0x277   : > { %v4610_v41 = vpop.f32.mrf.mxu0  ;;  %v4662_v20 = vadd.f32 %v4661_v16, %v4608_v45 }
 0x278   : > { %v4663_v49 = vpop.f32.mrf.mxu1 }
 0x279   : > { %v4612_v47 = vpop.f32.mrf.mxu0  ;;  %v4664_v50 = vadd.f32 %v4663_v49, %v4610_v41 }
 0x27a   : > { %v4665_v43 = vpop.f32.mrf.mxu1 }
 0x27b   : > { %v4614_v56 = vpop.f32.mrf.mxu0  ;;  %v4666_v8 = vadd.f32 %v4665_v43, %v4612_v47 }
 0x27c   : > { %v4667_v60 = vpop.f32.mrf.mxu1 }
 0x2ad   : > { %v4704_v22 = vpop.f32.mrf.mxu0 }
 0x2ae   : > { %v4757_v63 = vpop.f32.mrf.mxu1  ;;  %v4705_v9 = vadd.f32 %v4704_v22, %v4652_v38 }
 0x2af   : > { %v4706_v46 = vpop.f32.mrf.mxu0 }
 0x2b0   : > { %v4759_v6 = vpop.f32.mrf.mxu1  ;;  %v4707_v10 = vadd.f32 %v4706_v46, %v4654_v44  ;;  %v4758_v29 = vadd.f32 %v4757_v63, %v4705_v9 }
 0x2b1   : > { %v4708_v24 = vpop.f32.mrf.mxu0 }
 0x2b2   : > { %v4761_v61 = vpop.f32.mrf.mxu1  ;;  %v4709_v52 = vadd.f32 %v4708_v24, %v4656_v18  ;;  %v4760_v57 = vadd.f32 %v4759_v6, %v4707_v10  ;;  %v4668_v6 = vadd.f32 %v4667_v60, %v4614_v56 }
 0x2b3   : > { %v4710_v23 = vpop.f32.mrf.mxu0 }
 0x2b4   : > { %v4763_v54 = vpop.f32.mrf.mxu1  ;;  %v4711_v28 = vadd.f32 %v4710_v23, %v4658_v4  ;;  %v4762_v59 = vadd.f32 %v4761_v61, %v4709_v52 }
 0x2b5   : > { %v4714_v62 = vpop.f32.mrf.mxu0 }
 0x2b6   : > { %v4767_v25 = vpop.f32.mrf.mxu1  ;;  %v4715_v34 = vadd.f32 %v4714_v62, %v4662_v20  ;;  %v4764_v30 = vadd.f32 %v4763_v54, %v4711_v28 }
 0x2b7   : > { %v4716_v39 = vpop.f32.mrf.mxu0 }
 0x2b8   : > { %v4769_v2 = vpop.f32.mrf.mxu1  ;;  %v4717_v27 = vadd.f32 %v4716_v39, %v4664_v50  ;;  %v4768_v41 = vadd.f32 %v4767_v25, %v4715_v34 }
 0x2b9   : > { %v4718_v40 = vpop.f32.mrf.mxu0 }
 0x2ba   : > { %v4771_v12 = vpop.f32.mrf.mxu1  ;;  %v4719_v46 = vadd.f32 %v4718_v40, %v4666_v8  ;;  %v4770_v43 = vadd.f32 %v4769_v2, %v4717_v27 }
 0x2bb   : > { %v4720_v58 = vpop.f32.mrf.mxu0 }
 0x2bc   : > { %v9144_v53 = vpop.f32.mrf.mxu1  ;;  %v4721_v47 = vadd.f32 %v4720_v58, %v4668_v6  ;;  %v4772_v44 = vadd.f32 %v4771_v12, %v4719_v46 }
 0x2be   : > { %v4774_v10 = vadd.f32 %v9144_v53, %v4721_v47 }
 0x2cf   : > { %v4863_v21 = vpop.f32.mrf.mxu1 }
 0x2d1   : > { %v4865_v5 = vpop.f32.mrf.mxu1 }
 0x2d3   : > { %v4867_v17 = vpop.f32.mrf.mxu1 }
 0x2d5   : > { %v4869_v19 = vpop.f32.mrf.mxu1 }
 0x2d7   : > { %v4873_v45 = vpop.f32.mrf.mxu1 }
 0x2d9   : > { %v4875_v54 = vpop.f32.mrf.mxu1 }
 0x2db   : > { %v4877_v2 = vpop.f32.mrf.mxu1 }
 0x2ed   : > { %v4810_v26 = vpop.f32.mrf.mxu0 }
 0x2ee   : > { %v4811_v33 = vadd.f32 %v4810_v26, %v4758_v29 }
 0x2ef   : > { %v4812_v35 = vpop.f32.mrf.mxu0 }
 0x2f0   : > { %v4864_v3 = vadd.f32 %v4863_v21, %v4811_v33  ;;  %v4813_v42 = vadd.f32 %v4812_v35, %v4760_v57 }
 0x2f1   : > { %v4814_v55 = vpop.f32.mrf.mxu0 }
 0x2f2   : > { %v4866_v63 = vadd.f32 %v4865_v5, %v4813_v42  ;;  %v4815_v16 = vadd.f32 %v4814_v55, %v4762_v59  ;;  %v4918_v24 = vadd.f32 %v9151_v37, %v4864_v3  ;;  %v5132_v13 = vmul.f32 %v4864_v3, %v4864_v3 }
 0x2f3   : > { %v4816_v22 = vpop.f32.mrf.mxu0 }
 0x2f4   : > { %v4919_v23 = vadd.f32 %v9153_v36, %v4866_v63  ;;  %v4817_v49 = vadd.f32 %v4816_v22, %v4764_v30  ;;  %v4868_v61 = vadd.f32 %v4867_v17, %v4815_v16  ;;  %v5133_v0 = vmul.f32 %v4866_v63, %v4866_v63 }
 0x2f5   : > { %v4820_v21 = vpop.f32.mrf.mxu0 }
 0x2f6   : > { %v6075_v62 = vpack.c.bf16 %v4919_v23, %v4918_v24  ;;  %v4870_v39 = vadd.f32 %v4869_v19, %v4817_v49  ;;  %v4821_v38 = vadd.f32 %v4820_v21, %v4768_v41  ;;  %v4924_v56 = vadd.f32 %v9151_v37, %v4868_v61 }
 0x2f7   : > { %v4822_v5 = vpop.f32.mrf.mxu0  ;;  %v5138_v40 = vmul.f32 %v4868_v61, %v4868_v61  ;;  %v5058_v48 = vadd.f32 %v4868_v61, %v4864_v3  ;;  %v4879_v3 = vpop.f32.mrf.mxu1 }
 0x2f8   : > { %5012 = vst [vmem:[%s8627_s14 + $0x10] sm:$0xff] %v6075_v62  ;;  %v4823_v60 = vadd.f32 %v4822_v5, %v4770_v43  ;;  %v4925_v9 = vadd.f32 %v9153_v36, %v4870_v39  ;;  %v4874_v18 = vadd.f32 %v4873_v45, %v4821_v38  ;;  %v5067_v29 = vadd.f32 %v4870_v39, %v4866_v63 }
 0x2f9   : > { %v4824_v25 = vpop.f32.mrf.mxu0  ;;  %v5139_v52 = vmul.f32 %v4870_v39, %v4870_v39  ;;  %v5188_v33 = vadd.f32 %v5138_v40, %v5132_v13 }
 0x2fa   : > { %v4876_v17 = vadd.f32 %v4875_v54, %v4823_v60  ;;  %v4825_v58 = vadd.f32 %v4824_v25, %v4772_v44  ;;  %v6078_v4 = vpack.c.bf16 %v4925_v9, %v4924_v56  ;;  %v4930_v26 = vadd.f32 %v9151_v37, %v4874_v18 }
 0x2fb   : > { %v4826_v12 = vpop.f32.mrf.mxu0  ;;  %v5144_v57 = vmul.f32 %v4874_v18, %v4874_v18  ;;  %v5059_v19 = vadd.f32 %v5058_v48, %v4874_v18  ;;  %v5197_v30 = vadd.f32 %v5139_v52, %v5133_v0 }
 0x2fc   : > { %v4931_v28 = vadd.f32 %v9153_v36, %v4876_v17  ;;  %5015 = vst [vmem:[%s8627_s14 + $0x28] sm:$0xff] %v6078_v4  ;;  %v4878_v20 = vadd.f32 %v4877_v2, %v4825_v58  ;;  %v4827_v53 = vadd.f32 %v4826_v12, %v4774_v10  ;;  %v5068_v50 = vadd.f32 %v5067_v29, %v4876_v17 }
 0x2fd   : > { %v5145_v59 = vmul.f32 %v4876_v17, %v4876_v17  ;;  %v5189_v42 = vadd.f32 %v5188_v33, %v5144_v57  ;;  %v5113_v4 = vrot.slane %v5106_v51, %v9120_v1 }
 0x2fe   : > { %v6081_v35 = vpack.c.bf16 %v4931_v28, %v4930_v26  ;;  %v5060_v8 = vadd.f32 %v5059_v19, %v4878_v20  ;;  %v5150_v34 = vmul.f32 %v4878_v20, %v4878_v20  ;;  %v4880_v55 = vadd.f32 %v4879_v3, %v4827_v53 }
 0x2ff   : > { %v4936_v27 = vadd.f32 %v9151_v37, %v4878_v20  ;;  %v5198_v46 = vadd.f32 %v5197_v30, %v5145_v59  ;;  %v5243_v26 = vrot.slane %v5236_v14, %v9120_v1 }
 0x300   : > { %5018 = vst [vmem:[%s8627_s14 + $0x40] sm:$0xff] %v6081_v35  ;;  %v5061_v16 = vrot.slane %v5060_v8, 4  ;;  %v5190_v45 = vadd.f32 %v5189_v42, %v5150_v34  ;;  %v4937_v6 = vadd.f32 %v9153_v36, %v4880_v55  ;;  %v5069_v22 = vadd.f32 %v5068_v50, %v4880_v55 }
 0x301   : > { %v5151_v63 = vmul.f32 %v4880_v55, %v4880_v55 }
 0x302   : > { %v5062_v24 = vadd.f32 %v5061_v16, %v5060_v8  ;;  %v5191_v23 = vrot.slane %v5190_v45, 4  ;;  %v6084_v49 = vpack.c.bf16 %v4937_v6, %v4936_v27  ;;  %v5070_v41 = vrot.slane %v5069_v22, 4 }
 0x303   : > { %v5199_v61 = vadd.f32 %v5198_v46, %v5151_v63 }
 0x304   : > { %v5063_v21 = vrot.slane %v5062_v24, 2  ;;  %v5192_v43 = vadd.f32 %v5191_v23, %v5190_v45  ;;  %5021 = vst [vmem:[%s8627_s14 + $0x58] sm:$0xff] %v6084_v49  ;;  %v5071_v47 = vadd.f32 %v5070_v41, %v5069_v22  ;;  %s6087_s14 = smul.u32 6, %s9222_s18 }
 0x305   : > { %v5200_v62 = vrot.slane %v5199_v61, 4 }
 0x306   : > { %v5064_v54 = vadd.f32 %v5063_v21, %v5062_v24  ;;  %v5193_v37 = vrot.slane %v5192_v43, 2  ;;  %v5072_v39 = vrot.slane %v5071_v47, 2  ;;  %s344_s23 = scalar_lea.vmem %s9201_s4, %s6087_s14  ;;  %s356_s25 = scalar_lea.vmem %s9202_s5, %s6087_s14 }
 0x307   : > { %v5201_v38 = vadd.f32 %v5200_v62, %v5199_v61 }
 0x308   : > { %v5065_v5 = vrot.slane %v5064_v54, 1  ;;  %v5194_v36 = vadd.f32 %v5193_v37, %v5192_v43  ;;  %v5073_v44 = vadd.f32 %v5072_v39, %v5071_v47 }
 0x309   : > { %v5202_v60 = vrot.slane %v5201_v38, 2 }
 0x30a   : > { %v5074_v56 = vrot.slane %v5073_v44, 1  ;;  %v5195_v40 = vrot.slane %v5194_v36, 1  ;;  %v5066_v18 = vadd.f32 %v5065_v5, %v5064_v54 }
 0x30b   : > { %v5203_v9 = vadd.f32 %v5202_v60, %v5201_v38 }
 0x30c   : > { %v5075_v25 = vadd.f32 %v5074_v56, %v5073_v44  ;;  %v5196_v17 = vadd.f32 %v5195_v40, %v5194_v36 }
 0x30d   : > { %v5204_v10 = vrot.slane %v5203_v9, 1 }
 0x30e   : > { %v5084_v2 = vcombine.low %v5066_v18, %v5075_v25 }
 0x30f   : > { %v5205_v58 = vadd.f32 %v5204_v10, %v5203_v9 }
 0x310   : > { %v5105_v13 = vrot.slane %v5084_v2, %v9120_v1 }
 0x311   : > { %v5214_v48 = vcombine.low %v5196_v17, %v5205_v58 }
 0x312   : > { %v5120_v29 = vrot.slane %v5105_v13, %v9120_v1 }
 0x313   : > { %v5235_v12 = vrot.slane %v5214_v48, %v9120_v1 }
 0x314   : > { %v5121_v52 = vcombine.low %v5113_v4, %v5120_v29 }
 0x315   : > { %v5250_v57 = vrot.slane %v5235_v12, %v9120_v1 }
 0x316   : > { %5127 = vst.msk [vmem:[%s344_s23] sm:$0x3f] %vm5125_vm5, %v5121_v52 }
 0x317   : > { %v5251_v11 = vcombine.low %v5243_v26, %v5250_v57 }
 0x319   : > { %5253 = vst.msk [vmem:[%s356_s25] sm:$0x3f] %vm5125_vm5, %v5251_v11 }
 0x31a PF: > { %s16_s20 = sadd.s32 1, %s6997_s20   ;;  %s9217_s18 = smov %s6993_s19 }
 0x31b   : > { %p13_p5 = scmp.ge.s32.totalorder %s16_s20, 4   ;;  %s9218_s19 = smov %s9220_s21 }
 0x31d   :  { %15 = sbr.rel (!%p13_p5) target bundleno = 2 (0x2), region = 86 }

</bundles_post_ra>
